<compile_context>
chip_gen: v6e
topology: v6e:2x2x1
jax: 0.10.0
libtpu: 0.0.40
codegen_flags: <defaults>
</compile_context>

<pallas_src>
import functools

import jax
import jax.numpy as jnp
import numpy as np
from jax.experimental import pallas as pl
from jax.experimental.pallas import tpu as pltpu


# ---------------------------------------------------------------------------
# Pallas kernel: fused [in-VMEM im2col -> MXU matmul -> folded-BN bias ->
#                       optional ReLU -> optional residual add -> store]
# ---------------------------------------------------------------------------
def _conv3d_fused_kernel(xp_ref, w_ref, b_ref, *rest, relu, has_residual, wp):
    """One grid step computes one output depth plane [Cout, Q] of one batch.

    xp_ref : [1, Dp, Cin, P]   padded volume, flattened (H+3, W+2) plane -> P lanes.
                               Block index depends only on b -> resident across d.
    w_ref  : [3, Cout, 9*Cin]  BN-scale-folded weights, one LHS matrix per kd tap.
    b_ref  : [Cout, 1]         folded BatchNorm bias (f32).
    rest   : ([r_ref,] o_ref)  optional residual + output blocks, both [1,1,Cout,Q].
    """
    if has_residual:
        r_ref, o_ref = rest
    else:
        (o_ref,) = rest

    d = pl.program_id(1)
    cin = xp_ref.shape[2]
    p = xp_ref.shape[3]
    cout = o_ref.shape[2]
    q = o_ref.shape[3]

    acc = jnp.zeros((cout, q), jnp.float32)
    for kd in range(3):                                   # static 3-tap depth loop
        plane = xp_ref[0, pl.ds(d + kd, 1), :, :].reshape(cin, p)   # [Cin, P]
        # in-VMEM im2col: 9 statically lane-shifted windows of the flattened
        # padded plane, concatenated along the sublane (channel) dimension.
        wins = [plane[:, kh * wp + kw: kh * wp + kw + q]
                for kh in range(3) for kw in range(3)]              # 9 x [Cin, Q]
        rhs = jnp.concatenate(wins, axis=0)                         # [9*Cin, Q]
        w_kd = w_ref[kd].reshape(cout, 9 * cin)                     # [Cout, 9*Cin]
        acc = acc + jnp.dot(w_kd, rhs, preferred_element_type=jnp.float32)

    y = acc + b_ref[...]                       # folded BN bias, f32 epilogue
    if relu:
        y = jnp.maximum(y, 0.0)
    if has_residual:                           # fused residual add (dres1 / dres2)
        y = y + r_ref[...].reshape(cout, q).astype(jnp.float32)
    o_ref[...] = y.reshape(o_ref.shape).astype(o_ref.dtype)


# ---------------------------------------------------------------------------
# Layer wrapper: 3x3x3 conv (pad 1, stride 1) + folded BN + ReLU / residual
# ---------------------------------------------------------------------------
def conv_bn_3d(x, w, scale, bias, *, relu, residual=None,
               compute_dtype=jnp.bfloat16):
    """x: [B, D, Cin, H, W]; w: [3,3,3,Cin,Cout]; scale,bias: [Cout].
    residual (optional): [B, D, Cout, H, W]. Returns [B, D, Cout, H, W]."""
    B, D, Cin, H, W = x.shape
    Cout = w.shape[-1]
    if residual is not None:
        # module semantics: residual is added AFTER the (non-ReLU) convbn output.
        assert not relu, "residual layers in BasicMatcher have no ReLU before the add"

    Dp, Hpp, Wp = D + 2, H + 3, W + 2
    P, Q = Hpp * Wp, H * Wp

    # Zero halo (D: 1/1, H: 1/2, W: 1/1), flatten the (H,W) plane into the lane dim.
    # (The extra bottom row lets all 9 shifted windows be plain in-bounds slices;
    #  the 2 junk lanes per output row are dropped after the kernel.)
    xp = jnp.pad(x, ((0, 0), (1, 1), (0, 0), (1, 2), (1, 1)))
    xp = xp.reshape(B, Dp, Cin, P).astype(compute_dtype)

    # Fold the eval-mode BN scale into the weights; build per-kd LHS [Cout, 9*Cin].
    wf = w.astype(jnp.float32) * scale.astype(jnp.float32)
    w_lhs = jnp.transpose(wf.reshape(3, 9 * Cin, Cout), (0, 2, 1)).astype(compute_dtype)
    b2 = bias.reshape(Cout, 1).astype(jnp.float32)

    args = [xp, w_lhs, b2]
    in_specs = [
        # full padded volume for batch b -> fetched once per b, resident across d
        pl.BlockSpec((1, Dp, Cin, P), lambda b, d: (b, 0, 0, 0)),
        pl.BlockSpec((3, Cout, 9 * Cin), lambda b, d: (0, 0, 0)),
        pl.BlockSpec((Cout, 1), lambda b, d: (0, 0)),
    ]
    if residual is not None:
        r = jnp.pad(residual, ((0, 0), (0, 0), (0, 0), (0, 0), (0, 2)))
        r = r.reshape(B, D, Cout, Q).astype(compute_dtype)
        args.append(r)
        in_specs.append(pl.BlockSpec((1, 1, Cout, Q), lambda b, d: (b, d, 0, 0)))

    kernel = functools.partial(_conv3d_fused_kernel, relu=relu,
                               has_residual=residual is not None, wp=Wp)

    y = pl.pallas_call(
        kernel,
        out_shape=jax.ShapeDtypeStruct((B, D, Cout, Q), compute_dtype),
        grid=(B, D),
        in_specs=in_specs,
        out_specs=pl.BlockSpec((1, 1, Cout, Q), lambda b, d: (b, d, 0, 0)),
        compiler_params=pltpu.CompilerParams(
            dimension_semantics=("parallel", "parallel")),
    )(*args)

    # Drop the 2 junk lanes per row introduced by the flattened-plane im2col trick.
    return y.reshape(B, D, Cout, H, Wp)[..., :W]


# ---------------------------------------------------------------------------
# Deterministic synthetic parameters (BN folded into per-channel scale/bias)
# ---------------------------------------------------------------------------
def _make_layer_params(key, cin, cout, has_bn, eps=1e-5):
    kw, kg, kb, km, kv = jax.random.split(key, 5)
    w = jax.random.normal(kw, (3, 3, 3, cin, cout), jnp.float32)
    w = w * (1.0 / np.sqrt(27.0 * cin))
    if has_bn:
        gamma = 1.0 + 0.1 * jax.random.normal(kg, (cout,), jnp.float32)
        beta = 0.1 * jax.random.normal(kb, (cout,), jnp.float32)
        mean = 0.1 * jax.random.normal(km, (cout,), jnp.float32)
        var = 0.9 + 0.1 * jnp.abs(jax.random.normal(kv, (cout,), jnp.float32))
        scale = gamma / jnp.sqrt(var + eps)
        bias = beta - mean * scale
    else:
        scale = jnp.ones((cout,), jnp.float32)
        bias = jnp.zeros((cout,), jnp.float32)
    return (w, scale, bias)


def init_basic_matcher_params(key, n_gwc_groups, n_concat_features):
    cin = n_gwc_groups + n_concat_features * 2
    #           (cin, cout, has_bn)
    cfg = [
        (cin, 32, True),   # dres0 conv1
        (32, 32, True),    # dres0 conv2
        (32, 32, True),    # dres1 conv1
        (32, 32, True),    # dres1 conv2
        (32, 32, True),    # dres2 conv1
        (32, 32, True),    # dres2 conv2
        (32, 32, True),    # classify conv1
        (32, 1, False),    # classify conv2 (plain Conv3d, bias=False)
    ]
    keys = jax.random.split(key, len(cfg))
    return [_make_layer_params(k, ci, co, bn) for k, (ci, co, bn) in zip(keys, cfg)]


# ---------------------------------------------------------------------------
# BasicMatcher.forward
# ---------------------------------------------------------------------------
@jax.jit
def basic_matcher_forward(cost_ncdhw, params):
    """cost_ncdhw: [B, Cin, D, H, W] (PyTorch layout). Returns [B, 1, D, H, W] f32."""
    x = jnp.transpose(cost_ncdhw, (0, 2, 1, 3, 4))            # -> [B, D, C, H, W]

    # dres0
    c = conv_bn_3d(x, *params[0], relu=True)
    cost0 = conv_bn_3d(c, *params[1], relu=True)

    # cost0 = dres1(cost0) + cost0   (residual fused into the 2nd conv's kernel)
    t = conv_bn_3d(cost0, *params[2], relu=True)
    cost0 = conv_bn_3d(t, *params[3], relu=False, residual=cost0)

    # cost0 = dres2(cost0) + cost0
    t = conv_bn_3d(cost0, *params[4], relu=True)
    cost0 = conv_bn_3d(t, *params[5], relu=False, residual=cost0)

    # classify
    t = conv_bn_3d(cost0, *params[6], relu=True)
    out = conv_bn_3d(t, *params[7], relu=False)               # [B, D, 1, H, W]

    return jnp.transpose(out, (0, 2, 1, 3, 4)).astype(jnp.float32)   # [B, 1, D, H, W]


if __name__ == "__main__":
    key = jax.random.PRNGKey(0)
    k_params, k_input = jax.random.split(key)

    n_gwc_groups = 8
    n_concat_features = 4
    B, D, H, W = 2, 8, 8, 32
    Cin = n_gwc_groups + n_concat_features * 2                # 16

    params = init_basic_matcher_params(k_params, n_gwc_groups, n_concat_features)
    cost = jax.random.normal(k_input, (B, Cin, D, H, W), jnp.float32)

    out = basic_matcher_forward(cost, params)
    out = jax.block_until_ready(out)

    assert out.shape == (B, 1, D, H, W), out.shape
    assert bool(jnp.all(jnp.isfinite(out)))
    print("KERNEL_OK")
</pallas_src>

<mosaic_0001>
module attributes {stable_mosaic.version = 11 : i64} {
  func.func @_conv3d_fused_kernel(%arg0: i32, %arg1: i32, %arg2: memref<1x10x16x374xbf16, #tpu.memory_space<vmem>>, %arg3: memref<3x32x144xbf16, #tpu.memory_space<vmem>>, %arg4: memref<32x1xf32, #tpu.memory_space<vmem>>, %arg5: memref<1x1x32x272xbf16, #tpu.memory_space<vmem>>) attributes {dimension_semantics = [#tpu.dimension_semantics<parallel>, #tpu.dimension_semantics<parallel>], iteration_bounds = array<i64: 2, 8>, scalar_prefetch = 0 : i64, scratch_operands = 0 : i64, tpu.core_type = #tpu.core_type<tc>, window_params = [{transform_indices = @transform_0, window_bounds = array<i64: 1, 10, 16, 374>}, {pipeline_mode = #tpu.pipeline_mode<synchronous>, transform_indices = @transform_1, window_bounds = array<i64: 3, 32, 144>}, {pipeline_mode = #tpu.pipeline_mode<synchronous>, transform_indices = @transform_2, window_bounds = array<i64: 32, 1>}, {transform_indices = @transform_3, window_bounds = array<i64: 1, 1, 32, 272>}]} {
    %cst = arith.constant 0.000000e+00 : f32
    %0 = vector.broadcast %cst : f32 to vector<32x272xf32>
    %c0_i32 = arith.constant 0 : i32
    %1 = arith.addi %arg1, %c0_i32 : i32
    %c0 = arith.constant 0 : index
    %2 = arith.index_cast %1 : i32 to index
    %c0_0 = arith.constant 0 : index
    %c0_1 = arith.constant 0 : index
    %3 = vector.load %arg2[%c0, %2, %c0_0, %c0_1] : memref<1x10x16x374xbf16, #tpu.memory_space<vmem>>, vector<1x1x16x374xbf16>
    %4 = vector.shape_cast %3 : vector<1x1x16x374xbf16> to vector<1x16x374xbf16>
    %5 = vector.shape_cast %4 : vector<1x16x374xbf16> to vector<16x374xbf16>
    %6 = vector.extract_strided_slice %5 {offsets = [0, 0], sizes = [16, 272], strides = [1, 1]} : vector<16x374xbf16> to vector<16x272xbf16>
    %7 = vector.extract_strided_slice %5 {offsets = [0, 1], sizes = [16, 272], strides = [1, 1]} : vector<16x374xbf16> to vector<16x272xbf16>
    %8 = vector.extract_strided_slice %5 {offsets = [0, 2], sizes = [16, 272], strides = [1, 1]} : vector<16x374xbf16> to vector<16x272xbf16>
    %9 = vector.extract_strided_slice %5 {offsets = [0, 34], sizes = [16, 272], strides = [1, 1]} : vector<16x374xbf16> to vector<16x272xbf16>
    %10 = vector.extract_strided_slice %5 {offsets = [0, 35], sizes = [16, 272], strides = [1, 1]} : vector<16x374xbf16> to vector<16x272xbf16>
    %11 = vector.extract_strided_slice %5 {offsets = [0, 36], sizes = [16, 272], strides = [1, 1]} : vector<16x374xbf16> to vector<16x272xbf16>
    %12 = vector.extract_strided_slice %5 {offsets = [0, 68], sizes = [16, 272], strides = [1, 1]} : vector<16x374xbf16> to vector<16x272xbf16>
    %13 = vector.extract_strided_slice %5 {offsets = [0, 69], sizes = [16, 272], strides = [1, 1]} : vector<16x374xbf16> to vector<16x272xbf16>
    %14 = vector.extract_strided_slice %5 {offsets = [0, 70], sizes = [16, 272], strides = [1, 1]} : vector<16x374xbf16> to vector<16x272xbf16>
    %15 = tpu.concatenate %6, %7, %8, %9, %10, %11, %12, %13, %14 in 0 : vector<16x272xbf16>, vector<16x272xbf16>, vector<16x272xbf16>, vector<16x272xbf16>, vector<16x272xbf16>, vector<16x272xbf16>, vector<16x272xbf16>, vector<16x272xbf16>, vector<16x272xbf16> -> vector<144x272xbf16>
    %c0_2 = arith.constant 0 : index
    %c0_3 = arith.constant 0 : index
    %c0_4 = arith.constant 0 : index
    %16 = vector.load %arg3[%c0_2, %c0_3, %c0_4] : memref<3x32x144xbf16, #tpu.memory_space<vmem>>, vector<1x32x144xbf16>
    %17 = vector.shape_cast %16 : vector<1x32x144xbf16> to vector<32x144xbf16>
    %cst_5 = arith.constant dense<0.000000e+00> : vector<32x272xf32>
    %18 = tpu.matmul %17, %15, %cst_5 {dimension_numbers = #tpu.dot_dimension_numbers<[1], [0], [0], [1], [0, 0, 1, 1], [], []>} : vector<32x144xbf16>, vector<144x272xbf16>, vector<32x272xf32> -> vector<32x272xf32>
    %19 = arith.addf %0, %18 : vector<32x272xf32>
    %c1_i32 = arith.constant 1 : i32
    %20 = arith.addi %arg1, %c1_i32 : i32
    %c0_6 = arith.constant 0 : index
    %21 = arith.index_cast %20 : i32 to index
    %c0_7 = arith.constant 0 : index
    %c0_8 = arith.constant 0 : index
    %22 = vector.load %arg2[%c0_6, %21, %c0_7, %c0_8] : memref<1x10x16x374xbf16, #tpu.memory_space<vmem>>, vector<1x1x16x374xbf16>
    %23 = vector.shape_cast %22 : vector<1x1x16x374xbf16> to vector<1x16x374xbf16>
    %24 = vector.shape_cast %23 : vector<1x16x374xbf16> to vector<16x374xbf16>
    %25 = vector.extract_strided_slice %24 {offsets = [0, 0], sizes = [16, 272], strides = [1, 1]} : vector<16x374xbf16> to vector<16x272xbf16>
    %26 = vector.extract_strided_slice %24 {offsets = [0, 1], sizes = [16, 272], strides = [1, 1]} : vector<16x374xbf16> to vector<16x272xbf16>
    %27 = vector.extract_strided_slice %24 {offsets = [0, 2], sizes = [16, 272], strides = [1, 1]} : vector<16x374xbf16> to vector<16x272xbf16>
    %28 = vector.extract_strided_slice %24 {offsets = [0, 34], sizes = [16, 272], strides = [1, 1]} : vector<16x374xbf16> to vector<16x272xbf16>
    %29 = vector.extract_strided_slice %24 {offsets = [0, 35], sizes = [16, 272], strides = [1, 1]} : vector<16x374xbf16> to vector<16x272xbf16>
    %30 = vector.extract_strided_slice %24 {offsets = [0, 36], sizes = [16, 272], strides = [1, 1]} : vector<16x374xbf16> to vector<16x272xbf16>
    %31 = vector.extract_strided_slice %24 {offsets = [0, 68], sizes = [16, 272], strides = [1, 1]} : vector<16x374xbf16> to vector<16x272xbf16>
    %32 = vector.extract_strided_slice %24 {offsets = [0, 69], sizes = [16, 272], strides = [1, 1]} : vector<16x374xbf16> to vector<16x272xbf16>
    %33 = vector.extract_strided_slice %24 {offsets = [0, 70], sizes = [16, 272], strides = [1, 1]} : vector<16x374xbf16> to vector<16x272xbf16>
    %34 = tpu.concatenate %25, %26, %27, %28, %29, %30, %31, %32, %33 in 0 : vector<16x272xbf16>, vector<16x272xbf16>, vector<16x272xbf16>, vector<16x272xbf16>, vector<16x272xbf16>, vector<16x272xbf16>, vector<16x272xbf16>, vector<16x272xbf16>, vector<16x272xbf16> -> vector<144x272xbf16>
    %c1 = arith.constant 1 : index
    %c0_9 = arith.constant 0 : index
    %c0_10 = arith.constant 0 : index
    %35 = vector.load %arg3[%c1, %c0_9, %c0_10] : memref<3x32x144xbf16, #tpu.memory_space<vmem>>, vector<1x32x144xbf16>
    %36 = vector.shape_cast %35 : vector<1x32x144xbf16> to vector<32x144xbf16>
    %cst_11 = arith.constant dense<0.000000e+00> : vector<32x272xf32>
    %37 = tpu.matmul %36, %34, %cst_11 {dimension_numbers = #tpu.dot_dimension_numbers<[1], [0], [0], [1], [0, 0, 1, 1], [], []>} : vector<32x144xbf16>, vector<144x272xbf16>, vector<32x272xf32> -> vector<32x272xf32>
    %38 = arith.addf %19, %37 : vector<32x272xf32>
    %c2_i32 = arith.constant 2 : i32
    %39 = arith.addi %arg1, %c2_i32 : i32
    %c0_12 = arith.constant 0 : index
    %40 = arith.index_cast %39 : i32 to index
    %c0_13 = arith.constant 0 : index
    %c0_14 = arith.constant 0 : index
    %41 = vector.load %arg2[%c0_12, %40, %c0_13, %c0_14] : memref<1x10x16x374xbf16, #tpu.memory_space<vmem>>, vector<1x1x16x374xbf16>
    %42 = vector.shape_cast %41 : vector<1x1x16x374xbf16> to vector<1x16x374xbf16>
    %43 = vector.shape_cast %42 : vector<1x16x374xbf16> to vector<16x374xbf16>
    %44 = vector.extract_strided_slice %43 {offsets = [0, 0], sizes = [16, 272], strides = [1, 1]} : vector<16x374xbf16> to vector<16x272xbf16>
    %45 = vector.extract_strided_slice %43 {offsets = [0, 1], sizes = [16, 272], strides = [1, 1]} : vector<16x374xbf16> to vector<16x272xbf16>
    %46 = vector.extract_strided_slice %43 {offsets = [0, 2], sizes = [16, 272], strides = [1, 1]} : vector<16x374xbf16> to vector<16x272xbf16>
    %47 = vector.extract_strided_slice %43 {offsets = [0, 34], sizes = [16, 272], strides = [1, 1]} : vector<16x374xbf16> to vector<16x272xbf16>
    %48 = vector.extract_strided_slice %43 {offsets = [0, 35], sizes = [16, 272], strides = [1, 1]} : vector<16x374xbf16> to vector<16x272xbf16>
    %49 = vector.extract_strided_slice %43 {offsets = [0, 36], sizes = [16, 272], strides = [1, 1]} : vector<16x374xbf16> to vector<16x272xbf16>
    %50 = vector.extract_strided_slice %43 {offsets = [0, 68], sizes = [16, 272], strides = [1, 1]} : vector<16x374xbf16> to vector<16x272xbf16>
    %51 = vector.extract_strided_slice %43 {offsets = [0, 69], sizes = [16, 272], strides = [1, 1]} : vector<16x374xbf16> to vector<16x272xbf16>
    %52 = vector.extract_strided_slice %43 {offsets = [0, 70], sizes = [16, 272], strides = [1, 1]} : vector<16x374xbf16> to vector<16x272xbf16>
    %53 = tpu.concatenate %44, %45, %46, %47, %48, %49, %50, %51, %52 in 0 : vector<16x272xbf16>, vector<16x272xbf16>, vector<16x272xbf16>, vector<16x272xbf16>, vector<16x272xbf16>, vector<16x272xbf16>, vector<16x272xbf16>, vector<16x272xbf16>, vector<16x272xbf16> -> vector<144x272xbf16>
    %c2 = arith.constant 2 : index
    %c0_15 = arith.constant 0 : index
    %c0_16 = arith.constant 0 : index
    %54 = vector.load %arg3[%c2, %c0_15, %c0_16] : memref<3x32x144xbf16, #tpu.memory_space<vmem>>, vector<1x32x144xbf16>
    %55 = vector.shape_cast %54 : vector<1x32x144xbf16> to vector<32x144xbf16>
    %cst_17 = arith.constant dense<0.000000e+00> : vector<32x272xf32>
    %56 = tpu.matmul %55, %53, %cst_17 {dimension_numbers = #tpu.dot_dimension_numbers<[1], [0], [0], [1], [0, 0, 1, 1], [], []>} : vector<32x144xbf16>, vector<144x272xbf16>, vector<32x272xf32> -> vector<32x272xf32>
    %57 = arith.addf %38, %56 : vector<32x272xf32>
    %c0_18 = arith.constant 0 : index
    %c0_19 = arith.constant 0 : index
    %58 = vector.load %arg4[%c0_18, %c0_19] : memref<32x1xf32, #tpu.memory_space<vmem>>, vector<32x1xf32>
    %59 = vector.broadcast %58 : vector<32x1xf32> to vector<32x272xf32>
    %60 = arith.addf %57, %59 : vector<32x272xf32>
    %cst_20 = arith.constant 0.000000e+00 : f32
    %61 = vector.broadcast %cst_20 : f32 to vector<32x272xf32>
    %62 = arith.maximumf %60, %61 : vector<32x272xf32>
    %63 = vector.shape_cast %62 : vector<32x272xf32> to vector<1x1x32x272xf32>
    %64 = arith.truncf %63 : vector<1x1x32x272xf32> to vector<1x1x32x272xbf16>
    %c0_21 = arith.constant 0 : index
    %c0_22 = arith.constant 0 : index
    %c0_23 = arith.constant 0 : index
    %c0_24 = arith.constant 0 : index
    %65 = vector.load %arg5[%c0_21, %c0_22, %c0_23, %c0_24] : memref<1x1x32x272xbf16, #tpu.memory_space<vmem>>, vector<1x1x32x272xbf16>
    tpu.vector_store %arg5[%c0_21, %c0_22, %c0_23, %c0_24], %64 {strides = array<i32>} : memref<1x1x32x272xbf16, #tpu.memory_space<vmem>>, vector<1x1x32x272xbf16>,
    return
  }
  func.func @transform_0(%arg0: i32, %arg1: i32) -> (i32, i32, i32, i32) {
    %c0_i32 = arith.constant 0 : i32
    %c0_i32_0 = arith.constant 0 : i32
    %c0_i32_1 = arith.constant 0 : i32
    %c0_i32_2 = arith.constant 0 : i32
    return %arg0, %c0_i32, %c0_i32_0, %c0_i32_1 : i32, i32, i32, i32
  }
  func.func @transform_1(%arg0: i32, %arg1: i32) -> (i32, i32, i32) {
    %c0_i32 = arith.constant 0 : i32
    %c0_i32_0 = arith.constant 0 : i32
    %c0_i32_1 = arith.constant 0 : i32
    %c0_i32_2 = arith.constant 0 : i32
    return %c0_i32, %c0_i32_0, %c0_i32_1 : i32, i32, i32
  }
  func.func @transform_2(%arg0: i32, %arg1: i32) -> (i32, i32) {
    %c0_i32 = arith.constant 0 : i32
    %c0_i32_0 = arith.constant 0 : i32
    %c0_i32_1 = arith.constant 0 : i32
    return %c0_i32, %c0_i32_0 : i32, i32
  }
  func.func @transform_3(%arg0: i32, %arg1: i32) -> (i32, i32, i32, i32) {
    %c0_i32 = arith.constant 0 : i32
    %c0_i32_0 = arith.constant 0 : i32
    %c0_i32_1 = arith.constant 0 : i32
    return %arg0, %arg1, %c0_i32, %c0_i32_0 : i32, i32, i32, i32
  }
}

module attributes {stable_mosaic.version = 11 : i64} {
  func.func @_conv3d_fused_kernel(%arg0: i32, %arg1: i32, %arg2: memref<1x10x32x374xbf16, #tpu.memory_space<vmem>>, %arg3: memref<3x32x288xbf16, #tpu.memory_space<vmem>>, %arg4: memref<32x1xf32, #tpu.memory_space<vmem>>, %arg5: memref<1x1x32x272xbf16, #tpu.memory_space<vmem>>) attributes {dimension_semantics = [#tpu.dimension_semantics<parallel>, #tpu.dimension_semantics<parallel>], iteration_bounds = array<i64: 2, 8>, scalar_prefetch = 0 : i64, scratch_operands = 0 : i64, tpu.core_type = #tpu.core_type<tc>, window_params = [{transform_indices = @transform_0, window_bounds = array<i64: 1, 10, 32, 374>}, {pipeline_mode = #tpu.pipeline_mode<synchronous>, transform_indices = @transform_1, window_bounds = array<i64: 3, 32, 288>}, {pipeline_mode = #tpu.pipeline_mode<synchronous>, transform_indices = @transform_2, window_bounds = array<i64: 32, 1>}, {transform_indices = @transform_3, window_bounds = array<i64: 1, 1, 32, 272>}]} {
    %cst = arith.constant 0.000000e+00 : f32
    %0 = vector.broadcast %cst : f32 to vector<32x272xf32>
    %c0_i32 = arith.constant 0 : i32
    %1 = arith.addi %arg1, %c0_i32 : i32
    %c0 = arith.constant 0 : index
    %2 = arith.index_cast %1 : i32 to index
    %c0_0 = arith.constant 0 : index
    %c0_1 = arith.constant 0 : index
    %3 = vector.load %arg2[%c0, %2, %c0_0, %c0_1] : memref<1x10x32x374xbf16, #tpu.memory_space<vmem>>, vector<1x1x32x374xbf16>
    %4 = vector.shape_cast %3 : vector<1x1x32x374xbf16> to vector<1x32x374xbf16>
    %5 = vector.shape_cast %4 : vector<1x32x374xbf16> to vector<32x374xbf16>
    %6 = vector.extract_strided_slice %5 {offsets = [0, 0], sizes = [32, 272], strides = [1, 1]} : vector<32x374xbf16> to vector<32x272xbf16>
    %7 = vector.extract_strided_slice %5 {offsets = [0, 1], sizes = [32, 272], strides = [1, 1]} : vector<32x374xbf16> to vector<32x272xbf16>
    %8 = vector.extract_strided_slice %5 {offsets = [0, 2], sizes = [32, 272], strides = [1, 1]} : vector<32x374xbf16> to vector<32x272xbf16>
    %9 = vector.extract_strided_slice %5 {offsets = [0, 34], sizes = [32, 272], strides = [1, 1]} : vector<32x374xbf16> to vector<32x272xbf16>
    %10 = vector.extract_strided_slice %5 {offsets = [0, 35], sizes = [32, 272], strides = [1, 1]} : vector<32x374xbf16> to vector<32x272xbf16>
    %11 = vector.extract_strided_slice %5 {offsets = [0, 36], sizes = [32, 272], strides = [1, 1]} : vector<32x374xbf16> to vector<32x272xbf16>
    %12 = vector.extract_strided_slice %5 {offsets = [0, 68], sizes = [32, 272], strides = [1, 1]} : vector<32x374xbf16> to vector<32x272xbf16>
    %13 = vector.extract_strided_slice %5 {offsets = [0, 69], sizes = [32, 272], strides = [1, 1]} : vector<32x374xbf16> to vector<32x272xbf16>
    %14 = vector.extract_strided_slice %5 {offsets = [0, 70], sizes = [32, 272], strides = [1, 1]} : vector<32x374xbf16> to vector<32x272xbf16>
    %15 = tpu.concatenate %6, %7, %8, %9, %10, %11, %12, %13, %14 in 0 : vector<32x272xbf16>, vector<32x272xbf16>, vector<32x272xbf16>, vector<32x272xbf16>, vector<32x272xbf16>, vector<32x272xbf16>, vector<32x272xbf16>, vector<32x272xbf16>, vector<32x272xbf16> -> vector<288x272xbf16>
    %c0_2 = arith.constant 0 : index
    %c0_3 = arith.constant 0 : index
    %c0_4 = arith.constant 0 : index
    %16 = vector.load %arg3[%c0_2, %c0_3, %c0_4] : memref<3x32x288xbf16, #tpu.memory_space<vmem>>, vector<1x32x288xbf16>
    %17 = vector.shape_cast %16 : vector<1x32x288xbf16> to vector<32x288xbf16>
    %cst_5 = arith.constant dense<0.000000e+00> : vector<32x272xf32>
    %18 = tpu.matmul %17, %15, %cst_5 {dimension_numbers = #tpu.dot_dimension_numbers<[1], [0], [0], [1], [0, 0, 1, 1], [], []>} : vector<32x288xbf16>, vector<288x272xbf16>, vector<32x272xf32> -> vector<32x272xf32>
    %19 = arith.addf %0, %18 : vector<32x272xf32>
    %c1_i32 = arith.constant 1 : i32
    %20 = arith.addi %arg1, %c1_i32 : i32
    %c0_6 = arith.constant 0 : index
    %21 = arith.index_cast %20 : i32 to index
    %c0_7 = arith.constant 0 : index
    %c0_8 = arith.constant 0 : index
    %22 = vector.load %arg2[%c0_6, %21, %c0_7, %c0_8] : memref<1x10x32x374xbf16, #tpu.memory_space<vmem>>, vector<1x1x32x374xbf16>
    %23 = vector.shape_cast %22 : vector<1x1x32x374xbf16> to vector<1x32x374xbf16>
    %24 = vector.shape_cast %23 : vector<1x32x374xbf16> to vector<32x374xbf16>
    %25 = vector.extract_strided_slice %24 {offsets = [0, 0], sizes = [32, 272], strides = [1, 1]} : vector<32x374xbf16> to vector<32x272xbf16>
    %26 = vector.extract_strided_slice %24 {offsets = [0, 1], sizes = [32, 272], strides = [1, 1]} : vector<32x374xbf16> to vector<32x272xbf16>
    %27 = vector.extract_strided_slice %24 {offsets = [0, 2], sizes = [32, 272], strides = [1, 1]} : vector<32x374xbf16> to vector<32x272xbf16>
    %28 = vector.extract_strided_slice %24 {offsets = [0, 34], sizes = [32, 272], strides = [1, 1]} : vector<32x374xbf16> to vector<32x272xbf16>
    %29 = vector.extract_strided_slice %24 {offsets = [0, 35], sizes = [32, 272], strides = [1, 1]} : vector<32x374xbf16> to vector<32x272xbf16>
    %30 = vector.extract_strided_slice %24 {offsets = [0, 36], sizes = [32, 272], strides = [1, 1]} : vector<32x374xbf16> to vector<32x272xbf16>
    %31 = vector.extract_strided_slice %24 {offsets = [0, 68], sizes = [32, 272], strides = [1, 1]} : vector<32x374xbf16> to vector<32x272xbf16>
    %32 = vector.extract_strided_slice %24 {offsets = [0, 69], sizes = [32, 272], strides = [1, 1]} : vector<32x374xbf16> to vector<32x272xbf16>
    %33 = vector.extract_strided_slice %24 {offsets = [0, 70], sizes = [32, 272], strides = [1, 1]} : vector<32x374xbf16> to vector<32x272xbf16>
    %34 = tpu.concatenate %25, %26, %27, %28, %29, %30, %31, %32, %33 in 0 : vector<32x272xbf16>, vector<32x272xbf16>, vector<32x272xbf16>, vector<32x272xbf16>, vector<32x272xbf16>, vector<32x272xbf16>, vector<32x272xbf16>, vector<32x272xbf16>, vector<32x272xbf16> -> vector<288x272xbf16>
    %c1 = arith.constant 1 : index
    %c0_9 = arith.constant 0 : index
    %c0_10 = arith.constant 0 : index
    %35 = vector.load %arg3[%c1, %c0_9, %c0_10] : memref<3x32x288xbf16, #tpu.memory_space<vmem>>, vector<1x32x288xbf16>
    %36 = vector.shape_cast %35 : vector<1x32x288xbf16> to vector<32x288xbf16>
    %cst_11 = arith.constant dense<0.000000e+00> : vector<32x272xf32>
    %37 = tpu.matmul %36, %34, %cst_11 {dimension_numbers = #tpu.dot_dimension_numbers<[1], [0], [0], [1], [0, 0, 1, 1], [], []>} : vector<32x288xbf16>, vector<288x272xbf16>, vector<32x272xf32> -> vector<32x272xf32>
    %38 = arith.addf %19, %37 : vector<32x272xf32>
    %c2_i32 = arith.constant 2 : i32
    %39 = arith.addi %arg1, %c2_i32 : i32
    %c0_12 = arith.constant 0 : index
    %40 = arith.index_cast %39 : i32 to index
    %c0_13 = arith.constant 0 : index
    %c0_14 = arith.constant 0 : index
    %41 = vector.load %arg2[%c0_12, %40, %c0_13, %c0_14] : memref<1x10x32x374xbf16, #tpu.memory_space<vmem>>, vector<1x1x32x374xbf16>
    %42 = vector.shape_cast %41 : vector<1x1x32x374xbf16> to vector<1x32x374xbf16>
    %43 = vector.shape_cast %42 : vector<1x32x374xbf16> to vector<32x374xbf16>
    %44 = vector.extract_strided_slice %43 {offsets = [0, 0], sizes = [32, 272], strides = [1, 1]} : vector<32x374xbf16> to vector<32x272xbf16>
    %45 = vector.extract_strided_slice %43 {offsets = [0, 1], sizes = [32, 272], strides = [1, 1]} : vector<32x374xbf16> to vector<32x272xbf16>
    %46 = vector.extract_strided_slice %43 {offsets = [0, 2], sizes = [32, 272], strides = [1, 1]} : vector<32x374xbf16> to vector<32x272xbf16>
    %47 = vector.extract_strided_slice %43 {offsets = [0, 34], sizes = [32, 272], strides = [1, 1]} : vector<32x374xbf16> to vector<32x272xbf16>
    %48 = vector.extract_strided_slice %43 {offsets = [0, 35], sizes = [32, 272], strides = [1, 1]} : vector<32x374xbf16> to vector<32x272xbf16>
    %49 = vector.extract_strided_slice %43 {offsets = [0, 36], sizes = [32, 272], strides = [1, 1]} : vector<32x374xbf16> to vector<32x272xbf16>
    %50 = vector.extract_strided_slice %43 {offsets = [0, 68], sizes = [32, 272], strides = [1, 1]} : vector<32x374xbf16> to vector<32x272xbf16>
    %51 = vector.extract_strided_slice %43 {offsets = [0, 69], sizes = [32, 272], strides = [1, 1]} : vector<32x374xbf16> to vector<32x272xbf16>
    %52 = vector.extract_strided_slice %43 {offsets = [0, 70], sizes = [32, 272], strides = [1, 1]} : vector<32x374xbf16> to vector<32x272xbf16>
    %53 = tpu.concatenate %44, %45, %46, %47, %48, %49, %50, %51, %52 in 0 : vector<32x272xbf16>, vector<32x272xbf16>, vector<32x272xbf16>, vector<32x272xbf16>, vector<32x272xbf16>, vector<32x272xbf16>, vector<32x272xbf16>, vector<32x272xbf16>, vector<32x272xbf16> -> vector<288x272xbf16>
    %c2 = arith.constant 2 : index
    %c0_15 = arith.constant 0 : index
    %c0_16 = arith.constant 0 : index
    %54 = vector.load %arg3[%c2, %c0_15, %c0_16] : memref<3x32x288xbf16, #tpu.memory_space<vmem>>, vector<1x32x288xbf16>
    %55 = vector.shape_cast %54 : vector<1x32x288xbf16> to vector<32x288xbf16>
    %cst_17 = arith.constant dense<0.000000e+00> : vector<32x272xf32>
    %56 = tpu.matmul %55, %53, %cst_17 {dimension_numbers = #tpu.dot_dimension_numbers<[1], [0], [0], [1], [0, 0, 1, 1], [], []>} : vector<32x288xbf16>, vector<288x272xbf16>, vector<32x272xf32> -> vector<32x272xf32>
    %57 = arith.addf %38, %56 : vector<32x272xf32>
    %c0_18 = arith.constant 0 : index
    %c0_19 = arith.constant 0 : index
    %58 = vector.load %arg4[%c0_18, %c0_19] : memref<32x1xf32, #tpu.memory_space<vmem>>, vector<32x1xf32>
    %59 = vector.broadcast %58 : vector<32x1xf32> to vector<32x272xf32>
    %60 = arith.addf %57, %59 : vector<32x272xf32>
    %cst_20 = arith.constant 0.000000e+00 : f32
    %61 = vector.broadcast %cst_20 : f32 to vector<32x272xf32>
    %62 = arith.maximumf %60, %61 : vector<32x272xf32>
    %63 = vector.shape_cast %62 : vector<32x272xf32> to vector<1x1x32x272xf32>
    %64 = arith.truncf %63 : vector<1x1x32x272xf32> to vector<1x1x32x272xbf16>
    %c0_21 = arith.constant 0 : index
    %c0_22 = arith.constant 0 : index
    %c0_23 = arith.constant 0 : index
    %c0_24 = arith.constant 0 : index
    %65 = vector.load %arg5[%c0_21, %c0_22, %c0_23, %c0_24] : memref<1x1x32x272xbf16, #tpu.memory_space<vmem>>, vector<1x1x32x272xbf16>
    tpu.vector_store %arg5[%c0_21, %c0_22, %c0_23, %c0_24], %64 {strides = array<i32>} : memref<1x1x32x272xbf16, #tpu.memory_space<vmem>>, vector<1x1x32x272xbf16>,
    return
  }
  func.func @transform_0(%arg0: i32, %arg1: i32) -> (i32, i32, i32, i32) {
    %c0_i32 = arith.constant 0 : i32
    %c0_i32_0 = arith.constant 0 : i32
    %c0_i32_1 = arith.constant 0 : i32
    %c0_i32_2 = arith.constant 0 : i32
    return %arg0, %c0_i32, %c0_i32_0, %c0_i32_1 : i32, i32, i32, i32
  }
  func.func @transform_1(%arg0: i32, %arg1: i32) -> (i32, i32, i32) {
    %c0_i32 = arith.constant 0 : i32
    %c0_i32_0 = arith.constant 0 : i32
    %c0_i32_1 = arith.constant 0 : i32
    %c0_i32_2 = arith.constant 0 : i32
    return %c0_i32, %c0_i32_0, %c0_i32_1 : i32, i32, i32
  }
  func.func @transform_2(%arg0: i32, %arg1: i32) -> (i32, i32) {
    %c0_i32 = arith.constant 0 : i32
    %c0_i32_0 = arith.constant 0 : i32
    %c0_i32_1 = arith.constant 0 : i32
    return %c0_i32, %c0_i32_0 : i32, i32
  }
  func.func @transform_3(%arg0: i32, %arg1: i32) -> (i32, i32, i32, i32) {
    %c0_i32 = arith.constant 0 : i32
    %c0_i32_0 = arith.constant 0 : i32
    %c0_i32_1 = arith.constant 0 : i32
    return %arg0, %arg1, %c0_i32, %c0_i32_0 : i32, i32, i32, i32
  }
}

module attributes {stable_mosaic.version = 11 : i64} {
  func.func @_conv3d_fused_kernel(%arg0: i32, %arg1: i32, %arg2: memref<1x10x32x374xbf16, #tpu.memory_space<vmem>>, %arg3: memref<3x32x288xbf16, #tpu.memory_space<vmem>>, %arg4: memref<32x1xf32, #tpu.memory_space<vmem>>, %arg5: memref<1x1x32x272xbf16, #tpu.memory_space<vmem>>, %arg6: memref<1x1x32x272xbf16, #tpu.memory_space<vmem>>) attributes {dimension_semantics = [#tpu.dimension_semantics<parallel>, #tpu.dimension_semantics<parallel>], iteration_bounds = array<i64: 2, 8>, scalar_prefetch = 0 : i64, scratch_operands = 0 : i64, tpu.core_type = #tpu.core_type<tc>, window_params = [{transform_indices = @transform_0, window_bounds = array<i64: 1, 10, 32, 374>}, {pipeline_mode = #tpu.pipeline_mode<synchronous>, transform_indices = @transform_1, window_bounds = array<i64: 3, 32, 288>}, {pipeline_mode = #tpu.pipeline_mode<synchronous>, transform_indices = @transform_2, window_bounds = array<i64: 32, 1>}, {transform_indices = @transform_3, window_bounds = array<i64: 1, 1, 32, 272>}, {transform_indices = @transform_4, window_bounds = array<i64: 1, 1, 32, 272>}]} {
    %cst = arith.constant 0.000000e+00 : f32
    %0 = vector.broadcast %cst : f32 to vector<32x272xf32>
    %c0_i32 = arith.constant 0 : i32
    %1 = arith.addi %arg1, %c0_i32 : i32
    %c0 = arith.constant 0 : index
    %2 = arith.index_cast %1 : i32 to index
    %c0_0 = arith.constant 0 : index
    %c0_1 = arith.constant 0 : index
    %3 = vector.load %arg2[%c0, %2, %c0_0, %c0_1] : memref<1x10x32x374xbf16, #tpu.memory_space<vmem>>, vector<1x1x32x374xbf16>
    %4 = vector.shape_cast %3 : vector<1x1x32x374xbf16> to vector<1x32x374xbf16>
    %5 = vector.shape_cast %4 : vector<1x32x374xbf16> to vector<32x374xbf16>
    %6 = vector.extract_strided_slice %5 {offsets = [0, 0], sizes = [32, 272], strides = [1, 1]} : vector<32x374xbf16> to vector<32x272xbf16>
    %7 = vector.extract_strided_slice %5 {offsets = [0, 1], sizes = [32, 272], strides = [1, 1]} : vector<32x374xbf16> to vector<32x272xbf16>
    %8 = vector.extract_strided_slice %5 {offsets = [0, 2], sizes = [32, 272], strides = [1, 1]} : vector<32x374xbf16> to vector<32x272xbf16>
    %9 = vector.extract_strided_slice %5 {offsets = [0, 34], sizes = [32, 272], strides = [1, 1]} : vector<32x374xbf16> to vector<32x272xbf16>
    %10 = vector.extract_strided_slice %5 {offsets = [0, 35], sizes = [32, 272], strides = [1, 1]} : vector<32x374xbf16> to vector<32x272xbf16>
    %11 = vector.extract_strided_slice %5 {offsets = [0, 36], sizes = [32, 272], strides = [1, 1]} : vector<32x374xbf16> to vector<32x272xbf16>
    %12 = vector.extract_strided_slice %5 {offsets = [0, 68], sizes = [32, 272], strides = [1, 1]} : vector<32x374xbf16> to vector<32x272xbf16>
    %13 = vector.extract_strided_slice %5 {offsets = [0, 69], sizes = [32, 272], strides = [1, 1]} : vector<32x374xbf16> to vector<32x272xbf16>
    %14 = vector.extract_strided_slice %5 {offsets = [0, 70], sizes = [32, 272], strides = [1, 1]} : vector<32x374xbf16> to vector<32x272xbf16>
    %15 = tpu.concatenate %6, %7, %8, %9, %10, %11, %12, %13, %14 in 0 : vector<32x272xbf16>, vector<32x272xbf16>, vector<32x272xbf16>, vector<32x272xbf16>, vector<32x272xbf16>, vector<32x272xbf16>, vector<32x272xbf16>, vector<32x272xbf16>, vector<32x272xbf16> -> vector<288x272xbf16>
    %c0_2 = arith.constant 0 : index
    %c0_3 = arith.constant 0 : index
    %c0_4 = arith.constant 0 : index
    %16 = vector.load %arg3[%c0_2, %c0_3, %c0_4] : memref<3x32x288xbf16, #tpu.memory_space<vmem>>, vector<1x32x288xbf16>
    %17 = vector.shape_cast %16 : vector<1x32x288xbf16> to vector<32x288xbf16>
    %cst_5 = arith.constant dense<0.000000e+00> : vector<32x272xf32>
    %18 = tpu.matmul %17, %15, %cst_5 {dimension_numbers = #tpu.dot_dimension_numbers<[1], [0], [0], [1], [0, 0, 1, 1], [], []>} : vector<32x288xbf16>, vector<288x272xbf16>, vector<32x272xf32> -> vector<32x272xf32>
    %19 = arith.addf %0, %18 : vector<32x272xf32>
    %c1_i32 = arith.constant 1 : i32
    %20 = arith.addi %arg1, %c1_i32 : i32
    %c0_6 = arith.constant 0 : index
    %21 = arith.index_cast %20 : i32 to index
    %c0_7 = arith.constant 0 : index
    %c0_8 = arith.constant 0 : index
    %22 = vector.load %arg2[%c0_6, %21, %c0_7, %c0_8] : memref<1x10x32x374xbf16, #tpu.memory_space<vmem>>, vector<1x1x32x374xbf16>
    %23 = vector.shape_cast %22 : vector<1x1x32x374xbf16> to vector<1x32x374xbf16>
    %24 = vector.shape_cast %23 : vector<1x32x374xbf16> to vector<32x374xbf16>
    %25 = vector.extract_strided_slice %24 {offsets = [0, 0], sizes = [32, 272], strides = [1, 1]} : vector<32x374xbf16> to vector<32x272xbf16>
    %26 = vector.extract_strided_slice %24 {offsets = [0, 1], sizes = [32, 272], strides = [1, 1]} : vector<32x374xbf16> to vector<32x272xbf16>
    %27 = vector.extract_strided_slice %24 {offsets = [0, 2], sizes = [32, 272], strides = [1, 1]} : vector<32x374xbf16> to vector<32x272xbf16>
    %28 = vector.extract_strided_slice %24 {offsets = [0, 34], sizes = [32, 272], strides = [1, 1]} : vector<32x374xbf16> to vector<32x272xbf16>
    %29 = vector.extract_strided_slice %24 {offsets = [0, 35], sizes = [32, 272], strides = [1, 1]} : vector<32x374xbf16> to vector<32x272xbf16>
    %30 = vector.extract_strided_slice %24 {offsets = [0, 36], sizes = [32, 272], strides = [1, 1]} : vector<32x374xbf16> to vector<32x272xbf16>
    %31 = vector.extract_strided_slice %24 {offsets = [0, 68], sizes = [32, 272], strides = [1, 1]} : vector<32x374xbf16> to vector<32x272xbf16>
    %32 = vector.extract_strided_slice %24 {offsets = [0, 69], sizes = [32, 272], strides = [1, 1]} : vector<32x374xbf16> to vector<32x272xbf16>
    %33 = vector.extract_strided_slice %24 {offsets = [0, 70], sizes = [32, 272], strides = [1, 1]} : vector<32x374xbf16> to vector<32x272xbf16>
    %34 = tpu.concatenate %25, %26, %27, %28, %29, %30, %31, %32, %33 in 0 : vector<32x272xbf16>, vector<32x272xbf16>, vector<32x272xbf16>, vector<32x272xbf16>, vector<32x272xbf16>, vector<32x272xbf16>, vector<32x272xbf16>, vector<32x272xbf16>, vector<32x272xbf16> -> vector<288x272xbf16>
    %c1 = arith.constant 1 : index
    %c0_9 = arith.constant 0 : index
    %c0_10 = arith.constant 0 : index
    %35 = vector.load %arg3[%c1, %c0_9, %c0_10] : memref<3x32x288xbf16, #tpu.memory_space<vmem>>, vector<1x32x288xbf16>
    %36 = vector.shape_cast %35 : vector<1x32x288xbf16> to vector<32x288xbf16>
    %cst_11 = arith.constant dense<0.000000e+00> : vector<32x272xf32>
    %37 = tpu.matmul %36, %34, %cst_11 {dimension_numbers = #tpu.dot_dimension_numbers<[1], [0], [0], [1], [0, 0, 1, 1], [], []>} : vector<32x288xbf16>, vector<288x272xbf16>, vector<32x272xf32> -> vector<32x272xf32>
    %38 = arith.addf %19, %37 : vector<32x272xf32>
    %c2_i32 = arith.constant 2 : i32
    %39 = arith.addi %arg1, %c2_i32 : i32
    %c0_12 = arith.constant 0 : index
    %40 = arith.index_cast %39 : i32 to index
    %c0_13 = arith.constant 0 : index
    %c0_14 = arith.constant 0 : index
    %41 = vector.load %arg2[%c0_12, %40, %c0_13, %c0_14] : memref<1x10x32x374xbf16, #tpu.memory_space<vmem>>, vector<1x1x32x374xbf16>
    %42 = vector.shape_cast %41 : vector<1x1x32x374xbf16> to vector<1x32x374xbf16>
    %43 = vector.shape_cast %42 : vector<1x32x374xbf16> to vector<32x374xbf16>
    %44 = vector.extract_strided_slice %43 {offsets = [0, 0], sizes = [32, 272], strides = [1, 1]} : vector<32x374xbf16> to vector<32x272xbf16>
    %45 = vector.extract_strided_slice %43 {offsets = [0, 1], sizes = [32, 272], strides = [1, 1]} : vector<32x374xbf16> to vector<32x272xbf16>
    %46 = vector.extract_strided_slice %43 {offsets = [0, 2], sizes = [32, 272], strides = [1, 1]} : vector<32x374xbf16> to vector<32x272xbf16>
    %47 = vector.extract_strided_slice %43 {offsets = [0, 34], sizes = [32, 272], strides = [1, 1]} : vector<32x374xbf16> to vector<32x272xbf16>
    %48 = vector.extract_strided_slice %43 {offsets = [0, 35], sizes = [32, 272], strides = [1, 1]} : vector<32x374xbf16> to vector<32x272xbf16>
    %49 = vector.extract_strided_slice %43 {offsets = [0, 36], sizes = [32, 272], strides = [1, 1]} : vector<32x374xbf16> to vector<32x272xbf16>
    %50 = vector.extract_strided_slice %43 {offsets = [0, 68], sizes = [32, 272], strides = [1, 1]} : vector<32x374xbf16> to vector<32x272xbf16>
    %51 = vector.extract_strided_slice %43 {offsets = [0, 69], sizes = [32, 272], strides = [1, 1]} : vector<32x374xbf16> to vector<32x272xbf16>
    %52 = vector.extract_strided_slice %43 {offsets = [0, 70], sizes = [32, 272], strides = [1, 1]} : vector<32x374xbf16> to vector<32x272xbf16>
    %53 = tpu.concatenate %44, %45, %46, %47, %48, %49, %50, %51, %52 in 0 : vector<32x272xbf16>, vector<32x272xbf16>, vector<32x272xbf16>, vector<32x272xbf16>, vector<32x272xbf16>, vector<32x272xbf16>, vector<32x272xbf16>, vector<32x272xbf16>, vector<32x272xbf16> -> vector<288x272xbf16>
    %c2 = arith.constant 2 : index
    %c0_15 = arith.constant 0 : index
    %c0_16 = arith.constant 0 : index
    %54 = vector.load %arg3[%c2, %c0_15, %c0_16] : memref<3x32x288xbf16, #tpu.memory_space<vmem>>, vector<1x32x288xbf16>
    %55 = vector.shape_cast %54 : vector<1x32x288xbf16> to vector<32x288xbf16>
    %cst_17 = arith.constant dense<0.000000e+00> : vector<32x272xf32>
    %56 = tpu.matmul %55, %53, %cst_17 {dimension_numbers = #tpu.dot_dimension_numbers<[1], [0], [0], [1], [0, 0, 1, 1], [], []>} : vector<32x288xbf16>, vector<288x272xbf16>, vector<32x272xf32> -> vector<32x272xf32>
    %57 = arith.addf %38, %56 : vector<32x272xf32>
    %c0_18 = arith.constant 0 : index
    %c0_19 = arith.constant 0 : index
    %58 = vector.load %arg4[%c0_18, %c0_19] : memref<32x1xf32, #tpu.memory_space<vmem>>, vector<32x1xf32>
    %59 = vector.broadcast %58 : vector<32x1xf32> to vector<32x272xf32>
    %60 = arith.addf %57, %59 : vector<32x272xf32>
    %c0_20 = arith.constant 0 : index
    %c0_21 = arith.constant 0 : index
    %c0_22 = arith.constant 0 : index
    %c0_23 = arith.constant 0 : index
    %61 = vector.load %arg5[%c0_20, %c0_21, %c0_22, %c0_23] : memref<1x1x32x272xbf16, #tpu.memory_space<vmem>>, vector<1x1x32x272xbf16>
    %62 = vector.shape_cast %61 : vector<1x1x32x272xbf16> to vector<32x272xbf16>
    %63 = arith.extf %62 : vector<32x272xbf16> to vector<32x272xf32>
    %64 = arith.addf %60, %63 : vector<32x272xf32>
    %65 = vector.shape_cast %64 : vector<32x272xf32> to vector<1x1x32x272xf32>
    %66 = arith.truncf %65 : vector<1x1x32x272xf32> to vector<1x1x32x272xbf16>
    %c0_24 = arith.constant 0 : index
    %c0_25 = arith.constant 0 : index
    %c0_26 = arith.constant 0 : index
    %c0_27 = arith.constant 0 : index
    %67 = vector.load %arg6[%c0_24, %c0_25, %c0_26, %c0_27] : memref<1x1x32x272xbf16, #tpu.memory_space<vmem>>, vector<1x1x32x272xbf16>
    tpu.vector_store %arg6[%c0_24, %c0_25, %c0_26, %c0_27], %66 {strides = array<i32>} : memref<1x1x32x272xbf16, #tpu.memory_space<vmem>>, vector<1x1x32x272xbf16>,
    return
  }
  func.func @transform_0(%arg0: i32, %arg1: i32) -> (i32, i32, i32, i32) {
    %c0_i32 = arith.constant 0 : i32
    %c0_i32_0 = arith.constant 0 : i32
    %c0_i32_1 = arith.constant 0 : i32
    %c0_i32_2 = arith.constant 0 : i32
    return %arg0, %c0_i32, %c0_i32_0, %c0_i32_1 : i32, i32, i32, i32
  }
  func.func @transform_1(%arg0: i32, %arg1: i32) -> (i32, i32, i32) {
    %c0_i32 = arith.constant 0 : i32
    %c0_i32_0 = arith.constant 0 : i32
    %c0_i32_1 = arith.constant 0 : i32
    %c0_i32_2 = arith.constant 0 : i32
    return %c0_i32, %c0_i32_0, %c0_i32_1 : i32, i32, i32
  }
  func.func @transform_2(%arg0: i32, %arg1: i32) -> (i32, i32) {
    %c0_i32 = arith.constant 0 : i32
    %c0_i32_0 = arith.constant 0 : i32
    %c0_i32_1 = arith.constant 0 : i32
    return %c0_i32, %c0_i32_0 : i32, i32
  }
  func.func @transform_3(%arg0: i32, %arg1: i32) -> (i32, i32, i32, i32) {
    %c0_i32 = arith.constant 0 : i32
    %c0_i32_0 = arith.constant 0 : i32
    %c0_i32_1 = arith.constant 0 : i32
    return %arg0, %arg1, %c0_i32, %c0_i32_0 : i32, i32, i32, i32
  }
  func.func @transform_4(%arg0: i32, %arg1: i32) -> (i32, i32, i32, i32) {
    %c0_i32 = arith.constant 0 : i32
    %c0_i32_0 = arith.constant 0 : i32
    %c0_i32_1 = arith.constant 0 : i32
    return %arg0, %arg1, %c0_i32, %c0_i32_0 : i32, i32, i32, i32
  }
}

module attributes {stable_mosaic.version = 11 : i64} {
  func.func @_conv3d_fused_kernel(%arg0: i32, %arg1: i32, %arg2: memref<1x10x32x374xbf16, #tpu.memory_space<vmem>>, %arg3: memref<3x1x288xbf16, #tpu.memory_space<vmem>>, %arg4: memref<1x1xf32, #tpu.memory_space<vmem>>, %arg5: memref<1x1x1x272xbf16, #tpu.memory_space<vmem>>) attributes {dimension_semantics = [#tpu.dimension_semantics<parallel>, #tpu.dimension_semantics<parallel>], iteration_bounds = array<i64: 2, 8>, scalar_prefetch = 0 : i64, scratch_operands = 0 : i64, tpu.core_type = #tpu.core_type<tc>, window_params = [{transform_indices = @transform_0, window_bounds = array<i64: 1, 10, 32, 374>}, {pipeline_mode = #tpu.pipeline_mode<synchronous>, transform_indices = @transform_1, window_bounds = array<i64: 3, 1, 288>}, {pipeline_mode = #tpu.pipeline_mode<synchronous>, transform_indices = @transform_2, window_bounds = array<i64: 1, 1>}, {transform_indices = @transform_3, window_bounds = array<i64: 1, 1, 1, 272>}]} {
    %cst = arith.constant 0.000000e+00 : f32
    %0 = vector.broadcast %cst : f32 to vector<1x272xf32>
    %c0_i32 = arith.constant 0 : i32
    %1 = arith.addi %arg1, %c0_i32 : i32
    %c0 = arith.constant 0 : index
    %2 = arith.index_cast %1 : i32 to index
    %c0_0 = arith.constant 0 : index
    %c0_1 = arith.constant 0 : index
    %3 = vector.load %arg2[%c0, %2, %c0_0, %c0_1] : memref<1x10x32x374xbf16, #tpu.memory_space<vmem>>, vector<1x1x32x374xbf16>
    %4 = vector.shape_cast %3 : vector<1x1x32x374xbf16> to vector<1x32x374xbf16>
    %5 = vector.shape_cast %4 : vector<1x32x374xbf16> to vector<32x374xbf16>
    %6 = vector.extract_strided_slice %5 {offsets = [0, 0], sizes = [32, 272], strides = [1, 1]} : vector<32x374xbf16> to vector<32x272xbf16>
    %7 = vector.extract_strided_slice %5 {offsets = [0, 1], sizes = [32, 272], strides = [1, 1]} : vector<32x374xbf16> to vector<32x272xbf16>
    %8 = vector.extract_strided_slice %5 {offsets = [0, 2], sizes = [32, 272], strides = [1, 1]} : vector<32x374xbf16> to vector<32x272xbf16>
    %9 = vector.extract_strided_slice %5 {offsets = [0, 34], sizes = [32, 272], strides = [1, 1]} : vector<32x374xbf16> to vector<32x272xbf16>
    %10 = vector.extract_strided_slice %5 {offsets = [0, 35], sizes = [32, 272], strides = [1, 1]} : vector<32x374xbf16> to vector<32x272xbf16>
    %11 = vector.extract_strided_slice %5 {offsets = [0, 36], sizes = [32, 272], strides = [1, 1]} : vector<32x374xbf16> to vector<32x272xbf16>
    %12 = vector.extract_strided_slice %5 {offsets = [0, 68], sizes = [32, 272], strides = [1, 1]} : vector<32x374xbf16> to vector<32x272xbf16>
    %13 = vector.extract_strided_slice %5 {offsets = [0, 69], sizes = [32, 272], strides = [1, 1]} : vector<32x374xbf16> to vector<32x272xbf16>
    %14 = vector.extract_strided_slice %5 {offsets = [0, 70], sizes = [32, 272], strides = [1, 1]} : vector<32x374xbf16> to vector<32x272xbf16>
    %15 = tpu.concatenate %6, %7, %8, %9, %10, %11, %12, %13, %14 in 0 : vector<32x272xbf16>, vector<32x272xbf16>, vector<32x272xbf16>, vector<32x272xbf16>, vector<32x272xbf16>, vector<32x272xbf16>, vector<32x272xbf16>, vector<32x272xbf16>, vector<32x272xbf16> -> vector<288x272xbf16>
    %c0_2 = arith.constant 0 : index
    %c0_3 = arith.constant 0 : index
    %c0_4 = arith.constant 0 : index
    %16 = vector.load %arg3[%c0_2, %c0_3, %c0_4] : memref<3x1x288xbf16, #tpu.memory_space<vmem>>, vector<1x1x288xbf16>
    %17 = vector.shape_cast %16 : vector<1x1x288xbf16> to vector<1x288xbf16>
    %cst_5 = arith.constant dense<0.000000e+00> : vector<1x272xf32>
    %18 = tpu.matmul %17, %15, %cst_5 {dimension_numbers = #tpu.dot_dimension_numbers<[1], [0], [0], [1], [0, 0, 1, 1], [], []>} : vector<1x288xbf16>, vector<288x272xbf16>, vector<1x272xf32> -> vector<1x272xf32>
    %19 = arith.addf %0, %18 : vector<1x272xf32>
    %c1_i32 = arith.constant 1 : i32
    %20 = arith.addi %arg1, %c1_i32 : i32
    %c0_6 = arith.constant 0 : index
    %21 = arith.index_cast %20 : i32 to index
    %c0_7 = arith.constant 0 : index
    %c0_8 = arith.constant 0 : index
    %22 = vector.load %arg2[%c0_6, %21, %c0_7, %c0_8] : memref<1x10x32x374xbf16, #tpu.memory_space<vmem>>, vector<1x1x32x374xbf16>
    %23 = vector.shape_cast %22 : vector<1x1x32x374xbf16> to vector<1x32x374xbf16>
    %24 = vector.shape_cast %23 : vector<1x32x374xbf16> to vector<32x374xbf16>
    %25 = vector.extract_strided_slice %24 {offsets = [0, 0], sizes = [32, 272], strides = [1, 1]} : vector<32x374xbf16> to vector<32x272xbf16>
    %26 = vector.extract_strided_slice %24 {offsets = [0, 1], sizes = [32, 272], strides = [1, 1]} : vector<32x374xbf16> to vector<32x272xbf16>
    %27 = vector.extract_strided_slice %24 {offsets = [0, 2], sizes = [32, 272], strides = [1, 1]} : vector<32x374xbf16> to vector<32x272xbf16>
    %28 = vector.extract_strided_slice %24 {offsets = [0, 34], sizes = [32, 272], strides = [1, 1]} : vector<32x374xbf16> to vector<32x272xbf16>
    %29 = vector.extract_strided_slice %24 {offsets = [0, 35], sizes = [32, 272], strides = [1, 1]} : vector<32x374xbf16> to vector<32x272xbf16>
    %30 = vector.extract_strided_slice %24 {offsets = [0, 36], sizes = [32, 272], strides = [1, 1]} : vector<32x374xbf16> to vector<32x272xbf16>
    %31 = vector.extract_strided_slice %24 {offsets = [0, 68], sizes = [32, 272], strides = [1, 1]} : vector<32x374xbf16> to vector<32x272xbf16>
    %32 = vector.extract_strided_slice %24 {offsets = [0, 69], sizes = [32, 272], strides = [1, 1]} : vector<32x374xbf16> to vector<32x272xbf16>
    %33 = vector.extract_strided_slice %24 {offsets = [0, 70], sizes = [32, 272], strides = [1, 1]} : vector<32x374xbf16> to vector<32x272xbf16>
    %34 = tpu.concatenate %25, %26, %27, %28, %29, %30, %31, %32, %33 in 0 : vector<32x272xbf16>, vector<32x272xbf16>, vector<32x272xbf16>, vector<32x272xbf16>, vector<32x272xbf16>, vector<32x272xbf16>, vector<32x272xbf16>, vector<32x272xbf16>, vector<32x272xbf16> -> vector<288x272xbf16>
    %c1 = arith.constant 1 : index
    %c0_9 = arith.constant 0 : index
    %c0_10 = arith.constant 0 : index
    %35 = vector.load %arg3[%c1, %c0_9, %c0_10] : memref<3x1x288xbf16, #tpu.memory_space<vmem>>, vector<1x1x288xbf16>
    %36 = vector.shape_cast %35 : vector<1x1x288xbf16> to vector<1x288xbf16>
    %cst_11 = arith.constant dense<0.000000e+00> : vector<1x272xf32>
    %37 = tpu.matmul %36, %34, %cst_11 {dimension_numbers = #tpu.dot_dimension_numbers<[1], [0], [0], [1], [0, 0, 1, 1], [], []>} : vector<1x288xbf16>, vector<288x272xbf16>, vector<1x272xf32> -> vector<1x272xf32>
    %38 = arith.addf %19, %37 : vector<1x272xf32>
    %c2_i32 = arith.constant 2 : i32
    %39 = arith.addi %arg1, %c2_i32 : i32
    %c0_12 = arith.constant 0 : index
    %40 = arith.index_cast %39 : i32 to index
    %c0_13 = arith.constant 0 : index
    %c0_14 = arith.constant 0 : index
    %41 = vector.load %arg2[%c0_12, %40, %c0_13, %c0_14] : memref<1x10x32x374xbf16, #tpu.memory_space<vmem>>, vector<1x1x32x374xbf16>
    %42 = vector.shape_cast %41 : vector<1x1x32x374xbf16> to vector<1x32x374xbf16>
    %43 = vector.shape_cast %42 : vector<1x32x374xbf16> to vector<32x374xbf16>
    %44 = vector.extract_strided_slice %43 {offsets = [0, 0], sizes = [32, 272], strides = [1, 1]} : vector<32x374xbf16> to vector<32x272xbf16>
    %45 = vector.extract_strided_slice %43 {offsets = [0, 1], sizes = [32, 272], strides = [1, 1]} : vector<32x374xbf16> to vector<32x272xbf16>
    %46 = vector.extract_strided_slice %43 {offsets = [0, 2], sizes = [32, 272], strides = [1, 1]} : vector<32x374xbf16> to vector<32x272xbf16>
    %47 = vector.extract_strided_slice %43 {offsets = [0, 34], sizes = [32, 272], strides = [1, 1]} : vector<32x374xbf16> to vector<32x272xbf16>
    %48 = vector.extract_strided_slice %43 {offsets = [0, 35], sizes = [32, 272], strides = [1, 1]} : vector<32x374xbf16> to vector<32x272xbf16>
    %49 = vector.extract_strided_slice %43 {offsets = [0, 36], sizes = [32, 272], strides = [1, 1]} : vector<32x374xbf16> to vector<32x272xbf16>
    %50 = vector.extract_strided_slice %43 {offsets = [0, 68], sizes = [32, 272], strides = [1, 1]} : vector<32x374xbf16> to vector<32x272xbf16>
    %51 = vector.extract_strided_slice %43 {offsets = [0, 69], sizes = [32, 272], strides = [1, 1]} : vector<32x374xbf16> to vector<32x272xbf16>
    %52 = vector.extract_strided_slice %43 {offsets = [0, 70], sizes = [32, 272], strides = [1, 1]} : vector<32x374xbf16> to vector<32x272xbf16>
    %53 = tpu.concatenate %44, %45, %46, %47, %48, %49, %50, %51, %52 in 0 : vector<32x272xbf16>, vector<32x272xbf16>, vector<32x272xbf16>, vector<32x272xbf16>, vector<32x272xbf16>, vector<32x272xbf16>, vector<32x272xbf16>, vector<32x272xbf16>, vector<32x272xbf16> -> vector<288x272xbf16>
    %c2 = arith.constant 2 : index
    %c0_15 = arith.constant 0 : index
    %c0_16 = arith.constant 0 : index
    %54 = vector.load %arg3[%c2, %c0_15, %c0_16] : memref<3x1x288xbf16, #tpu.memory_space<vmem>>, vector<1x1x288xbf16>
    %55 = vector.shape_cast %54 : vector<1x1x288xbf16> to vector<1x288xbf16>
    %cst_17 = arith.constant dense<0.000000e+00> : vector<1x272xf32>
    %56 = tpu.matmul %55, %53, %cst_17 {dimension_numbers = #tpu.dot_dimension_numbers<[1], [0], [0], [1], [0, 0, 1, 1], [], []>} : vector<1x288xbf16>, vector<288x272xbf16>, vector<1x272xf32> -> vector<1x272xf32>
    %57 = arith.addf %38, %56 : vector<1x272xf32>
    %c0_18 = arith.constant 0 : index
    %c0_19 = arith.constant 0 : index
    %58 = vector.load %arg4[%c0_18, %c0_19] : memref<1x1xf32, #tpu.memory_space<vmem>>, vector<1x1xf32>
    %59 = vector.broadcast %58 : vector<1x1xf32> to vector<1x272xf32>
    %60 = arith.addf %57, %59 : vector<1x272xf32>
    %61 = vector.shape_cast %60 : vector<1x272xf32> to vector<1x1x1x272xf32>
    %62 = arith.truncf %61 : vector<1x1x1x272xf32> to vector<1x1x1x272xbf16>
    %c0_20 = arith.constant 0 : index
    %c0_21 = arith.constant 0 : index
    %c0_22 = arith.constant 0 : index
    %c0_23 = arith.constant 0 : index
    %63 = vector.load %arg5[%c0_20, %c0_21, %c0_22, %c0_23] : memref<1x1x1x272xbf16, #tpu.memory_space<vmem>>, vector<1x1x1x272xbf16>
    tpu.vector_store %arg5[%c0_20, %c0_21, %c0_22, %c0_23], %62 {strides = array<i32>} : memref<1x1x1x272xbf16, #tpu.memory_space<vmem>>, vector<1x1x1x272xbf16>,
    return
  }
  func.func @transform_0(%arg0: i32, %arg1: i32) -> (i32, i32, i32, i32) {
    %c0_i32 = arith.constant 0 : i32
    %c0_i32_0 = arith.constant 0 : i32
    %c0_i32_1 = arith.constant 0 : i32
    %c0_i32_2 = arith.constant 0 : i32
    return %arg0, %c0_i32, %c0_i32_0, %c0_i32_1 : i32, i32, i32, i32
  }
  func.func @transform_1(%arg0: i32, %arg1: i32) -> (i32, i32, i32) {
    %c0_i32 = arith.constant 0 : i32
    %c0_i32_0 = arith.constant 0 : i32
    %c0_i32_1 = arith.constant 0 : i32
    %c0_i32_2 = arith.constant 0 : i32
    return %c0_i32, %c0_i32_0, %c0_i32_1 : i32, i32, i32
  }
  func.func @transform_2(%arg0: i32, %arg1: i32) -> (i32, i32) {
    %c0_i32 = arith.constant 0 : i32
    %c0_i32_0 = arith.constant 0 : i32
    %c0_i32_1 = arith.constant 0 : i32
    return %c0_i32, %c0_i32_0 : i32, i32
  }
  func.func @transform_3(%arg0: i32, %arg1: i32) -> (i32, i32, i32, i32) {
    %c0_i32 = arith.constant 0 : i32
    %c0_i32_0 = arith.constant 0 : i32
    %c0_i32_1 = arith.constant 0 : i32
    return %arg0, %arg1, %c0_i32, %c0_i32_0 : i32, i32, i32, i32
  }
}

</mosaic_0001>

<bundles_post_ra>
// kernel: basic_matcher_forward.8
= control target key start
LH: loop header
LB: loop body
LE: loop exit
PB: predicated region body
PF: predicated region fallthrough
CT: control target
= control target key end

     0   :  { %s1362_s12 = smov 0   ;;  %s1364_s13 = smov 0   ;;  %s1770_s0 = inlined_call_operand.vmem [shape: bf16[2,10,16,374], index: 0, kind: input, shape index: {}]   ;;  %s1771_s1 = inlined_call_operand.vmem [shape: bf16[3,32,144], index: 1, kind: input, shape index: {}]   ;;  %s1772_s2 = inlined_call_operand.vmem [shape: f32[32,1], index: 2, kind: input, shape index: {}]   ;;  %s1773_s3 = inlined_call_operand.vmem [shape: bf16[2,8,32,272], index: 3, kind: output, shape index: {}]  }
   0x1   :  { %s1366_s14 = smov 0   ;;  %s1368_s15 = smov 0  }
   0x2   :  { %s1370_s16 = smov 0  }
   0x3 LB: > { %s22_s17 = sadd.s32 1, %s1323_s14  ;;  %s25_s18 = sadd.s32 1, %s1327_s15  ;;  %s1331_s16 = sphi %s1370_s16, %s13_s16   ;;  %s1327_s15 = sphi %s1368_s15, %s1777_s15   ;;  %s1323_s14 = sphi %s1366_s14, %s1776_s14   ;;  %s1319_s13 = sphi %s1364_s13, %s1775_s13   ;;  %s1315_s12 = sphi %s1362_s12, %s1774_s12  }
   0x4   : > { %p23_p0 = scmp.ge.s32.totalorder %s22_s17, 8  ;;  %p1137_p1 = scmp.ge.s32.totalorder %s1331_s16, 1 }
   0x5   : > { %p151_p2 = scmp.lt.s32.totalorder %s1331_s16, 17 }
   0x6   : > { %s1779_s17 = smov (%p23_p0, %s22_s17), 0  ;;  %s1781_s18 = smov (!%p23_p0, %s25_s18), %s1327_s15 }
   0x7   : > { %p152_p3 = pnand %p1137_p1, %p151_p2  ;;  %p27_p4 = scmp.ge.s32.totalorder %s1781_s18, 2 }
   0x8   : > { %p179_p5 = scmp.lt.s32.totalorder (!%p152_p3), %s1319_s13, 1  ;;  %s1200_s19 = smul.u32 (!%p152_p3), 24, %s1315_s12 }
   0x9   : > { %s1783_s18 = smov (%p27_p4, %s1781_s18), 0  ;;  %155 = sbr.rel (%p152_p3) target bundleno = 499 (0x1f3), region = 32 }
   0xa   : > { %s1334_s25 = smov (!%p152_p3), 59   ;;  %s1335_s26 = smov (!%p152_p3), 60  }
   0xb   : > { %s1336_s27 = smov (!%p152_p3), 92   ;;  %s1337_s28 = smov (!%p152_p3), 93  }
   0xc   : > { %s1338_s29 = smov (!%p152_p3), 94   ;;  %s1339_s30 = smov (!%p152_p3), 126  }
   0xd   : > { %s1340_s4 = smov (!%p152_p3), 127   ;;  %s1341_s7 = smov (!%p152_p3), 58  }
   0xe   : > { %v1333_v0 = vmov 0   ;;  %s1785_s13 = smov (!%p179_p5, %s1319_s13), 1  ;;  %v1277_v4 = vld [vmem:[%s1771_s1 + $0x24] ss:$8 sps:$4 sm:$0xff]   ;;  %vm452_vm0 = vcmask 130048   ;;  %vm295_vm1 = vcmask 482304  }
   0xf   : > { %512 = vmatprep.subr.bf16.mxu1 %v1333_v0  ;;  %1261 = vset.pattern.permute.xlu0 %v1333_v0  ;;  %s1209_s20 = smul.u32 240, %s1785_s13  ;;  %vm283_vm2 = vcmask 490496   ;;  %vm271_vm3 = vcmask 752640   ;;  %vm259_vm4 = vcmask 760832   ;;  %vm247_vm5 = vcmask 769024   ;;  %v942_v37 = vld [vmem:[%s1772_s2] sm:$0xff] }
  0x10   : > { %1262 = vset.pattern.permute.xlu1 %v1333_v0  ;;  %1161 = vmatprep.mubr.msk.bf16.mxu1 %vm452_vm0, %v1277_v4  ;;  %v943_v38 = vld [vmem:[%s1772_s2 + $0x8] sm:$0xff]  ;;  %vm235_vm6 = vcmask 1031168   ;;  %v944_v40 = vld [vmem:[%s1772_s2 + $0x10] sm:$0xff]  ;;  %v945_v43 = vld [vmem:[%s1772_s2 + $0x18] sm:$0xff]  ;;  %vm223_vm7 = vcmask 1039360   ;;  %vm307_vm8 = vcmask 474112  }
  0x11   : > { %s183_s23 = scalar_lea.vmem %s1770_s0, %s1209_s20  ;;  %1159 = vmatprep.mubr.msk.bf16.mxu0 %vm452_vm0, %v1277_v4  ;;  %v1275_v54 = vld [vmem:[%s1771_s1 + $0x20] ss:$8 sps:$4 sm:$0xff]   ;;  %v1278_v56 = vld [vmem:[%s1771_s1 + $0x34] ss:$8 sps:$4 sm:$0xff]   ;;  %v1280_v63 = vld [vmem:[%s1771_s1 + $0x30] ss:$8 sps:$4 sm:$0xff]  }
  0x12   : > { %s1404_s24 = scalar_lea.vmem %s183_s23, %s1200_s19  ;;  %p186_p6 = scmp.lt.s32.totalorder %s1315_s12, 7  ;;  %vm1031_vm9 = vcmask 125952  }
  0x13   : > { %v1407_v1 = vld [vmem:[%s1404_s24 + $0x1c] ss:$12 sps:$4 sm:$0xff]   ;;  %v1410_v2 = vld [vmem:[%s1404_s24 + $0x18] ss:$12 sps:$4 sm:$0xff]   ;;  %v1415_v3 = vld [vmem:[%s1404_s24 + $0x20] ss:$12 sps:$4 sm:$0xff]  }
  0x14   : > { %409 = vrot.lane.b32.xlu0 %v1407_v1, %s1334_s25  ;;  %407 = vrot.lane.b32.xlu1 %v1410_v2, %s1334_s25  ;;  %v1467_v5 = vld [vmem:[%s1404_s24 + $0x4] ss:$12 sps:$4 sm:$0xff]   ;;  %v1472_v6 = vld [vmem:[%s1404_s24 + $0x8] ss:$12 sps:$4 sm:$0xff]   ;;  %s1787_s12 = smov (!%p186_p6, %s1315_s12), 7 }
  0x15   : > { %v1477_v7 = vld [vmem:[%s1404_s24] ss:$12 sps:$4 sm:$0xff]   ;;  %v1529_v9 = vld [vmem:[%s1404_s24 + $0x38] ss:$12 sps:$4 sm:$0xff]   ;;  %v1534_v10 = vld [vmem:[%s1404_s24 + $0x30] ss:$12 sps:$4 sm:$0xff]  }
  0x16   : > { %v1524_v8 = vld [vmem:[%s1404_s24 + $0x34] ss:$12 sps:$4 sm:$0xff]  }
  0x18   : > { %411 = vrot.lane.b32.xlu0 %v1415_v3, %s1334_s25  ;;  %398 = vrot.lane.b32.xlu1 %v1407_v1, %s1335_s26 }
  0x1c   : > { %400 = vrot.lane.b32.xlu0 %v1415_v3, %s1335_s26  ;;  %396 = vrot.lane.b32.xlu1 %v1410_v2, %s1335_s26 }
  0x20   : > { %387 = vrot.lane.b32.xlu0 %v1407_v1, %s1336_s27  ;;  %389 = vrot.lane.b32.xlu1 %v1415_v3, %s1336_s27 }
  0x24   : > { %385 = vrot.lane.b32.xlu0 %v1410_v2, %s1336_s27  ;;  %376 = vrot.lane.b32.xlu1 %v1407_v1, %s1337_s28 }
  0x28   : > { %378 = vrot.lane.b32.xlu0 %v1415_v3, %s1337_s28  ;;  %374 = vrot.lane.b32.xlu1 %v1410_v2, %s1337_s28 }
  0x2c   : > { %365 = vrot.lane.b32.xlu0 %v1407_v1, %s1338_s29  ;;  %367 = vrot.lane.b32.xlu1 %v1415_v3, %s1338_s29 }
  0x30   : > { %363 = vrot.lane.b32.xlu0 %v1410_v2, %s1338_s29  ;;  %354 = vrot.lane.b32.xlu1 %v1407_v1, %s1339_s30 }
  0x34   : > { %356 = vrot.lane.b32.xlu0 %v1415_v3, %s1339_s30  ;;  %352 = vrot.lane.b32.xlu1 %v1410_v2, %s1339_s30 }
  0x38   : > { %343 = vrot.lane.b32.xlu0 %v1407_v1, %s1340_s4  ;;  %345 = vrot.lane.b32.xlu1 %v1415_v3, %s1340_s4 }
  0x3c   : > { %341 = vrot.lane.b32.xlu0 %v1410_v2, %s1340_s4  ;;  %420 = vrot.lane.b32.xlu1 %v1407_v1, %s1341_s7 }
  0x40   : > { %422 = vrot.lane.b32.xlu0 %v1415_v3, %s1341_s7  ;;  %418 = vrot.lane.b32.xlu1 %v1410_v2, %s1341_s7 }
  0x44   : > { %291 = vrot.lane.b32.xlu0 %v1467_v5, %s1334_s25  ;;  %293 = vrot.lane.b32.xlu1 %v1472_v6, %s1334_s25 }
  0x48   : > { %289 = vrot.lane.b32.xlu0 %v1477_v7, %s1334_s25  ;;  %279 = vrot.lane.b32.xlu1 %v1467_v5, %s1335_s26 }
  0x4c   : > { %281 = vrot.lane.b32.xlu0 %v1472_v6, %s1335_s26  ;;  %277 = vrot.lane.b32.xlu1 %v1477_v7, %s1335_s26 }
  0x50   : > { %267 = vrot.lane.b32.xlu0 %v1467_v5, %s1336_s27  ;;  %269 = vrot.lane.b32.xlu1 %v1472_v6, %s1336_s27 }
  0x54   : > { %265 = vrot.lane.b32.xlu0 %v1477_v7, %s1336_s27  ;;  %255 = vrot.lane.b32.xlu1 %v1467_v5, %s1337_s28 }
  0x58   : > { %257 = vrot.lane.b32.xlu0 %v1472_v6, %s1337_s28  ;;  %253 = vrot.lane.b32.xlu1 %v1477_v7, %s1337_s28 }
  0x5c   : > { %243 = vrot.lane.b32.xlu0 %v1467_v5, %s1338_s29  ;;  %245 = vrot.lane.b32.xlu1 %v1472_v6, %s1338_s29 }
  0x60   : > { %241 = vrot.lane.b32.xlu0 %v1477_v7, %s1338_s29  ;;  %231 = vrot.lane.b32.xlu1 %v1467_v5, %s1339_s30 }
  0x64   : > { %233 = vrot.lane.b32.xlu0 %v1472_v6, %s1339_s30  ;;  %229 = vrot.lane.b32.xlu1 %v1477_v7, %s1339_s30 }
  0x68   : > { %219 = vrot.lane.b32.xlu0 %v1467_v5, %s1340_s4  ;;  %221 = vrot.lane.b32.xlu1 %v1472_v6, %s1340_s4 }
  0x6c   : > { %217 = vrot.lane.b32.xlu0 %v1477_v7, %s1340_s4  ;;  %303 = vrot.lane.b32.xlu1 %v1467_v5, %s1341_s7 }
  0x70   : > { %305 = vrot.lane.b32.xlu0 %v1472_v6, %s1341_s7  ;;  %301 = vrot.lane.b32.xlu1 %v1477_v7, %s1341_s7 }
  0x74   : > { %779 = vrot.lane.b32.xlu0 %v1524_v8, %s1334_s25  ;;  %781 = vrot.lane.b32.xlu1 %v1529_v9, %s1334_s25 }
  0x78   : > { %777 = vrot.lane.b32.xlu0 %v1534_v10, %s1334_s25  ;;  %768 = vrot.lane.b32.xlu1 %v1524_v8, %s1335_s26  ;;  %s1211_s25 = smul.u32 96, %s1785_s13 }
  0x7c   : > { %770 = vrot.lane.b32.xlu0 %v1529_v9, %s1335_s26  ;;  %766 = vrot.lane.b32.xlu1 %v1534_v10, %s1335_s26  ;;  %s1210_s26 = smul.u32 12, %s1787_s12 }
  0x80   : > { %757 = vrot.lane.b32.xlu0 %v1524_v8, %s1336_s27  ;;  %759 = vrot.lane.b32.xlu1 %v1529_v9, %s1336_s27 }
  0x84   : > { %755 = vrot.lane.b32.xlu0 %v1534_v10, %s1336_s27  ;;  %746 = vrot.lane.b32.xlu1 %v1524_v8, %s1337_s28  ;;  %s190_s27 = sadd.s32 %s1211_s25, %s1210_s26 }
  0x86   : > { %v410_v11 = vpop.permute.xlu0 %409  ;;  %v408_v12 = vpop.permute.xlu1 %407 }
  0x87   : > { %v413_v16 = vsel %vm295_vm1, %v408_v12, %v410_v11 }
  0x88   : > { %748 = vrot.lane.b32.xlu0 %v1529_v9, %s1337_s28  ;;  %744 = vrot.lane.b32.xlu1 %v1534_v10, %s1337_s28  ;;  %s1139_s28 = sshll.u32 %s190_s27, 2 }
  0x8a   : > { %v412_v13 = vpop.permute.xlu0 %411  ;;  %v399_v14 = vpop.permute.xlu1 %398 }
  0x8b   : > { %513 = vmatpush1.bf16.msra.mxu1 %v412_v13  ;;  %v414_v15 = vsel %vm295_vm1, %v410_v11, %v412_v13 }
  0x8c   : > { %459 = vmatprep.subr.bf16.mxu0 %v414_v15  ;;  %735 = vrot.lane.b32.xlu0 %v1524_v8, %s1338_s29 }
  0x8d   : > { %737 = vrot.lane.b32.xlu1 %v1529_v9, %s1338_s29  ;;  %460 = vmatpush1.bf16.msra.mxu0 %v413_v16 }
  0x8e   : > { %514 = vmatprep.subr.bf16.mxu1 %v1333_v0  ;;  %v401_v17 = vpop.permute.xlu0 %400  ;;  %v397_v18 = vpop.permute.xlu1 %396 }
  0x8f   : > { %515 = vmatpush1.bf16.msra.mxu1 %v401_v17  ;;  %v403_v19 = vsel %vm283_vm2, %v399_v14, %v401_v17  ;;  %v402_v20 = vsel %vm283_vm2, %v397_v18, %v399_v14 }
  0x90   : > { %461 = vmatprep.subr.bf16.mxu0 %v403_v19  ;;  %733 = vrot.lane.b32.xlu0 %v1534_v10, %s1338_s29  ;;  %s1736_s29 = scalar_lea.vmem %s1773_s3, %s1139_s28 }
  0x91   : > { %724 = vrot.lane.b32.xlu1 %v1524_v8, %s1339_s30  ;;  %462 = vmatpush1.bf16.msra.mxu0 %v402_v20 }
  0x92   : > { %v388_v21 = vpop.permute.xlu0 %387  ;;  %516 = vmatprep.subr.bf16.mxu1 %v1333_v0  ;;  %v390_v22 = vpop.permute.xlu1 %389 }
  0x93   : > { %v392_v23 = vsel %vm271_vm3, %v388_v21, %v390_v22  ;;  %517 = vmatpush1.bf16.msra.mxu1 %v390_v22 }
  0x94   : > { %726 = vrot.lane.b32.xlu0 %v1529_v9, %s1339_s30  ;;  %463 = vmatprep.subr.bf16.mxu0 %v392_v23 }
  0x95   : > { %722 = vrot.lane.b32.xlu1 %v1534_v10, %s1339_s30  ;;  %518 = vmatprep.subr.bf16.mxu1 %v1333_v0 }
  0x96   : > { %v386_v24 = vpop.permute.xlu0 %385  ;;  %v377_v25 = vpop.permute.xlu1 %376 }
  0x97   : > { %v391_v26 = vsel %vm271_vm3, %v386_v24, %v388_v21 }
  0x98   : > { %464 = vmatpush1.bf16.msra.mxu0 %v391_v26  ;;  %713 = vrot.lane.b32.xlu0 %v1524_v8, %s1340_s4 }
  0x99   : > { %715 = vrot.lane.b32.xlu1 %v1529_v9, %s1340_s4 }
  0x9a   : > { %v379_v27 = vpop.permute.xlu0 %378  ;;  %v375_v28 = vpop.permute.xlu1 %374 }
  0x9b   : > { %519 = vmatpush1.bf16.msra.mxu1 %v379_v27  ;;  %v381_v29 = vsel %vm259_vm4, %v377_v25, %v379_v27  ;;  %v380_v30 = vsel %vm259_vm4, %v375_v28, %v377_v25 }
  0x9c   : > { %465 = vmatprep.subr.bf16.mxu0 %v381_v29  ;;  %711 = vrot.lane.b32.xlu0 %v1534_v10, %s1340_s4 }
  0x9d   : > { %790 = vrot.lane.b32.xlu1 %v1524_v8, %s1341_s7  ;;  %466 = vmatpush1.bf16.msra.mxu0 %v380_v30 }
  0x9e   : > { %v366_v31 = vpop.permute.xlu0 %365  ;;  %520 = vmatprep.subr.bf16.mxu1 %v1333_v0  ;;  %v368_v32 = vpop.permute.xlu1 %367 }
  0x9f   : > { %v370_v33 = vsel %vm247_vm5, %v366_v31, %v368_v32  ;;  %521 = vmatpush1.bf16.msra.mxu1 %v368_v32 }
  0xa0   : > { %792 = vrot.lane.b32.xlu0 %v1529_v9, %s1341_s7  ;;  %467 = vmatprep.subr.bf16.mxu0 %v370_v33 }
  0xa1   : > { %788 = vrot.lane.b32.xlu1 %v1534_v10, %s1341_s7  ;;  %522 = vmatprep.subr.bf16.mxu1 %v1333_v0 }
  0xa2   : > { %v364_v34 = vpop.permute.xlu0 %363  ;;  %v355_v35 = vpop.permute.xlu1 %354 }
  0xa3   : > { %v369_v36 = vsel %vm247_vm5, %v364_v34, %v366_v31 }
  0xa4   : > { %468 = vmatpush1.bf16.msra.mxu0 %v369_v36  ;;  %948 = vperm.xlu0 %1261, %v942_v37  }
  0xa5   : > { %953 = vperm.xlu1 %1262, %v943_v38  }
  0xa6   : > { %v357_v39 = vpop.permute.xlu0 %356  ;;  %v353_v41 = vpop.permute.xlu1 %352 }
  0xa7   : > { %523 = vmatpush1.bf16.msra.mxu1 %v357_v39  ;;  %v359_v42 = vsel %vm235_vm6, %v355_v35, %v357_v39  ;;  %v358_v44 = vsel %vm235_vm6, %v353_v41, %v355_v35  ;;  %v1281_v41 = vld [vmem:[%s1771_s1] ss:$8 sps:$4 sm:$0xff]  }
  0xa8   : > { %469 = vmatprep.subr.bf16.mxu0 %v359_v42  ;;  %524 = vmatprep.subr.bf16.mxu1 %v1333_v0 }
  0xa9   : > { %470 = vmatpush1.bf16.msra.mxu0 %v358_v44  ;;  %958 = vperm.xlu1 %1262, %v944_v40  }
  0xaa   : > { %v344_v45 = vpop.permute.xlu0 %343  ;;  %963 = vperm.xlu0 %1261, %v945_v43   ;;  %v346_v46 = vpop.permute.xlu1 %345 }
  0xab   : > { %525 = vmatpush1.bf16.msra.mxu1 %v346_v46  ;;  %v348_v47 = vsel %vm223_vm7, %v344_v45, %v346_v46 }
  0xac   : > { %471 = vmatprep.subr.bf16.mxu0 %v348_v47  ;;  %526 = vmatprep.subr.bf16.mxu1 %v1333_v0  ;;  %v1286_v47 = vld [vmem:[%s1771_s1 + $0x10] ss:$8 sps:$4 sm:$0xff]  }
  0xae   : > { %v342_v48 = vpop.permute.xlu0 %341  ;;  %v421_v49 = vpop.permute.xlu1 %420 }
  0xaf   : > { %v347_v50 = vsel %vm223_vm7, %v342_v48, %v344_v45  ;;  %527 = vmatpush1.bf16.msra.mxu1 %v1415_v3 }
  0xb0   : > { %472 = vmatpush1.bf16.msra.mxu0 %v347_v50  ;;  %542 = vmatprep.subr.bf16.mxu1 %v1333_v0 }
  0xb1   : > { %473 = vmatprep.subr.bf16.mxu0 %v1407_v1 }
  0xb2   : > { %v423_v51 = vpop.permute.xlu0 %422  ;;  %v419_v52 = vpop.permute.xlu1 %418 }
  0xb3   : > { %v425_v53 = vsel %vm307_vm8, %v421_v49, %v423_v51  ;;  %543 = vmatpush2.bf16.msra.mxu1 %v423_v51  ;;  %v424_v58 = vsel %vm307_vm8, %v419_v52, %v421_v49  ;;  %v1289_v49 = vld [vmem:[%s1771_s1 + $0x44] ss:$8 sps:$4 sm:$0xff]  }
  0xb4   : > { %474 = vmatpush1.bf16.msra.mxu0 %v1410_v2  ;;  %638 = vmatprep.subr.bf16.mxu1 %v1333_v0  ;;  %v1283_v2 = vld [vmem:[%s1771_s1 + $0x4] ss:$8 sps:$4 sm:$0xff]  }
  0xb5   : > { %489 = vmatprep.subr.bf16.mxu0 %v425_v53 }
  0xb6   : > { %v292_v55 = vpop.permute.xlu0 %291  ;;  %v294_v57 = vpop.permute.xlu1 %293  ;;  %545 = vmatmul.mubr.bf16.vlgmr.msra.gmra.mxu1 %v1275_v54 }
  0xb7   : > { %v297_v59 = vsel %vm295_vm1, %v292_v55, %v294_v57  ;;  %639 = vmatpush1.bf16.msra.mxu1 %v294_v57  ;;  %1162 = vmatprep.mubr.msk.bf16.mxu1 %vm452_vm0, %v1278_v56 }
  0xb8   : > { %490 = vmatpush2.bf16.msra.mxu0 %v424_v58  ;;  %640 = vmatprep.subr.bf16.mxu1 %v1333_v0 }
  0xb9   : > { %585 = vmatprep.subr.bf16.mxu0 %v297_v59 }
  0xba   : > { %v290_v60 = vpop.permute.xlu0 %289  ;;  %v280_v61 = vpop.permute.xlu1 %279 }
  0xbb   : > { %v296_v62 = vsel %vm295_vm1, %v290_v60, %v292_v55  ;;  %492 = vmatmul.mubr.bf16.vlgmr.msra.gmra.mxu0 %v1275_v54 }
  0xbc   : > { %586 = vmatpush1.bf16.msra.mxu0 %v296_v62  ;;  %1160 = vmatprep.mubr.msk.bf16.mxu0 %vm452_vm0, %v1278_v56 }
  0xbe   : > { %v282_v1 = vpop.permute.xlu0 %281  ;;  %v278_v3 = vpop.permute.xlu1 %277  ;;  %553 = vmatmul.mubr.bf16.gmra.mxu1 %v1280_v63 }
  0xbf   : > { %641 = vmatpush1.bf16.msra.mxu1 %v282_v1  ;;  %v285_v4 = vsel %vm283_vm2, %v280_v61, %v282_v1  ;;  %v284_v11 = vsel %vm283_vm2, %v278_v3, %v280_v61  ;;  %1169 = vmatprep.mubr.msk.bf16.mxu1 %vm452_vm0, %v1283_v2 }
  0xc0   : > { %587 = vmatprep.subr.bf16.mxu0 %v285_v4  ;;  %642 = vmatprep.subr.bf16.mxu1 %v1333_v0 }
  0xc1   : > { %588 = vmatpush1.bf16.msra.mxu0 %v284_v11 }
  0xc2   : > { %v268_v12 = vpop.permute.xlu0 %267  ;;  %v270_v13 = vpop.permute.xlu1 %269 }
  0xc3   : > { %502 = vmatmul.mubr.bf16.gmra.mxu0 %v1280_v63  ;;  %v273_v14 = vsel %vm271_vm3, %v268_v12, %v270_v13  ;;  %643 = vmatpush1.bf16.msra.mxu1 %v270_v13 }
  0xc4   : > { %1167 = vmatprep.mubr.msk.bf16.mxu0 %vm452_vm0, %v1283_v2  ;;  %589 = vmatprep.subr.bf16.mxu0 %v273_v14 }
  0xc5   : > { %644 = vmatprep.subr.bf16.mxu1 %v1333_v0 }
  0xc6   : > { %v266_v15 = vpop.permute.xlu0 %265  ;;  %v256_v16 = vpop.permute.xlu1 %255 }
  0xc7   : > { %v272_v17 = vsel %vm271_vm3, %v266_v15, %v268_v12 }
  0xc8   : > { %590 = vmatpush1.bf16.msra.mxu0 %v272_v17 }
  0xca   : > { %v258_v18 = vpop.permute.xlu0 %257  ;;  %v254_v19 = vpop.permute.xlu1 %253 }
  0xcb   : > { %645 = vmatpush1.bf16.msra.mxu1 %v258_v18  ;;  %v261_v20 = vsel %vm259_vm4, %v256_v16, %v258_v18  ;;  %v260_v21 = vsel %vm259_vm4, %v254_v19, %v256_v16 }
  0xcc   : > { %591 = vmatprep.subr.bf16.mxu0 %v261_v20  ;;  %646 = vmatprep.subr.bf16.mxu1 %v1333_v0 }
  0xcd   : > { %592 = vmatpush1.bf16.msra.mxu0 %v260_v21 }
  0xce   : > { %v244_v22 = vpop.permute.xlu0 %243  ;;  %v246_v23 = vpop.permute.xlu1 %245 }
  0xcf   : > { %v249_v24 = vsel %vm247_vm5, %v244_v22, %v246_v23  ;;  %647 = vmatpush1.bf16.msra.mxu1 %v246_v23 }
  0xd0   : > { %593 = vmatprep.subr.bf16.mxu0 %v249_v24  ;;  %648 = vmatprep.subr.bf16.mxu1 %v1333_v0  ;;  %v1287_v24 = vld [vmem:[%s1771_s1 + $0x40] ss:$8 sps:$4 sm:$0xff]  }
  0xd2   : > { %v242_v25 = vpop.permute.xlu0 %241  ;;  %v232_v26 = vpop.permute.xlu1 %231 }
  0xd3   : > { %v248_v27 = vsel %vm247_vm5, %v242_v25, %v244_v22 }
  0xd4   : > { %594 = vmatpush1.bf16.msra.mxu0 %v248_v27 }
  0xd6   : > { %v234_v28 = vpop.permute.xlu0 %233  ;;  %v230_v29 = vpop.permute.xlu1 %229 }
  0xd7   : > { %649 = vmatpush1.bf16.msra.mxu1 %v234_v28  ;;  %v237_v30 = vsel %vm235_vm6, %v232_v26, %v234_v28  ;;  %v236_v31 = vsel %vm235_vm6, %v230_v29, %v232_v26 }
  0xd8   : > { %595 = vmatprep.subr.bf16.mxu0 %v237_v30  ;;  %650 = vmatprep.subr.bf16.mxu1 %v1333_v0 }
  0xd9   : > { %596 = vmatpush1.bf16.msra.mxu0 %v236_v31 }
  0xda   : > { %v220_v32 = vpop.permute.xlu0 %219  ;;  %v222_v33 = vpop.permute.xlu1 %221 }
  0xdb   : > { %651 = vmatpush1.bf16.msra.mxu1 %v222_v33  ;;  %v225_v34 = vsel %vm223_vm7, %v220_v32, %v222_v33 }
  0xdc   : > { %597 = vmatprep.subr.bf16.mxu0 %v225_v34  ;;  %652 = vmatprep.subr.bf16.mxu1 %v1333_v0 }
  0xde   : > { %v218_v35 = vpop.permute.xlu0 %217  ;;  %v304_v36 = vpop.permute.xlu1 %303 }
  0xdf   : > { %v224_v37 = vsel %vm223_vm7, %v218_v35, %v220_v32  ;;  %653 = vmatpush1.bf16.msra.mxu1 %v1472_v6  ;;  %v1284_v6 = vld [vmem:[%s1771_s1 + $0x14] ss:$8 sps:$4 sm:$0xff]  }
  0xe0   : > { %598 = vmatpush1.bf16.msra.mxu0 %v224_v37  ;;  %668 = vmatprep.subr.bf16.mxu1 %v1333_v0 }
  0xe1   : > { %599 = vmatprep.subr.bf16.mxu0 %v1467_v5 }
  0xe2   : > { %v306_v38 = vpop.permute.xlu0 %305  ;;  %v302_v39 = vpop.permute.xlu1 %301 }
  0xe3   : > { %v309_v40 = vsel %vm307_vm8, %v304_v36, %v306_v38  ;;  %669 = vmatpush2.bf16.msra.mxu1 %v306_v38  ;;  %v308_v5 = vsel %vm307_vm8, %v302_v39, %v304_v36 }
  0xe4   : > { %600 = vmatpush1.bf16.msra.mxu0 %v1477_v7  ;;  %881 = vmatprep.subr.bf16.mxu1 %v1333_v0 }
  0xe5   : > { %615 = vmatprep.subr.bf16.mxu0 %v309_v40 }
  0xe6   : > { %v780_v42 = vpop.permute.xlu0 %779  ;;  %v782_v43 = vpop.permute.xlu1 %781  ;;  %671 = vmatmul.mubr.bf16.vlgmr.msra.gmra.mxu1 %v1281_v41 }
  0xe7   : > { %v784_v44 = vsel %vm295_vm1, %v780_v42, %v782_v43  ;;  %882 = vmatpush1.bf16.msra.mxu1 %v782_v43  ;;  %1170 = vmatprep.mubr.msk.bf16.mxu1 %vm452_vm0, %v1284_v6 }
  0xe8   : > { %616 = vmatpush2.bf16.msra.mxu0 %v308_v5  ;;  %883 = vmatprep.subr.bf16.mxu1 %v1333_v0 }
  0xe9   : > { %828 = vmatprep.subr.bf16.mxu0 %v784_v44 }
  0xea   : > { %v778_v7 = vpop.permute.xlu0 %777  ;;  %v769_v45 = vpop.permute.xlu1 %768 }
  0xeb   : > { %v783_v46 = vsel %vm295_vm1, %v778_v7, %v780_v42  ;;  %618 = vmatmul.mubr.bf16.vlgmr.msra.gmra.mxu0 %v1281_v41 }
  0xec   : > { %829 = vmatpush1.bf16.msra.mxu0 %v783_v46  ;;  %1168 = vmatprep.mubr.msk.bf16.mxu0 %vm452_vm0, %v1284_v6 }
  0xee   : > { %v771_v48 = vpop.permute.xlu0 %770  ;;  %v767_v50 = vpop.permute.xlu1 %766  ;;  %679 = vmatmul.mubr.bf16.gmra.mxu1 %v1286_v47 }
  0xef   : > { %v773_v51 = vsel %vm283_vm2, %v769_v45, %v771_v48  ;;  %v772_v52 = vsel %vm283_vm2, %v767_v50, %v769_v45  ;;  %884 = vmatpush1.bf16.msra.mxu1 %v771_v48  ;;  %1188 = vmatprep.mubr.msk.bf16.mxu1 %vm452_vm0, %v1289_v49 }
  0xf0   : > { %830 = vmatprep.subr.bf16.mxu0 %v773_v51  ;;  %885 = vmatprep.subr.bf16.mxu1 %v1333_v0 }
  0xf1   : > { %831 = vmatpush1.bf16.msra.mxu0 %v772_v52 }
  0xf2   : > { %v758_v53 = vpop.permute.xlu0 %757  ;;  %v760_v54 = vpop.permute.xlu1 %759 }
  0xf3   : > { %628 = vmatmul.mubr.bf16.gmra.mxu0 %v1286_v47  ;;  %v762_v55 = vsel %vm271_vm3, %v758_v53, %v760_v54  ;;  %886 = vmatpush1.bf16.msra.mxu1 %v760_v54 }
  0xf4   : > { %1186 = vmatprep.mubr.msk.bf16.mxu0 %vm452_vm0, %v1289_v49  ;;  %832 = vmatprep.subr.bf16.mxu0 %v762_v55 }
  0xf5   : > { %887 = vmatprep.subr.bf16.mxu1 %v1333_v0 }
  0xf6   : > { %v756_v56 = vpop.permute.xlu0 %755  ;;  %v747_v57 = vpop.permute.xlu1 %746 }
  0xf7   : > { %v761_v58 = vsel %vm271_vm3, %v756_v56, %v758_v53 }
  0xf8   : > { %833 = vmatpush1.bf16.msra.mxu0 %v761_v58 }
  0xfa   : > { %v749_v59 = vpop.permute.xlu0 %748  ;;  %v745_v60 = vpop.permute.xlu1 %744 }
  0xfb   : > { %888 = vmatpush1.bf16.msra.mxu1 %v749_v59  ;;  %v751_v61 = vsel %vm259_vm4, %v747_v57, %v749_v59  ;;  %v750_v62 = vsel %vm259_vm4, %v745_v60, %v747_v57 }
  0xfc   : > { %834 = vmatprep.subr.bf16.mxu0 %v751_v61  ;;  %889 = vmatprep.subr.bf16.mxu1 %v1333_v0 }
  0xfd   : > { %835 = vmatpush1.bf16.msra.mxu0 %v750_v62 }
  0xfe   : > { %v736_v63 = vpop.permute.xlu0 %735 }
  0xff   : > { %v738_v1 = vpop.permute.xlu1 %737 }
 0x100   : > { %v740_v2 = vsel %vm247_vm5, %v736_v63, %v738_v1  ;;  %890 = vmatpush1.bf16.msra.mxu1 %v738_v1 }
 0x101   : > { %836 = vmatprep.subr.bf16.mxu0 %v740_v2  ;;  %891 = vmatprep.subr.bf16.mxu1 %v1333_v0 }
 0x102   : > { %v734_v3 = vpop.permute.xlu0 %733 }
 0x103   : > { %v725_v4 = vpop.permute.xlu1 %724  ;;  %v739_v11 = vsel %vm247_vm5, %v734_v3, %v736_v63 }
 0x104   : > { %837 = vmatpush1.bf16.msra.mxu0 %v739_v11 }
 0x106   : > { %v727_v12 = vpop.permute.xlu0 %726 }
 0x107   : > { %v723_v13 = vpop.permute.xlu1 %722  ;;  %892 = vmatpush1.bf16.msra.mxu1 %v727_v12  ;;  %v729_v14 = vsel %vm235_vm6, %v725_v4, %v727_v12 }
 0x108   : > { %v728_v15 = vsel %vm235_vm6, %v723_v13, %v725_v4  ;;  %838 = vmatprep.subr.bf16.mxu0 %v729_v14  ;;  %893 = vmatprep.subr.bf16.mxu1 %v1333_v0 }
 0x109   : > { %839 = vmatpush1.bf16.msra.mxu0 %v728_v15 }
 0x10a   : > { %v714_v16 = vpop.permute.xlu0 %713 }
 0x10b   : > { %v716_v17 = vpop.permute.xlu1 %715 }
 0x10c   : > { %894 = vmatpush1.bf16.msra.mxu1 %v716_v17  ;;  %v718_v18 = vsel %vm223_vm7, %v714_v16, %v716_v17 }
 0x10d   : > { %840 = vmatprep.subr.bf16.mxu0 %v718_v18  ;;  %895 = vmatprep.subr.bf16.mxu1 %v1333_v0 }
 0x10e   : > { %v712_v19 = vpop.permute.xlu0 %711 }
 0x10f   : > { %v791_v20 = vpop.permute.xlu1 %790  ;;  %v717_v21 = vsel %vm223_vm7, %v712_v19, %v714_v16 }
 0x110   : > { %896 = vmatpush1.bf16.msra.mxu1 %v1529_v9  ;;  %841 = vmatpush1.bf16.msra.mxu0 %v717_v21  ;;  %v1290_v9 = vld [vmem:[%s1771_s1 + $0x54] ss:$8 sps:$4 sm:$0xff]  }
 0x111   : > { %911 = vmatprep.subr.bf16.mxu1 %v1333_v0  ;;  %842 = vmatprep.subr.bf16.mxu0 %v1524_v8  ;;  %v1292_v8 = vld [vmem:[%s1771_s1 + $0x50] ss:$8 sps:$4 sm:$0xff]  }
 0x112   : > { %v793_v22 = vpop.permute.xlu0 %792 }
 0x113   : > { %v795_v23 = vsel %vm307_vm8, %v791_v20, %v793_v22  ;;  %v789_v25 = vpop.permute.xlu1 %788 }
 0x114   : > { %912 = vmatpush2.bf16.msra.mxu1 %v793_v22  ;;  %843 = vmatpush1.bf16.msra.mxu0 %v1534_v10  ;;  %v794_v0 = vsel %vm307_vm8, %v789_v25, %v791_v20 }
 0x115   : > { %858 = vmatprep.subr.bf16.mxu0 %v795_v23 }
 0x117   : > { %914 = vmatmul.mubr.bf16.vlgmr.msra.gmra.mxu1 %v1287_v24 }
 0x118   : > { %859 = vmatpush2.bf16.msra.mxu0 %v794_v0  ;;  %1189 = vmatprep.mubr.msk.bf16.mxu1 %vm452_vm0, %v1290_v9 }
 0x11b   : > { %861 = vmatmul.mubr.bf16.vlgmr.msra.gmra.mxu0 %v1287_v24 }
 0x11c   : > { %1187 = vmatprep.mubr.msk.bf16.mxu0 %vm452_vm0, %v1290_v9 }
 0x11f   : > { %922 = vmatmul.mubr.bf16.gmra.mxu1 %v1292_v8  ;;  %v949_v55 = vpop.permute.xlu0 %948 }
 0x120   : > { %v954_v57 = vpop.permute.xlu1 %953 }
 0x123   : > { %871 = vmatmul.mubr.bf16.gmra.mxu0 %v1292_v8 }
 0x124   : > { %v959_v19 = vpop.permute.xlu1 %958 }
 0x176   : > { %v546_v10 = vpop.f32.mrf.mxu1 }
 0x178   : > { %v548_v26 = vpop.f32.mrf.mxu1 }
 0x17a   : > { %v549_v27 = vpop.f32.mrf.mxu1 }
 0x17b   : > { %v493_v33 = vpop.f32.mrf.mxu0 }
 0x17c   : > { %v551_v28 = vpop.f32.mrf.mxu1 }
 0x17d   : > { %v495_v34 = vpop.f32.mrf.mxu0 }
 0x17e   : > { %v554_v29 = vpop.f32.mrf.mxu1 }
 0x17f   : > { %v497_v35 = vpop.f32.mrf.mxu0 }
 0x180   : > { %v556_v30 = vpop.f32.mrf.mxu1 }
 0x181   : > { %v499_v38 = vpop.f32.mrf.mxu0 }
 0x182   : > { %v1720_v31 = vpop.f32.mrf.mxu1 }
 0x183   : > { %v1722_v40 = vpop.f32.mrf.mxu0 }
 0x184   : > { %v559_v32 = vpop.f32.mrf.mxu1 }
 0x185   : > { %v1724_v42 = vpop.f32.mrf.mxu0 }
 0x187   : > { %v1726_v44 = vpop.f32.mrf.mxu0 }
 0x189   : > { %v1728_v45 = vpop.f32.mrf.mxu0 }
 0x1a6   : > { %v672_v36 = vpop.f32.mrf.mxu1 }
 0x1a7   : > { %v673_v53 = vadd.f32 %v672_v36, %v546_v10 }
 0x1a8   : > { %v674_v37 = vpop.f32.mrf.mxu1 }
 0x1aa   : > { %v675_v39 = vpop.f32.mrf.mxu1 }
 0x1ab   : > { %v619_v46 = vpop.f32.mrf.mxu0  ;;  %v676_v60 = vadd.f32 %v675_v39, %v549_v27 }
 0x1ac   : > { %v677_v41 = vpop.f32.mrf.mxu1  ;;  %v620_v61 = vadd.f32 %v619_v46, %v493_v33  ;;  %v964_v33 = vpop.permute.xlu0 %963 }
 0x1ad   : > { %v621_v47 = vpop.f32.mrf.mxu0 }
 0x1ae   : > { %v680_v6 = vpop.f32.mrf.mxu1  ;;  %v622_v2 = vadd.f32 %v621_v47, %v495_v34 }
 0x1af   : > { %v623_v48 = vpop.f32.mrf.mxu0  ;;  %v681_v12 = vadd.f32 %v680_v6, %v554_v29 }
 0x1b0   : > { %v682_v5 = vpop.f32.mrf.mxu1  ;;  %v624_v20 = vadd.f32 %v623_v48, %v497_v35 }
 0x1b1   : > { %v625_v49 = vpop.f32.mrf.mxu0 }
 0x1b2   : > { %v683_v43 = vpop.f32.mrf.mxu1  ;;  %v626_v23 = vadd.f32 %v625_v49, %v499_v38 }
 0x1b3   : > { %v629_v50 = vpop.f32.mrf.mxu0  ;;  %v684_v0 = vadd.f32 %v683_v43, %v1720_v31 }
 0x1b4   : > { %v685_v7 = vpop.f32.mrf.mxu1  ;;  %v630_v34 = vadd.f32 %v629_v50, %v1722_v40 }
 0x1b5   : > { %v631_v51 = vpop.f32.mrf.mxu0 }
 0x1b6   : > { %v632_v35 = vadd.f32 %v631_v51, %v1724_v42 }
 0x1b7   : > { %v633_v52 = vpop.f32.mrf.mxu0 }
 0x1b8   : > { %v634_v5 = vadd.f32 %v633_v52, %v1726_v44 }
 0x1b9   : > { %v635_v58 = vpop.f32.mrf.mxu0 }
 0x1ba   : > { %v636_v50 = vadd.f32 %v635_v58, %v1728_v45 }
 0x1d7   : > { %v915_v54 = vpop.f32.mrf.mxu1 }
 0x1d8   : > { %v932_v56 = vadd.f32 %v915_v54, %v673_v53 }
 0x1d9   : > { %v917_v59 = vpop.f32.mrf.mxu1 }
 0x1da   : > { %v968_v62 = vadd.f32 %v949_v55, %v932_v56 }
 0x1db   : > { %v918_v63 = vpop.f32.mrf.mxu1  ;;  %v862_v1 = vpop.f32.mrf.mxu0 }
 0x1dc   : > { %v980_v3 = vmax.f32 %v968_v62, 0.0  ;;  %v935_v4 = vadd.f32 %v918_v63, %v676_v60  ;;  %v930_v11 = vadd.f32 %v862_v1, %v620_v61 }
 0x1dd   : > { %v920_v13 = vpop.f32.mrf.mxu1  ;;  %v864_v14 = vpop.f32.mrf.mxu0 }
 0x1de   : > { %v1202_v15 = vpack.c.bf16 %v980_v3, %v980_v3  ;;  %v966_v16 = vadd.f32 %v949_v55, %v930_v11  ;;  %v971_v17 = vadd.f32 %v954_v57, %v935_v4  ;;  %v931_v18 = vadd.f32 %v864_v14, %v622_v2 }
 0x1df   : > { %v923_v21 = vpop.f32.mrf.mxu1  ;;  %v866_v22 = vpop.f32.mrf.mxu0 }
 0x1e0   : > { %1032 = vst.msk [vmem:[%s1736_s29 + $0x8] sm:$0xf] %vm1031_vm9, %v1202_v15  ;;  %v983_v24 = vmax.f32 %v971_v17, 0.0  ;;  %v967_v25 = vadd.f32 %v949_v55, %v931_v18  ;;  %v938_v9 = vadd.f32 %v923_v21, %v681_v12  ;;  %v978_v8 = vmax.f32 %v966_v16, 0.0 }
 0x1e1   : > { %v933_v10 = vadd.f32 %v866_v22, %v624_v20  ;;  %v925_v26 = vpop.f32.mrf.mxu1  ;;  %v868_v27 = vpop.f32.mrf.mxu0 }
 0x1e2   : > { %v1204_v28 = vpack.c.bf16 %v983_v24, %v983_v24  ;;  %v979_v29 = vmax.f32 %v967_v25, 0.0  ;;  %v974_v30 = vadd.f32 %v959_v19, %v938_v9  ;;  %v934_v32 = vadd.f32 %v868_v27, %v626_v23 }
 0x1e3   : > { %v969_v36 = vadd.f32 %v954_v57, %v933_v10  ;;  %v926_v37 = vpop.f32.mrf.mxu1  ;;  %v872_v38 = vpop.f32.mrf.mxu0 }
 0x1e4   : > { %1034 = vst.msk [vmem:[%s1736_s29 + $0x14] sm:$0xf] %vm1031_vm9, %v1204_v28  ;;  %v1201_v31 = vpack.c.bf16 %v979_v29, %v978_v8  ;;  %v986_v39 = vmax.f32 %v974_v30, 0.0  ;;  %v970_v41 = vadd.f32 %v954_v57, %v934_v32  ;;  %v941_v6 = vadd.f32 %v926_v37, %v684_v0 }
 0x1e5   : > { %v981_v43 = vmax.f32 %v969_v36, 0.0  ;;  %v936_v7 = vadd.f32 %v872_v38, %v630_v34  ;;  %v874_v46 = vpop.f32.mrf.mxu0  ;;  %v928_v47 = vpop.f32.mrf.mxu1 }
 0x1e6   : > { %1030 = vst [vmem:[%s1736_s29] sm:$0xff] %v1201_v31  ;;  %v1206_v40 = vpack.c.bf16 %v986_v39, %v986_v39  ;;  %v982_v42 = vmax.f32 %v970_v41, 0.0  ;;  %v977_v48 = vadd.f32 %v964_v33, %v941_v6  ;;  %v937_v49 = vadd.f32 %v874_v46, %v632_v35 }
 0x1e7   : > { %v972_v51 = vadd.f32 %v959_v19, %v936_v7  ;;  %v876_v53 = vpop.f32.mrf.mxu0 }
 0x1e8   : > { %1036 = vst.msk [vmem:[%s1736_s29 + $0x20] sm:$0xf] %vm1031_vm9, %v1206_v40  ;;  %v1203_v54 = vpack.c.bf16 %v982_v42, %v981_v43  ;;  %v989_v44 = vmax.f32 %v977_v48, 0.0  ;;  %v973_v52 = vadd.f32 %v959_v19, %v937_v49  ;;  %v939_v55 = vadd.f32 %v876_v53, %v634_v5 }
 0x1e9   : > { %v984_v56 = vmax.f32 %v972_v51, 0.0  ;;  %v878_v57 = vpop.f32.mrf.mxu0 }
 0x1ea   : > { %1033 = vst [vmem:[%s1736_s29 + $0xc] sm:$0xff] %v1203_v54  ;;  %v1208_v59 = vpack.c.bf16 %v989_v44, %v989_v44  ;;  %v985_v60 = vmax.f32 %v973_v52, 0.0  ;;  %v975_v61 = vadd.f32 %v964_v33, %v939_v55  ;;  %v940_v62 = vadd.f32 %v878_v57, %v636_v50 }
 0x1ec   : > { %1038 = vst.msk [vmem:[%s1736_s29 + $0x2c] sm:$0xf] %vm1031_vm9, %v1208_v59  ;;  %v1205_v45 = vpack.c.bf16 %v985_v60, %v984_v56  ;;  %v976_v58 = vadd.f32 %v964_v33, %v940_v62  ;;  %v987_v63 = vmax.f32 %v975_v61, 0.0 }
 0x1ee   : > { %1035 = vst [vmem:[%s1736_s29 + $0x18] sm:$0xff] %v1205_v45  ;;  %v988_v1 = vmax.f32 %v976_v58, 0.0 }
 0x1f0   : > { %v1207_v2 = vpack.c.bf16 %v988_v1, %v987_v63 }
 0x1f2   : > { %1037 = vst [vmem:[%s1736_s29 + $0x24] sm:$0xff] %v1207_v2 }
 0x1f3 PF: > { %s13_s16 = sadd.s32 1, %s1331_s16   ;;  %s1774_s12 = smov %s1323_s14 }
 0x1f4   : > { %p10_p7 = scmp.ge.s32.totalorder %s13_s16, 18   ;;  %s1775_s13 = smov %s1327_s15 }
 0x1f5   : > { %s1776_s14 = smov %s1779_s17  ;;  %s1777_s15 = smov %s1783_s18 }
 0x1f6   :  { %12 = sbr.rel (!%p10_p7) target bundleno = 3 (0x3), region = 67 }

// kernel: basic_matcher_forward.9
= control target key start
LH: loop header
LB: loop body
LE: loop exit
PB: predicated region body
PF: predicated region fallthrough
CT: control target
= control target key end

     0   :  { %s2209_s12 = smov 0   ;;  %s2211_s13 = smov 0   ;;  %s3066_s0 = inlined_call_operand.vmem [shape: bf16[2,10,32,374], index: 0, kind: input, shape index: {}]   ;;  %s3067_s1 = inlined_call_operand.vmem [shape: bf16[3,32,288], index: 1, kind: input, shape index: {}]   ;;  %s3068_s2 = inlined_call_operand.vmem [shape: f32[32,1], index: 2, kind: input, shape index: {}]   ;;  %s3069_s3 = inlined_call_operand.vmem [shape: bf16[2,8,32,272], index: 3, kind: output, shape index: {}]  }
   0x1   :  { %s2213_s14 = smov 0   ;;  %s2215_s15 = smov 0  }
   0x2   :  { %s2217_s16 = smov 0  }
   0x3 LB: > { %s22_s17 = sadd.s32 1, %s2170_s14  ;;  %s25_s18 = sadd.s32 1, %s2174_s15  ;;  %s2178_s16 = sphi %s2217_s16, %s13_s16   ;;  %s2174_s15 = sphi %s2215_s15, %s3073_s15   ;;  %s2170_s14 = sphi %s2213_s14, %s3072_s14   ;;  %s2166_s13 = sphi %s2211_s13, %s3071_s13   ;;  %s2162_s12 = sphi %s2209_s12, %s3070_s12  }
   0x4   : > { %p23_p0 = scmp.ge.s32.totalorder %s22_s17, 8  ;;  %p1815_p1 = scmp.ge.s32.totalorder %s2178_s16, 1 }
   0x5   : > { %p151_p2 = scmp.lt.s32.totalorder %s2178_s16, 17 }
   0x6   : > { %s3075_s17 = smov (%p23_p0, %s22_s17), 0  ;;  %s3077_s18 = smov (!%p23_p0, %s25_s18), %s2174_s15 }
   0x7   : > { %p152_p3 = pnand %p1815_p1, %p151_p2  ;;  %p27_p4 = scmp.ge.s32.totalorder %s3077_s18, 2 }
   0x8   : > { %p179_p5 = scmp.lt.s32.totalorder (!%p152_p3), %s2166_s13, 1  ;;  %s1909_s19 = smul.u32 (!%p152_p3), 48, %s2162_s12 }
   0x9   : > { %s3079_s18 = smov (%p27_p4, %s3077_s18), 0  ;;  %155 = sbr.rel (%p152_p3) target bundleno = 643 (0x283), region = 32 }
   0xa   : > { %s2180_s25 = smov (!%p152_p3), 58   ;;  %s2182_s26 = smov (!%p152_p3), 94  }
   0xb   : > { %s2183_s27 = smov (!%p152_p3), 59   ;;  %s2184_s28 = smov (!%p152_p3), 126  }
   0xc   : > { %s2185_s29 = smov (!%p152_p3), 60   ;;  %s2186_s30 = smov (!%p152_p3), 127  }
   0xd   : > { %s2187_s4 = smov (!%p152_p3), 92   ;;  %s2188_s7 = smov (!%p152_p3), 93  }
   0xe   : > { %s3081_s13 = smov (!%p179_p5, %s2166_s13), 1  ;;  %v2181_v5 = vmov 0   ;;  %v2330_v7 = vld [vmem:[%s3067_s1 + $0x34] ss:$12 sps:$4 sm:$0xff]   ;;  %vm410_vm0 = vcmask 474112   ;;  %vm295_vm1 = vcmask 769024  }
   0xf   : > { %s2038_s20 = smul.u32 480, %s3081_s13  ;;  %780 = vmatprep.mubr.bf16.mxu1 %v2181_v5  ;;  %2090 = vset.pattern.permute.xlu0 %v2181_v5  ;;  %v2434_v24 = vld [vmem:[%s3067_s1 + $0x38] ss:$12 sps:$4 sm:$0xff]   ;;  %vm688_vm2 = vcmask 261120   ;;  %v2455_v31 = vld [vmem:[%s3067_s1 + $0x50] ss:$12 sps:$4 sm:$0xff]  }
  0x10   : > { %2091 = vset.pattern.permute.xlu1 %v2181_v5  ;;  %727 = vmatprep.mubr.bf16.mxu0 %v2330_v7  ;;  %vm272_vm3 = vcmask 1031168   ;;  %vm249_vm4 = vcmask 1039360   ;;  %vm387_vm5 = vcmask 482304   ;;  %vm364_vm6 = vcmask 490496   ;;  %p186_p6 = scmp.lt.s32.totalorder %s2162_s12, 7  ;;  %s2040_s10 = smul.u32 96, %s3081_s13 }
  0x11   : > { %s183_s23 = scalar_lea.vmem %s3066_s0, %s2038_s20  ;;  %vm341_vm7 = vcmask 752640   ;;  %vm318_vm8 = vcmask 760832   ;;  %vm1709_vm9 = vcmask 125952  }
  0x12   : > { %s2248_s24 = scalar_lea.vmem %s183_s23, %s1909_s19  ;;  %s3083_s12 = smov (!%p186_p6, %s2162_s12), 7 }
  0x13   : > { %v2251_v0 = vld [vmem:[%s2248_s24 + $0x4c] ss:$12 sps:$4 sm:$0xff]   ;;  %v2254_v1 = vld [vmem:[%s2248_s24 + $0x48] ss:$12 sps:$4 sm:$0xff]   ;;  %v2259_v2 = vld [vmem:[%s2248_s24 + $0x50] ss:$12 sps:$4 sm:$0xff]  }
  0x14   : > { %635 = vrot.lane.b32.xlu0 %v2251_v0, %s2180_s25  ;;  %633 = vrot.lane.b32.xlu1 %v2254_v1, %s2180_s25  ;;  %v2264_v3 = vld [vmem:[%s2248_s24 + $0x34] ss:$12 sps:$4 sm:$0xff]   ;;  %v2269_v4 = vld [vmem:[%s2248_s24 + $0x38] ss:$12 sps:$4 sm:$0xff]   ;;  %s2039_s11 = smul.u32 12, %s3083_s12 }
  0x15   : > { %v2275_v6 = vld [vmem:[%s2248_s24 + $0x30] ss:$12 sps:$4 sm:$0xff]   ;;  %v2361_v9 = vld [vmem:[%s2248_s24 + $0x20] ss:$12 sps:$4 sm:$0xff]   ;;  %v2366_v10 = vld [vmem:[%s2248_s24 + $0x18] ss:$12 sps:$4 sm:$0xff]  }
  0x16   : > { %v2356_v8 = vld [vmem:[%s2248_s24 + $0x1c] ss:$12 sps:$4 sm:$0xff]   ;;  %v2375_v11 = vld [vmem:[%s2248_s24 + $0x4] ss:$12 sps:$4 sm:$0xff]   ;;  %v2385_v13 = vld [vmem:[%s2248_s24] ss:$12 sps:$4 sm:$0xff]   ;;  %s3014_s12 = sadd.s32 %s2040_s10, %s2039_s11 }
  0x17   : > { %v2380_v12 = vld [vmem:[%s2248_s24 + $0x8] ss:$12 sps:$4 sm:$0xff]   ;;  %s1817_s13 = sshll.u32 %s3014_s12, 2 }
  0x18   : > { %637 = vrot.lane.b32.xlu0 %v2259_v2, %s2180_s25  ;;  %629 = vrot.lane.b32.xlu1 %v2264_v3, %s2180_s25  ;;  %s3027_s21 = scalar_lea.vmem %s3069_s3, %s1817_s13 }
  0x1c   : > { %631 = vrot.lane.b32.xlu0 %v2269_v4, %s2180_s25  ;;  %627 = vrot.lane.b32.xlu1 %v2275_v6, %s2180_s25 }
  0x20   : > { %525 = vrot.lane.b32.xlu0 %v2251_v0, %s2182_s26  ;;  %527 = vrot.lane.b32.xlu1 %v2259_v2, %s2182_s26 }
  0x24   : > { %615 = vrot.lane.b32.xlu0 %v2259_v2, %s2183_s27  ;;  %523 = vrot.lane.b32.xlu1 %v2254_v1, %s2182_s26 }
  0x28   : > { %519 = vrot.lane.b32.xlu0 %v2264_v3, %s2182_s26  ;;  %521 = vrot.lane.b32.xlu1 %v2269_v4, %s2182_s26 }
  0x2c   : > { %609 = vrot.lane.b32.xlu0 %v2269_v4, %s2183_s27  ;;  %517 = vrot.lane.b32.xlu1 %v2275_v6, %s2182_s26 }
  0x30   : > { %503 = vrot.lane.b32.xlu0 %v2251_v0, %s2184_s28  ;;  %505 = vrot.lane.b32.xlu1 %v2259_v2, %s2184_s28 }
  0x34   : > { %593 = vrot.lane.b32.xlu0 %v2259_v2, %s2185_s29  ;;  %501 = vrot.lane.b32.xlu1 %v2254_v1, %s2184_s28 }
  0x38   : > { %497 = vrot.lane.b32.xlu0 %v2264_v3, %s2184_s28  ;;  %499 = vrot.lane.b32.xlu1 %v2269_v4, %s2184_s28 }
  0x3c   : > { %587 = vrot.lane.b32.xlu0 %v2269_v4, %s2185_s29  ;;  %495 = vrot.lane.b32.xlu1 %v2275_v6, %s2184_s28 }
  0x40   : > { %481 = vrot.lane.b32.xlu0 %v2251_v0, %s2186_s30  ;;  %483 = vrot.lane.b32.xlu1 %v2259_v2, %s2186_s30 }
  0x44   : > { %571 = vrot.lane.b32.xlu0 %v2259_v2, %s2187_s4  ;;  %479 = vrot.lane.b32.xlu1 %v2254_v1, %s2186_s30 }
  0x48   : > { %475 = vrot.lane.b32.xlu0 %v2264_v3, %s2186_s30  ;;  %477 = vrot.lane.b32.xlu1 %v2269_v4, %s2186_s30 }
  0x4c   : > { %565 = vrot.lane.b32.xlu0 %v2269_v4, %s2187_s4  ;;  %473 = vrot.lane.b32.xlu1 %v2275_v6, %s2186_s30 }
  0x50   : > { %549 = vrot.lane.b32.xlu0 %v2259_v2, %s2188_s7  ;;  %543 = vrot.lane.b32.xlu1 %v2269_v4, %s2188_s7 }
  0x54   : > { %613 = vrot.lane.b32.xlu0 %v2251_v0, %s2183_s27  ;;  %611 = vrot.lane.b32.xlu1 %v2254_v1, %s2183_s27 }
  0x58   : > { %607 = vrot.lane.b32.xlu0 %v2264_v3, %s2183_s27  ;;  %605 = vrot.lane.b32.xlu1 %v2275_v6, %s2183_s27 }
  0x5c   : > { %591 = vrot.lane.b32.xlu0 %v2251_v0, %s2185_s29  ;;  %589 = vrot.lane.b32.xlu1 %v2254_v1, %s2185_s29 }
  0x60   : > { %585 = vrot.lane.b32.xlu0 %v2264_v3, %s2185_s29  ;;  %583 = vrot.lane.b32.xlu1 %v2275_v6, %s2185_s29 }
  0x64   : > { %291 = vrot.lane.b32.xlu0 %v2356_v8, %s2182_s26  ;;  %293 = vrot.lane.b32.xlu1 %v2361_v9, %s2182_s26 }
  0x68   : > { %289 = vrot.lane.b32.xlu0 %v2366_v10, %s2182_s26  ;;  %569 = vrot.lane.b32.xlu1 %v2251_v0, %s2187_s4 }
  0x6c   : > { %567 = vrot.lane.b32.xlu0 %v2254_v1, %s2187_s4  ;;  %285 = vrot.lane.b32.xlu1 %v2375_v11, %s2182_s26 }
  0x70   : > { %287 = vrot.lane.b32.xlu0 %v2380_v12, %s2182_s26  ;;  %283 = vrot.lane.b32.xlu1 %v2385_v13, %s2182_s26 }
  0x74   : > { %563 = vrot.lane.b32.xlu0 %v2264_v3, %s2187_s4  ;;  %561 = vrot.lane.b32.xlu1 %v2275_v6, %s2187_s4 }
  0x78   : > { %268 = vrot.lane.b32.xlu0 %v2356_v8, %s2184_s28  ;;  %270 = vrot.lane.b32.xlu1 %v2361_v9, %s2184_s28 }
  0x7c   : > { %266 = vrot.lane.b32.xlu0 %v2366_v10, %s2184_s28  ;;  %547 = vrot.lane.b32.xlu1 %v2251_v0, %s2188_s7 }
  0x80   : > { %545 = vrot.lane.b32.xlu0 %v2254_v1, %s2188_s7  ;;  %262 = vrot.lane.b32.xlu1 %v2375_v11, %s2184_s28 }
  0x84   : > { %264 = vrot.lane.b32.xlu0 %v2380_v12, %s2184_s28  ;;  %260 = vrot.lane.b32.xlu1 %v2385_v13, %s2184_s28 }
  0x86   : > { %v636_v14 = vpop.permute.xlu0 %635  ;;  %v634_v15 = vpop.permute.xlu1 %633 }
  0x87   : > { %v641_v19 = vsel %vm410_vm0, %v634_v15, %v636_v14 }
  0x88   : > { %541 = vrot.lane.b32.xlu0 %v2264_v3, %s2188_s7  ;;  %539 = vrot.lane.b32.xlu1 %v2275_v6, %s2188_s7 }
  0x8a   : > { %v2415_v16 = vpop.permute.xlu0 %637  ;;  %v630_v17 = vpop.permute.xlu1 %629 }
  0x8b   : > { %v642_v18 = vsel %vm410_vm0, %v636_v14, %v2415_v16 }
  0x8c   : > { %760 = vmatprep.subr.bf16.mxu1 %v642_v18  ;;  %245 = vrot.lane.b32.xlu0 %v2356_v8, %s2186_s30 }
  0x8d   : > { %247 = vrot.lane.b32.xlu1 %v2361_v9, %s2186_s30  ;;  %761 = vmatpush1.bf16.msra.mxu1 %v641_v19 }
  0x8e   : > { %v2424_v20 = vpop.permute.xlu0 %631  ;;  %v628_v21 = vpop.permute.xlu1 %627 }
  0x8f   : > { %v640_v22 = vsel %vm410_vm0, %v630_v17, %v2424_v20  ;;  %v639_v23 = vsel %vm410_vm0, %v628_v21, %v630_v17 }
  0x90   : > { %762 = vmatprep.subr.bf16.mxu1 %v640_v22  ;;  %243 = vrot.lane.b32.xlu0 %v2366_v10, %s2186_s30  ;;  %v2583_v22 = vld [vmem:[%s2248_s24 + $0x7c] ss:$12 sps:$4 sm:$0xff]  }
  0x91   : > { %239 = vrot.lane.b32.xlu1 %v2375_v11, %s2186_s30  ;;  %763 = vmatpush1.bf16.msra.mxu1 %v639_v23  ;;  %v2588_v23 = vld [vmem:[%s2248_s24 + $0x80] ss:$12 sps:$4 sm:$0xff]  }
  0x92   : > { %v526_v25 = vpop.permute.xlu0 %525  ;;  %v528_v26 = vpop.permute.xlu1 %527 }
  0x93   : > { %v532_v27 = vsel %vm295_vm1, %v526_v25, %v528_v26 }
  0x94   : > { %241 = vrot.lane.b32.xlu0 %v2380_v12, %s2186_s30  ;;  %1853 = vmatmul.mubr.msk.bf16.vlgmr.msra.gmra.mxu1 %vm688_vm2, %v2434_v24 }
  0x95   : > { %695 = vmatprep.subr.bf16.mxu0 %v532_v27  ;;  %237 = vrot.lane.b32.xlu1 %v2385_v13, %s2186_s30 }
  0x96   : > { %v2445_v28 = vpop.permute.xlu0 %615  ;;  %790 = vmatprep.mubr.bf16.mxu1 %v2181_v5  ;;  %v524_v29 = vpop.permute.xlu1 %523 }
  0x97   : > { %1918 = vmatprep.subr.bf16.mxu1 %v2445_v28  ;;  %v531_v30 = vsel %vm295_vm1, %v524_v29, %v526_v25 }
  0x98   : > { %1919 = vmatpush3.bf16.msra.mxu1 %v528_v26  ;;  %406 = vrot.lane.b32.xlu0 %v2356_v8, %s2180_s25 }
  0x99   : > { %696 = vmatpush1.bf16.msra.mxu0 %v531_v30  ;;  %408 = vrot.lane.b32.xlu1 %v2361_v9, %s2180_s25  ;;  %v2604_v30 = vld [vmem:[%s2248_s24 + $0x64] ss:$12 sps:$4 sm:$0xff]  }
  0x9a   : > { %v520_v32 = vpop.permute.xlu0 %519  ;;  %v522_v33 = vpop.permute.xlu1 %521 }
  0x9b   : > { %v530_v34 = vsel %vm295_vm1, %v520_v32, %v522_v33 }
  0x9c   : > { %404 = vrot.lane.b32.xlu0 %v2366_v10, %s2180_s25  ;;  %1854 = vmatmul.mubr.msk.bf16.gmra.mxu1 %vm688_vm2, %v2455_v31 }
  0x9d   : > { %697 = vmatprep.subr.bf16.mxu0 %v530_v34  ;;  %400 = vrot.lane.b32.xlu1 %v2375_v11, %s2180_s25 }
  0x9e   : > { %v2466_v35 = vpop.permute.xlu0 %609  ;;  %833 = vmatprep.mubr.bf16.mxu1 %v2330_v7  ;;  %v518_v36 = vpop.permute.xlu1 %517 }
  0x9f   : > { %1920 = vmatprep.subr.bf16.mxu1 %v2466_v35  ;;  %v529_v37 = vsel %vm295_vm1, %v518_v36, %v520_v32 }
  0xa0   : > { %1921 = vmatpush3.bf16.msra.mxu1 %v522_v33  ;;  %402 = vrot.lane.b32.xlu0 %v2380_v12, %s2180_s25 }
  0xa1   : > { %698 = vmatpush1.bf16.msra.mxu0 %v529_v37  ;;  %398 = vrot.lane.b32.xlu1 %v2385_v13, %s2180_s25  ;;  %v2624_v37 = vld [vmem:[%s2248_s24 + $0x60] ss:$12 sps:$4 sm:$0xff]  }
  0xa2   : > { %v504_v38 = vpop.permute.xlu0 %503  ;;  %v506_v39 = vpop.permute.xlu1 %505 }
  0xa3   : > { %v510_v40 = vsel %vm272_vm3, %v504_v38, %v506_v39 }
  0xa4   : > { %383 = vrot.lane.b32.xlu0 %v2356_v8, %s2183_s27  ;;  %699 = vmatprep.subr.bf16.mxu0 %v510_v40 }
  0xa5   : > { %385 = vrot.lane.b32.xlu1 %v2361_v9, %s2183_s27 }
  0xa6   : > { %v2480_v41 = vpop.permute.xlu0 %593  ;;  %v502_v42 = vpop.permute.xlu1 %501 }
  0xa7   : > { %1922 = vmatprep.subr.bf16.mxu1 %v2480_v41  ;;  %v509_v43 = vsel %vm272_vm3, %v502_v42, %v504_v38 }
  0xa8   : > { %1923 = vmatpush3.bf16.msra.mxu1 %v506_v39  ;;  %381 = vrot.lane.b32.xlu0 %v2366_v10, %s2183_s27 }
  0xa9   : > { %700 = vmatpush1.bf16.msra.mxu0 %v509_v43  ;;  %377 = vrot.lane.b32.xlu1 %v2375_v11, %s2183_s27 }
  0xaa   : > { %v498_v44 = vpop.permute.xlu0 %497  ;;  %v500_v45 = vpop.permute.xlu1 %499 }
  0xab   : > { %v508_v46 = vsel %vm272_vm3, %v498_v44, %v500_v45 }
  0xac   : > { %379 = vrot.lane.b32.xlu0 %v2380_v12, %s2183_s27  ;;  %701 = vmatprep.subr.bf16.mxu0 %v508_v46 }
  0xad   : > { %375 = vrot.lane.b32.xlu1 %v2385_v13, %s2183_s27 }
  0xae   : > { %v2493_v47 = vpop.permute.xlu0 %587  ;;  %v496_v48 = vpop.permute.xlu1 %495 }
  0xaf   : > { %1924 = vmatprep.subr.bf16.mxu1 %v2493_v47  ;;  %v507_v49 = vsel %vm272_vm3, %v496_v48, %v498_v44 }
  0xb0   : > { %1925 = vmatpush3.bf16.msra.mxu1 %v500_v45  ;;  %360 = vrot.lane.b32.xlu0 %v2356_v8, %s2185_s29 }
  0xb1   : > { %702 = vmatpush1.bf16.msra.mxu0 %v507_v49  ;;  %362 = vrot.lane.b32.xlu1 %v2361_v9, %s2185_s29 }
  0xb2   : > { %v482_v50 = vpop.permute.xlu0 %481  ;;  %v484_v51 = vpop.permute.xlu1 %483 }
  0xb3   : > { %v488_v52 = vsel %vm249_vm4, %v482_v50, %v484_v51 }
  0xb4   : > { %358 = vrot.lane.b32.xlu0 %v2366_v10, %s2185_s29  ;;  %703 = vmatprep.subr.bf16.mxu0 %v488_v52 }
  0xb5   : > { %354 = vrot.lane.b32.xlu1 %v2375_v11, %s2185_s29 }
  0xb6   : > { %v2506_v53 = vpop.permute.xlu0 %571  ;;  %v480_v54 = vpop.permute.xlu1 %479 }
  0xb7   : > { %1926 = vmatprep.subr.bf16.mxu1 %v2506_v53  ;;  %v487_v55 = vsel %vm249_vm4, %v480_v54, %v482_v50 }
  0xb8   : > { %1927 = vmatpush3.bf16.msra.mxu1 %v484_v51  ;;  %356 = vrot.lane.b32.xlu0 %v2380_v12, %s2185_s29 }
  0xb9   : > { %704 = vmatpush1.bf16.msra.mxu0 %v487_v55  ;;  %352 = vrot.lane.b32.xlu1 %v2385_v13, %s2185_s29 }
  0xba   : > { %v476_v56 = vpop.permute.xlu0 %475  ;;  %v478_v57 = vpop.permute.xlu1 %477 }
  0xbb   : > { %v486_v58 = vsel %vm249_vm4, %v476_v56, %v478_v57 }
  0xbc   : > { %337 = vrot.lane.b32.xlu0 %v2356_v8, %s2187_s4  ;;  %705 = vmatprep.subr.bf16.mxu0 %v486_v58 }
  0xbd   : > { %339 = vrot.lane.b32.xlu1 %v2361_v9, %s2187_s4 }
  0xbe   : > { %v2519_v59 = vpop.permute.xlu0 %565  ;;  %v474_v60 = vpop.permute.xlu1 %473 }
  0xbf   : > { %1928 = vmatprep.subr.bf16.mxu1 %v2519_v59  ;;  %v485_v61 = vsel %vm249_vm4, %v474_v60, %v476_v56 }
  0xc0   : > { %1929 = vmatpush3.bf16.msra.mxu1 %v478_v57  ;;  %335 = vrot.lane.b32.xlu0 %v2366_v10, %s2187_s4 }
  0xc1   : > { %706 = vmatpush1.bf16.msra.mxu0 %v485_v61  ;;  %331 = vrot.lane.b32.xlu1 %v2375_v11, %s2187_s4 }
  0xc2   : > { %v2527_v62 = vpop.permute.xlu0 %549  ;;  %707 = vmatprep.subr.bf16.mxu0 %v2251_v0  ;;  %v2530_v63 = vpop.permute.xlu1 %543 }
  0xc3   : > { %1930 = vmatprep.subr.bf16.mxu1 %v2527_v62 }
  0xc4   : > { %1931 = vmatpush3.bf16.msra.mxu1 %v2259_v2  ;;  %333 = vrot.lane.b32.xlu0 %v2380_v12, %s2187_s4  ;;  %v2546_v2 = vld [vmem:[%s3067_s1 + $0x30] ss:$12 sps:$4 sm:$0xff]  }
  0xc5   : > { %708 = vmatpush1.bf16.msra.mxu0 %v2254_v1  ;;  %329 = vrot.lane.b32.xlu1 %v2385_v13, %s2187_s4 }
  0xc6   : > { %1932 = vmatprep.subr.bf16.mxu1 %v2530_v63  ;;  %v614_v7 = vpop.permute.xlu0 %613  ;;  %709 = vmatprep.subr.bf16.mxu0 %v2264_v3  ;;  %v612_v0 = vpop.permute.xlu1 %611 }
  0xc7   : > { %v620_v14 = vsel %vm387_vm5, %v614_v7, %v2445_v28  ;;  %v2597_v28 = vld [vmem:[%s2248_s24 + $0x78] ss:$12 sps:$4 sm:$0xff]  }
  0xc8   : > { %1933 = vmatpush3.bf16.msra.mxu1 %v2269_v4  ;;  %314 = vrot.lane.b32.xlu0 %v2356_v8, %s2188_s7  ;;  %v2561_v4 = vld [vmem:[%s3067_s1 + $0x4c] ss:$12 sps:$4 sm:$0xff]  }
  0xc9   : > { %710 = vmatpush1.bf16.msra.mxu0 %v2275_v6  ;;  %316 = vrot.lane.b32.xlu1 %v2361_v9, %s2188_s7  ;;  %v619_v6 = vsel %vm387_vm5, %v612_v0, %v614_v7 }
  0xca   : > { %711 = vmatprep.subr.bf16.mxu0 %v620_v14  ;;  %2014 = vmatprep.subr.bf16.mxu1 %v2415_v16  ;;  %v608_v1 = vpop.permute.xlu0 %607  ;;  %v606_v3 = vpop.permute.xlu1 %605 }
  0xcb   : > { %834 = vmatmul.mubr.bf16.vlgmr.msra.gmra.mxu1 %v2546_v2  ;;  %v618_v15 = vsel %vm387_vm5, %v608_v1, %v2466_v35  ;;  %v617_v21 = vsel %vm387_vm5, %v606_v3, %v608_v1  ;;  %v2619_v35 = vld [vmem:[%s3067_s1 + $0x4] ss:$12 sps:$4 sm:$0xff]  }
  0xcc   : > { %2015 = vmatpush3.bf16.msra.mxu1 %v2415_v16  ;;  %312 = vrot.lane.b32.xlu0 %v2366_v10, %s2188_s7  ;;  %v2576_v16 = vld [vmem:[%s3067_s1 + $0x48] ss:$12 sps:$4 sm:$0xff]  }
  0xcd   : > { %712 = vmatpush2.bf16.msra.mxu0 %v619_v6  ;;  %308 = vrot.lane.b32.xlu1 %v2375_v11, %s2188_s7 }
  0xce   : > { %713 = vmatprep.subr.bf16.mxu0 %v618_v15  ;;  %2016 = vmatprep.subr.bf16.mxu1 %v2424_v20  ;;  %v592_v17 = vpop.permute.xlu0 %591  ;;  %v590_v18 = vpop.permute.xlu1 %589 }
  0xcf   : > { %v598_v19 = vsel %vm364_vm6, %v592_v17, %v2480_v41  ;;  %841 = vmatprep.mubr.bf16.mxu1 %v2561_v4  ;;  %v597_v27 = vsel %vm364_vm6, %v590_v18, %v592_v17 }
  0xd0   : > { %2017 = vmatpush3.bf16.msra.mxu1 %v2424_v20  ;;  %310 = vrot.lane.b32.xlu0 %v2380_v12, %s2188_s7 }
  0xd1   : > { %714 = vmatpush2.bf16.msra.mxu0 %v617_v21  ;;  %306 = vrot.lane.b32.xlu1 %v2385_v13, %s2188_s7 }
  0xd2   : > { %715 = vmatprep.subr.bf16.mxu0 %v598_v19  ;;  %v586_v25 = vpop.permute.xlu0 %585  ;;  %v584_v26 = vpop.permute.xlu1 %583 }
  0xd3   : > { %842 = vmatmul.mubr.bf16.gmra.mxu1 %v2576_v16  ;;  %v596_v20 = vsel %vm364_vm6, %v586_v25, %v2493_v47  ;;  %v595_v33 = vsel %vm364_vm6, %v584_v26, %v586_v25 }
  0xd4   : > { %1235 = vrot.lane.b32.xlu0 %v2583_v22, %s2182_s26  ;;  %2018 = vmatprep.mubr.msk.bf16.mxu1 %vm688_vm2, %v2434_v24  ;;  %v2614_v24 = vld [vmem:[%s2248_s24 + $0x68] ss:$12 sps:$4 sm:$0xff]  }
  0xd5   : > { %716 = vmatpush2.bf16.msra.mxu0 %v597_v27  ;;  %1237 = vrot.lane.b32.xlu1 %v2588_v23, %s2182_s26 }
  0xd6   : > { %717 = vmatprep.subr.bf16.mxu0 %v596_v20  ;;  %v292_v29 = vpop.permute.xlu0 %291  ;;  %v2606_v32 = vpop.permute.xlu1 %293 }
  0xd7   : > { %v299_v34 = vsel %vm295_vm1, %v292_v29, %v2606_v32 }
  0xd8   : > { %1233 = vrot.lane.b32.xlu0 %v2597_v28, %s2182_s26  ;;  %935 = vmatprep.subr.bf16.mxu1 %v299_v34 }
  0xd9   : > { %718 = vmatpush2.bf16.msra.mxu0 %v595_v33  ;;  %1229 = vrot.lane.b32.xlu1 %v2604_v30, %s2182_s26 }
  0xda   : > { %v290_v36 = vpop.permute.xlu0 %289  ;;  %v570_v38 = vpop.permute.xlu1 %569 }
  0xdb   : > { %v298_v39 = vsel %vm295_vm1, %v290_v36, %v292_v29  ;;  %2019 = vmatmul.mubr.msk.bf16.vlgmr.msra.gmra.mxu1 %vm688_vm2, %v2455_v31  ;;  %v576_v40 = vsel %vm341_vm7, %v570_v38, %v2506_v53 }
  0xdc   : > { %936 = vmatpush1.bf16.msra.mxu1 %v298_v39  ;;  %1231 = vrot.lane.b32.xlu0 %v2614_v24, %s2182_s26 }
  0xdd   : > { %719 = vmatprep.subr.bf16.mxu0 %v576_v40  ;;  %967 = vmatprep.mubr.bf16.mxu1 %v2619_v35 }
  0xde   : > { %1227 = vrot.lane.b32.xlu1 %v2624_v37, %s2182_s26  ;;  %v568_v41 = vpop.permute.xlu0 %567  ;;  %v286_v42 = vpop.permute.xlu1 %285 }
  0xdf   : > { %v575_v43 = vsel %vm341_vm7, %v568_v41, %v570_v38 }
  0xe0   : > { %720 = vmatpush2.bf16.msra.mxu0 %v575_v43  ;;  %1213 = vrot.lane.b32.xlu0 %v2583_v22, %s2184_s28 }
  0xe2   : > { %1215 = vrot.lane.b32.xlu1 %v2588_v23, %s2184_s28  ;;  %v2641_v31 = vpop.permute.xlu0 %287  ;;  %v284_v44 = vpop.permute.xlu1 %283 }
  0xe3   : > { %v297_v45 = vsel %vm295_vm1, %v286_v42, %v2641_v31  ;;  %v296_v46 = vsel %vm295_vm1, %v284_v44, %v286_v42 }
  0xe4   : > { %1211 = vrot.lane.b32.xlu0 %v2597_v28, %s2184_s28  ;;  %937 = vmatprep.subr.bf16.mxu1 %v297_v45  ;;  %v2767_v45 = vld [vmem:[%s3067_s1 + $0x20] ss:$12 sps:$4 sm:$0xff]  }
  0xe5   : > { %938 = vmatpush1.bf16.msra.mxu1 %v296_v46 }
  0xe6   : > { %1207 = vrot.lane.b32.xlu1 %v2604_v30, %s2184_s28  ;;  %v564_v47 = vpop.permute.xlu0 %563  ;;  %v562_v48 = vpop.permute.xlu1 %561 }
  0xe7   : > { %v574_v49 = vsel %vm341_vm7, %v564_v47, %v2519_v59  ;;  %v573_v50 = vsel %vm341_vm7, %v562_v48, %v564_v47 }
  0xe8   : > { %1209 = vrot.lane.b32.xlu0 %v2614_v24, %s2184_s28  ;;  %721 = vmatprep.subr.bf16.mxu0 %v574_v49 }
  0xe9   : > { %722 = vmatpush2.bf16.msra.mxu0 %v573_v50 }
  0xea   : > { %1205 = vrot.lane.b32.xlu1 %v2624_v37, %s2184_s28  ;;  %v269_v51 = vpop.permute.xlu0 %268  ;;  %v2657_v52 = vpop.permute.xlu1 %270 }
  0xeb   : > { %v276_v53 = vsel %vm272_vm3, %v269_v51, %v2657_v52 }
  0xec   : > { %1191 = vrot.lane.b32.xlu0 %v2583_v22, %s2186_s30  ;;  %939 = vmatprep.subr.bf16.mxu1 %v276_v53 }
  0xee   : > { %1193 = vrot.lane.b32.xlu1 %v2588_v23, %s2186_s30  ;;  %v267_v54 = vpop.permute.xlu0 %266  ;;  %v548_v56 = vpop.permute.xlu1 %547 }
  0xef   : > { %v275_v55 = vsel %vm272_vm3, %v267_v54, %v269_v51  ;;  %v554_v57 = vsel %vm318_vm8, %v548_v56, %v2527_v62 }
  0xf0   : > { %1345 = vrot.lane.b32.xlu0 %v2583_v22, %s2180_s25  ;;  %940 = vmatpush1.bf16.msra.mxu1 %v275_v55 }
  0xf1   : > { %723 = vmatprep.subr.bf16.mxu0 %v554_v57 }
  0xf2   : > { %1347 = vrot.lane.b32.xlu1 %v2588_v23, %s2180_s25  ;;  %v546_v58 = vpop.permute.xlu0 %545  ;;  %v263_v59 = vpop.permute.xlu1 %262 }
  0xf3   : > { %v553_v60 = vsel %vm318_vm8, %v546_v58, %v548_v56 }
  0xf4   : > { %1189 = vrot.lane.b32.xlu0 %v2597_v28, %s2186_s30  ;;  %724 = vmatpush2.bf16.msra.mxu0 %v553_v60 }
  0xf6   : > { %1343 = vrot.lane.b32.xlu1 %v2597_v28, %s2180_s25  ;;  %v2677_v61 = vpop.permute.xlu0 %264  ;;  %v261_v7 = vpop.permute.xlu1 %260 }
  0xf7   : > { %v274_v62 = vsel %vm272_vm3, %v263_v59, %v2677_v61  ;;  %v273_v0 = vsel %vm272_vm3, %v261_v7, %v263_v59 }
  0xf8   : > { %1185 = vrot.lane.b32.xlu0 %v2604_v30, %s2186_s30  ;;  %941 = vmatprep.subr.bf16.mxu1 %v274_v62 }
  0xf9   : > { %942 = vmatpush1.bf16.msra.mxu1 %v273_v0 }
  0xfa   : > { %1187 = vrot.lane.b32.xlu1 %v2614_v24, %s2186_s30  ;;  %v542_v14 = vpop.permute.xlu0 %541  ;;  %v540_v1 = vpop.permute.xlu1 %539 }
  0xfb   : > { %v552_v3 = vsel %vm318_vm8, %v542_v14, %v2530_v63  ;;  %v551_v15 = vsel %vm318_vm8, %v540_v1, %v542_v14 }
  0xfc   : > { %1339 = vrot.lane.b32.xlu0 %v2604_v30, %s2180_s25  ;;  %725 = vmatprep.subr.bf16.mxu0 %v552_v3 }
  0xfd   : > { %726 = vmatpush2.bf16.msra.mxu0 %v551_v15 }
  0xfe   : > { %1341 = vrot.lane.b32.xlu1 %v2614_v24, %s2180_s25  ;;  %v246_v6 = vpop.permute.xlu0 %245 }
  0xff   : > { %v2693_v17 = vpop.permute.xlu1 %247 }
 0x100   : > { %1183 = vrot.lane.b32.xlu0 %v2624_v37, %s2186_s30  ;;  %728 = vmatmul.mubr.bf16.vlgmr.msra.gmra.mxu0 %v2546_v2  ;;  %v253_v63 = vsel %vm249_vm4, %v246_v6, %v2693_v17 }
 0x101   : > { %943 = vmatprep.subr.bf16.mxu1 %v253_v63  ;;  %737 = vmatprep.mubr.bf16.mxu0 %v2561_v4 }
 0x102   : > { %1337 = vrot.lane.b32.xlu1 %v2624_v37, %s2180_s25  ;;  %v244_v18 = vpop.permute.xlu0 %243 }
 0x103   : > { %v252_v19 = vsel %vm249_vm4, %v244_v18, %v246_v6  ;;  %v240_v21 = vpop.permute.xlu1 %239 }
 0x104   : > { %1325 = vrot.lane.b32.xlu0 %v2588_v23, %s2183_s27  ;;  %944 = vmatpush1.bf16.msra.mxu1 %v252_v19 }
 0x106   : > { %1319 = vrot.lane.b32.xlu1 %v2614_v24, %s2183_s27  ;;  %v2708_v2 = vpop.permute.xlu0 %241 }
 0x107   : > { %v238_v25 = vpop.permute.xlu1 %237  ;;  %v251_v4 = vsel %vm249_vm4, %v240_v21, %v2708_v2 }
 0x108   : > { %v250_v26 = vsel %vm249_vm4, %v238_v25, %v240_v21  ;;  %1323 = vrot.lane.b32.xlu0 %v2583_v22, %s2183_s27  ;;  %945 = vmatprep.subr.bf16.mxu1 %v251_v4  ;;  %v2129_v4 = vld [vmem:[%s3067_s1 + $0x1c] ss:$12 sps:$4 sm:$0xff]  }
 0x109   : > { %946 = vmatpush1.bf16.msra.mxu1 %v250_v26  ;;  %738 = vmatmul.mubr.bf16.gmra.mxu0 %v2576_v16 }
 0x10a   : > { %1303 = vrot.lane.b32.xlu1 %v2588_v23, %s2185_s29  ;;  %v407_v20 = vpop.permute.xlu0 %406  ;;  %947 = vmatprep.subr.bf16.mxu1 %v2356_v8 }
 0x10b   : > { %v2719_v27 = vpop.permute.xlu1 %408  ;;  %1020 = vmatprep.mubr.bf16.mxu0 %v2181_v5 }
 0x10c   : > { %1321 = vrot.lane.b32.xlu0 %v2597_v28, %s2183_s27  ;;  %v414_v29 = vsel %vm410_vm0, %v407_v20, %v2719_v27 }
 0x10d   : > { %1000 = vmatprep.subr.bf16.mxu0 %v414_v29  ;;  %948 = vmatpush1.bf16.msra.mxu1 %v2366_v10 }
 0x10e   : > { %1317 = vrot.lane.b32.xlu1 %v2604_v30, %s2183_s27  ;;  %v405_v16 = vpop.permute.xlu0 %404  ;;  %949 = vmatprep.subr.bf16.mxu1 %v2375_v11 }
 0x10f   : > { %v413_v8 = vsel %vm410_vm0, %v405_v16, %v407_v20  ;;  %v401_v33 = vpop.permute.xlu1 %400  ;;  %v2131_v16 = vld [vmem:[%s3067_s1 + $0x18] ss:$12 sps:$4 sm:$0xff]  }
 0x110   : > { %1297 = vrot.lane.b32.xlu0 %v2614_v24, %s2185_s29  ;;  %1001 = vmatpush1.bf16.msra.mxu0 %v413_v8 }
 0x111   : > { %950 = vmatpush1.bf16.msra.mxu1 %v2385_v13  ;;  %v2746_v13 = vld [vmem:[%s3067_s1 + $0x8] ss:$12 sps:$4 sm:$0xff]  }
 0x112   : > { %1315 = vrot.lane.b32.xlu1 %v2624_v37, %s2183_s27  ;;  %v2736_v34 = vpop.permute.xlu0 %402 }
 0x113   : > { %v399_v10 = vpop.permute.xlu1 %398  ;;  %v412_v36 = vsel %vm410_vm0, %v401_v33, %v2736_v34 }
 0x114   : > { %v411_v11 = vsel %vm410_vm0, %v399_v10, %v401_v33  ;;  %1301 = vrot.lane.b32.xlu0 %v2583_v22, %s2185_s29  ;;  %1002 = vmatprep.subr.bf16.mxu0 %v412_v36  ;;  %v2838_v10 = vld [vmem:[%s3067_s1 + $0x64] ss:$12 sps:$4 sm:$0xff]  }
 0x115   : > { %1003 = vmatpush1.bf16.msra.mxu0 %v411_v11  ;;  %v1620_v11 = vld [vmem:[%s3068_s2] sm:$0xff] }
 0x116   : > { %1281 = vrot.lane.b32.xlu1 %v2588_v23, %s2187_s4  ;;  %v384_v38 = vpop.permute.xlu0 %383 }
 0x117   : > { %v386_v39 = vpop.permute.xlu1 %385 }
 0x118   : > { %1299 = vrot.lane.b32.xlu0 %v2597_v28, %s2185_s29  ;;  %v391_v40 = vsel %vm387_vm5, %v384_v38, %v386_v39  ;;  %1950 = vmatprep.subr.bf16.mxu0 %v386_v39 }
 0x119   : > { %951 = vmatprep.subr.bf16.mxu1 %v391_v40  ;;  %1863 = vmatmul.mubr.msk.bf16.vlgmr.msra.gmra.mxu0 %vm688_vm2, %v2746_v13 }
 0x11a   : > { %1295 = vrot.lane.b32.xlu1 %v2604_v30, %s2185_s29  ;;  %1951 = vmatpush3.bf16.msra.mxu0 %v2606_v32  ;;  %v382_v41 = vpop.permute.xlu0 %381 }
 0x11b   : > { %v390_v42 = vsel %vm387_vm5, %v382_v41, %v384_v38  ;;  %v378_v43 = vpop.permute.xlu1 %377  ;;  %1030 = vmatprep.mubr.bf16.mxu0 %v2181_v5 }
 0x11c   : > { %1275 = vrot.lane.b32.xlu0 %v2614_v24, %s2187_s4  ;;  %952 = vmatpush2.bf16.msra.mxu1 %v390_v42 }
 0x11e   : > { %1293 = vrot.lane.b32.xlu1 %v2624_v37, %s2185_s29  ;;  %v380_v44 = vpop.permute.xlu0 %379 }
 0x11f   : > { %v376_v32 = vpop.permute.xlu1 %375  ;;  %1952 = vmatprep.subr.bf16.mxu0 %v380_v44  ;;  %v389_v46 = vsel %vm387_vm5, %v378_v43, %v380_v44 }
 0x120   : > { %v388_v47 = vsel %vm387_vm5, %v376_v32, %v378_v43  ;;  %1279 = vrot.lane.b32.xlu0 %v2583_v22, %s2187_s4  ;;  %953 = vmatprep.subr.bf16.mxu1 %v389_v46 }
 0x121   : > { %1953 = vmatpush3.bf16.msra.mxu0 %v2641_v31  ;;  %954 = vmatpush2.bf16.msra.mxu1 %v388_v47  ;;  %v1623_v47 = vld [vmem:[%s3068_s2 + $0x18] sm:$0xff] }
 0x122   : > { %1259 = vrot.lane.b32.xlu1 %v2588_v23, %s2188_s7  ;;  %v361_v48 = vpop.permute.xlu0 %360  ;;  %1864 = vmatmul.mubr.msk.bf16.gmra.mxu0 %vm688_vm2, %v2767_v45 }
 0x123   : > { %v363_v49 = vpop.permute.xlu1 %362  ;;  %1073 = vmatprep.mubr.bf16.mxu0 %v2619_v35 }
 0x124   : > { %1954 = vmatprep.subr.bf16.mxu0 %v363_v49  ;;  %1277 = vrot.lane.b32.xlu0 %v2597_v28, %s2187_s4  ;;  %v368_v50 = vsel %vm364_vm6, %v361_v48, %v363_v49 }
 0x125   : > { %955 = vmatprep.subr.bf16.mxu1 %v368_v50  ;;  %1955 = vmatpush3.bf16.msra.mxu0 %v2657_v52 }
 0x126   : > { %1273 = vrot.lane.b32.xlu1 %v2604_v30, %s2187_s4  ;;  %v359_v31 = vpop.permute.xlu0 %358 }
 0x127   : > { %v367_v51 = vsel %vm364_vm6, %v359_v31, %v361_v48  ;;  %v355_v53 = vpop.permute.xlu1 %354 }
 0x128   : > { %1253 = vrot.lane.b32.xlu0 %v2614_v24, %s2188_s7  ;;  %956 = vmatpush2.bf16.msra.mxu1 %v367_v51 }
 0x12a   : > { %1271 = vrot.lane.b32.xlu1 %v2624_v37, %s2187_s4  ;;  %v357_v35 = vpop.permute.xlu0 %356 }
 0x12b   : > { %v353_v54 = vpop.permute.xlu1 %352  ;;  %1956 = vmatprep.subr.bf16.mxu0 %v357_v35  ;;  %v366_v55 = vsel %vm364_vm6, %v355_v53, %v357_v35 }
 0x12c   : > { %v365_v52 = vsel %vm364_vm6, %v353_v54, %v355_v53  ;;  %1257 = vrot.lane.b32.xlu0 %v2583_v22, %s2188_s7  ;;  %957 = vmatprep.subr.bf16.mxu1 %v366_v55 }
 0x12d   : > { %1957 = vmatpush3.bf16.msra.mxu0 %v2677_v61  ;;  %958 = vmatpush2.bf16.msra.mxu1 %v365_v52 }
 0x12e   : > { %1255 = vrot.lane.b32.xlu1 %v2597_v28, %s2188_s7  ;;  %v338_v56 = vpop.permute.xlu0 %337 }
 0x12f   : > { %v340_v57 = vpop.permute.xlu1 %339 }
 0x130   : > { %1958 = vmatprep.subr.bf16.mxu0 %v340_v57  ;;  %1251 = vrot.lane.b32.xlu0 %v2604_v30, %s2188_s7  ;;  %v345_v58 = vsel %vm341_vm7, %v338_v56, %v340_v57 }
 0x131   : > { %959 = vmatprep.subr.bf16.mxu1 %v345_v58  ;;  %1959 = vmatpush3.bf16.msra.mxu0 %v2693_v17 }
 0x132   : > { %1249 = vrot.lane.b32.xlu1 %v2624_v37, %s2188_s7  ;;  %v336_v59 = vpop.permute.xlu0 %335 }
 0x133   : > { %v344_v60 = vsel %vm341_vm7, %v336_v59, %v338_v56  ;;  %v332_v61 = vpop.permute.xlu1 %331 }
 0x134   : > { %960 = vmatpush2.bf16.msra.mxu1 %v344_v60  ;;  %1626 = vperm.xlu0 %2090, %v1620_v11  }
 0x136   : > { %v334_v7 = vpop.permute.xlu0 %333 }
 0x137   : > { %v330_v62 = vpop.permute.xlu1 %329  ;;  %1960 = vmatprep.subr.bf16.mxu0 %v334_v7  ;;  %v343_v0 = vsel %vm341_vm7, %v332_v61, %v334_v7 }
 0x138   : > { %v342_v14 = vsel %vm341_vm7, %v330_v62, %v332_v61  ;;  %961 = vmatprep.subr.bf16.mxu1 %v343_v0  ;;  %1961 = vmatpush3.bf16.msra.mxu0 %v2708_v2  ;;  %v2126_v2 = vld [vmem:[%s3067_s1] ss:$12 sps:$4 sm:$0xff]  }
 0x139   : > { %962 = vmatpush2.bf16.msra.mxu1 %v342_v14  ;;  %1641 = vperm.xlu0 %2090, %v1623_v47  }
 0x13a   : > { %v315_v1 = vpop.permute.xlu0 %314 }
 0x13b   : > { %v317_v3 = vpop.permute.xlu1 %316 }
 0x13c   : > { %v322_v15 = vsel %vm318_vm8, %v315_v1, %v317_v3  ;;  %1962 = vmatprep.subr.bf16.mxu0 %v317_v3  ;;  %v2890_v3 = vld [vmem:[%s3067_s1 + $0x68] ss:$12 sps:$4 sm:$0xff]  }
 0x13d   : > { %963 = vmatprep.subr.bf16.mxu1 %v322_v15  ;;  %1963 = vmatpush3.bf16.msra.mxu0 %v2361_v9 }
 0x13e   : > { %v313_v6 = vpop.permute.xlu0 %312 }
 0x13f   : > { %v321_v17 = vsel %vm318_vm8, %v313_v6, %v315_v1  ;;  %v309_v63 = vpop.permute.xlu1 %308 }
 0x140   : > { %964 = vmatpush2.bf16.msra.mxu1 %v321_v17 }
 0x142   : > { %v311_v18 = vpop.permute.xlu0 %310 }
 0x143   : > { %v307_v19 = vpop.permute.xlu1 %306  ;;  %1964 = vmatprep.subr.bf16.mxu0 %v311_v18  ;;  %v320_v21 = vsel %vm318_vm8, %v309_v63, %v311_v18 }
 0x144   : > { %v319_v25 = vsel %vm318_vm8, %v307_v19, %v309_v63  ;;  %965 = vmatprep.subr.bf16.mxu1 %v320_v21  ;;  %1965 = vmatpush3.bf16.msra.mxu0 %v2380_v12 }
 0x145   : > { %966 = vmatpush2.bf16.msra.mxu1 %v319_v25  ;;  %2022 = vmatprep.subr.bf16.mxu0 %v2719_v27 }
 0x146   : > { %v1236_v9 = vpop.permute.xlu0 %1235 }
 0x147   : > { %v2820_v26 = vpop.permute.xlu1 %1237  ;;  %1074 = vmatmul.mubr.bf16.vlgmr.msra.gmra.mxu0 %v2126_v2 }
 0x148   : > { %968 = vmatmul.mubr.bf16.vlgmr.msra.gmra.mxu1 %v2126_v2  ;;  %2023 = vmatpush3.bf16.msra.mxu0 %v2719_v27  ;;  %v1242_v20 = vsel %vm295_vm1, %v1236_v9, %v2820_v26 }
 0x149   : > { %1404 = vmatprep.subr.bf16.mxu1 %v1242_v20  ;;  %2024 = vmatprep.subr.bf16.mxu0 %v2736_v34 }
 0x14a   : > { %v1234_v12 = vpop.permute.xlu0 %1233  ;;  %1081 = vmatprep.mubr.bf16.mxu0 %v2129_v4  ;;  %977 = vmatprep.mubr.bf16.mxu1 %v2129_v4 }
 0x14b   : > { %v1241_v29 = vsel %vm295_vm1, %v1234_v12, %v1236_v9  ;;  %v1230_v8 = vpop.permute.xlu1 %1229 }
 0x14c   : > { %2025 = vmatpush3.bf16.msra.mxu0 %v2736_v34  ;;  %1405 = vmatpush1.bf16.msra.mxu1 %v1241_v29  ;;  %v1621_v34 = vld [vmem:[%s3068_s2 + $0x8] sm:$0xff] }
 0x14d   : > { %1631 = vperm.xlu1 %2091, %v1621_v34  }
 0x14e   : > { %v2831_v27 = vpop.permute.xlu0 %1231 }
 0x14f   : > { %1082 = vmatmul.mubr.bf16.gmra.mxu0 %v2131_v16  ;;  %v1240_v33 = vsel %vm295_vm1, %v1230_v8, %v2831_v27 }
 0x150   : > { %v1228_v36 = vpop.permute.xlu1 %1227  ;;  %978 = vmatmul.mubr.bf16.gmra.mxu1 %v2131_v16  ;;  %1406 = vmatprep.subr.bf16.mxu1 %v1240_v33 }
 0x151   : > { %v1239_v38 = vsel %vm295_vm1, %v1228_v36, %v1230_v8  ;;  %2026 = vmatprep.mubr.msk.bf16.mxu0 %vm688_vm2, %v2746_v13  ;;  %1436 = vmatprep.mubr.bf16.mxu1 %v2838_v10  ;;  %v1622_v13 = vld [vmem:[%s3068_s2 + $0x10] sm:$0xff] }
 0x152   : > { %1407 = vmatpush1.bf16.msra.mxu1 %v1239_v38  ;;  %v1214_v39 = vpop.permute.xlu0 %1213  ;;  %1636 = vperm.xlu1 %2091, %v1622_v13  }
 0x154   : > { %v2850_v40 = vpop.permute.xlu1 %1215 }
 0x155   : > { %v1220_v41 = vsel %vm272_vm3, %v1214_v39, %v2850_v40 }
 0x156   : > { %1408 = vmatprep.subr.bf16.mxu1 %v1220_v41  ;;  %v1212_v42 = vpop.permute.xlu0 %1211  ;;  %v2134_v41 = vld [vmem:[%s3067_s1 + $0x60] ss:$12 sps:$4 sm:$0xff]  }
 0x157   : > { %v1219_v43 = vsel %vm272_vm3, %v1212_v42, %v1214_v39  ;;  %2027 = vmatmul.mubr.msk.bf16.vlgmr.msra.gmra.mxu0 %vm688_vm2, %v2767_v45 }
 0x158   : > { %v1208_v44 = vpop.permute.xlu1 %1207  ;;  %1409 = vmatpush1.bf16.msra.mxu1 %v1219_v43  ;;  %1489 = vmatprep.mubr.bf16.mxu0 %v2181_v5 }
 0x15a   : > { %v2861_v32 = vpop.permute.xlu0 %1209 }
 0x15b   : > { %v1218_v46 = vsel %vm272_vm3, %v1208_v44, %v2861_v32 }
 0x15c   : > { %v1206_v48 = vpop.permute.xlu1 %1205  ;;  %1410 = vmatprep.subr.bf16.mxu1 %v1218_v46 }
 0x15d   : > { %v1217_v45 = vsel %vm272_vm3, %v1206_v48, %v1208_v44  ;;  %v2139_v48 = vld [vmem:[%s3067_s1 + $0x78] ss:$12 sps:$4 sm:$0xff]  }
 0x15e   : > { %1411 = vmatpush1.bf16.msra.mxu1 %v1217_v45  ;;  %v1192_v49 = vpop.permute.xlu0 %1191 }
 0x160   : > { %v2869_v50 = vpop.permute.xlu1 %1193 }
 0x161   : > { %v1198_v31 = vsel %vm249_vm4, %v1192_v49, %v2869_v50 }
 0x162   : > { %1412 = vmatprep.subr.bf16.mxu1 %v1198_v31  ;;  %v1346_v51 = vpop.permute.xlu0 %1345 }
 0x164   : > { %v2873_v53 = vpop.permute.xlu1 %1347 }
 0x165   : > { %v1352_v35 = vsel %vm410_vm0, %v1346_v51, %v2873_v53 }
 0x166   : > { %1469 = vmatprep.subr.bf16.mxu0 %v1352_v35  ;;  %v1190_v54 = vpop.permute.xlu0 %1189 }
 0x167   : > { %v1197_v55 = vsel %vm249_vm4, %v1190_v54, %v1192_v49 }
 0x168   : > { %v1344_v52 = vpop.permute.xlu1 %1343  ;;  %1413 = vmatpush1.bf16.msra.mxu1 %v1197_v55 }
 0x169   : > { %v1351_v56 = vsel %vm410_vm0, %v1344_v52, %v1346_v51 }
 0x16a   : > { %1470 = vmatpush1.bf16.msra.mxu0 %v1351_v56  ;;  %v1186_v57 = vpop.permute.xlu0 %1185 }
 0x16c   : > { %v1188_v58 = vpop.permute.xlu1 %1187 }
 0x16d   : > { %v1196_v59 = vsel %vm249_vm4, %v1186_v57, %v1188_v58 }
 0x16e   : > { %1414 = vmatprep.subr.bf16.mxu1 %v1196_v59  ;;  %v1340_v60 = vpop.permute.xlu0 %1339 }
 0x170   : > { %v2880_v61 = vpop.permute.xlu1 %1341 }
 0x171   : > { %v1350_v7 = vsel %vm410_vm0, %v1340_v60, %v2880_v61 }
 0x172   : > { %1471 = vmatprep.subr.bf16.mxu0 %v1350_v7  ;;  %v1184_v62 = vpop.permute.xlu0 %1183 }
 0x173   : > { %v1195_v0 = vsel %vm249_vm4, %v1184_v62, %v1186_v57 }
 0x174   : > { %v1338_v14 = vpop.permute.xlu1 %1337  ;;  %1415 = vmatpush1.bf16.msra.mxu1 %v1195_v0 }
 0x175   : > { %v1349_v1 = vsel %vm410_vm0, %v1338_v14, %v1340_v60  ;;  %1416 = vmatprep.subr.bf16.mxu1 %v2583_v22 }
 0x176   : > { %1472 = vmatpush1.bf16.msra.mxu0 %v1349_v1  ;;  %v1326_v15 = vpop.permute.xlu0 %1325 }
 0x177   : > { %1982 = vmatprep.subr.bf16.mxu0 %v1326_v15 }
 0x178   : > { %v1320_v6 = vpop.permute.xlu1 %1319  ;;  %1417 = vmatpush1.bf16.msra.mxu1 %v2597_v28  ;;  %v2903_v28 = vld [vmem:[%s3067_s1 + $0x80] ss:$12 sps:$4 sm:$0xff]  }
 0x179   : > { %1895 = vmatmul.mubr.msk.bf16.vlgmr.msra.gmra.mxu0 %vm688_vm2, %v2890_v3  ;;  %1418 = vmatprep.subr.bf16.mxu1 %v2604_v30 }
 0x17a   : > { %1983 = vmatpush3.bf16.msra.mxu0 %v2820_v26  ;;  %v1324_v17 = vpop.permute.xlu0 %1323  ;;  %1499 = vmatprep.mubr.bf16.mxu0 %v2181_v5 }
 0x17b   : > { %1984 = vmatprep.subr.bf16.mxu0 %v1320_v6  ;;  %v1330_v22 = vsel %vm387_vm5, %v1324_v17, %v1326_v15 }
 0x17c   : > { %v1304_v63 = vpop.permute.xlu1 %1303  ;;  %1419 = vmatpush1.bf16.msra.mxu1 %v2624_v37 }
 0x17d   : > { %1420 = vmatprep.subr.bf16.mxu1 %v1330_v22 }
 0x17e   : > { %1985 = vmatpush3.bf16.msra.mxu0 %v2831_v27  ;;  %v1322_v30 = vpop.permute.xlu0 %1321 }
 0x17f   : > { %1986 = vmatprep.subr.bf16.mxu0 %v1304_v63  ;;  %v1329_v18 = vsel %vm387_vm5, %v1322_v30, %v1324_v17 }
 0x180   : > { %v1318_v19 = vpop.permute.xlu1 %1317  ;;  %1421 = vmatpush2.bf16.msra.mxu1 %v1329_v18 }
 0x181   : > { %v1328_v5 = vsel %vm387_vm5, %v1318_v19, %v1320_v6  ;;  %1896 = vmatmul.mubr.msk.bf16.gmra.mxu0 %vm688_vm2, %v2903_v28 }
 0x182   : > { %1987 = vmatpush3.bf16.msra.mxu0 %v2850_v40  ;;  %1422 = vmatprep.subr.bf16.mxu1 %v1328_v5  ;;  %v1298_v37 = vpop.permute.xlu0 %1297 }
 0x183   : > { %1988 = vmatprep.subr.bf16.mxu0 %v1298_v37  ;;  %1542 = vmatprep.mubr.bf16.mxu0 %v2838_v10 }
 0x184   : > { %v1316_v21 = vpop.permute.xlu1 %1315 }
 0x185   : > { %v1327_v2 = vsel %vm387_vm5, %v1316_v21, %v1318_v19 }
 0x186   : > { %1423 = vmatpush2.bf16.msra.mxu1 %v1327_v2  ;;  %1989 = vmatpush3.bf16.msra.mxu0 %v2861_v32  ;;  %v1302_v25 = vpop.permute.xlu0 %1301 }
 0x187   : > { %v1308_v9 = vsel %vm364_vm6, %v1302_v25, %v1304_v63 }
 0x188   : > { %v1282_v4 = vpop.permute.xlu1 %1281  ;;  %1424 = vmatprep.subr.bf16.mxu1 %v1308_v9 }
 0x189   : > { %1990 = vmatprep.subr.bf16.mxu0 %v1282_v4 }
 0x18a   : > { %1991 = vmatpush3.bf16.msra.mxu0 %v2869_v50  ;;  %v1300_v26 = vpop.permute.xlu0 %1299  ;;  %v782_v50 = vpop.f32.mrf.mxu1 }
 0x18b   : > { %v1307_v20 = vsel %vm364_vm6, %v1300_v26, %v1302_v25 }
 0x18c   : > { %v1296_v12 = vpop.permute.xlu1 %1295  ;;  %1425 = vmatpush2.bf16.msra.mxu1 %v1307_v20  ;;  %v784_v31 = vpop.f32.mrf.mxu1 }
 0x18d   : > { %v1306_v29 = vsel %vm364_vm6, %v1296_v12, %v1298_v37 }
 0x18e   : > { %1426 = vmatprep.subr.bf16.mxu1 %v1306_v29  ;;  %v1276_v16 = vpop.permute.xlu0 %1275  ;;  %v786_v51 = vpop.f32.mrf.mxu1 }
 0x18f   : > { %1992 = vmatprep.subr.bf16.mxu0 %v1276_v16 }
 0x190   : > { %v1294_v8 = vpop.permute.xlu1 %1293  ;;  %1993 = vmatpush3.bf16.msra.mxu0 %v1188_v58 }
 0x191   : > { %v1305_v27 = vsel %vm364_vm6, %v1294_v8, %v1296_v12 }
 0x192   : > { %1427 = vmatpush2.bf16.msra.mxu1 %v1305_v27  ;;  %v1280_v33 = vpop.permute.xlu0 %1279 }
 0x193   : > { %v1286_v10 = vsel %vm341_vm7, %v1280_v33, %v1282_v4 }
 0x194   : > { %v1260_v36 = vpop.permute.xlu1 %1259  ;;  %1428 = vmatprep.subr.bf16.mxu1 %v1286_v10 }
 0x195   : > { %1994 = vmatprep.subr.bf16.mxu0 %v1260_v36 }
 0x196   : > { %v1278_v11 = vpop.permute.xlu0 %1277  ;;  %1995 = vmatpush3.bf16.msra.mxu0 %v2588_v23  ;;  %v2137_v23 = vld [vmem:[%s3067_s1 + $0x7c] ss:$12 sps:$4 sm:$0xff]  }
 0x197   : > { %v1285_v34 = vsel %vm341_vm7, %v1278_v11, %v1280_v33 }
 0x198   : > { %v1274_v38 = vpop.permute.xlu1 %1273  ;;  %1429 = vmatpush2.bf16.msra.mxu1 %v1285_v34 }
 0x199   : > { %v1284_v39 = vsel %vm341_vm7, %v1274_v38, %v1276_v16 }
 0x19a   : > { %1430 = vmatprep.subr.bf16.mxu1 %v1284_v39  ;;  %v1254_v40 = vpop.permute.xlu0 %1253 }
 0x19b   : > { %1996 = vmatprep.subr.bf16.mxu0 %v1254_v40 }
 0x19c   : > { %v1272_v42 = vpop.permute.xlu1 %1271  ;;  %1997 = vmatpush3.bf16.msra.mxu0 %v2614_v24 }
 0x19d   : > { %v1283_v43 = vsel %vm341_vm7, %v1272_v42, %v1274_v38  ;;  %2030 = vmatprep.subr.bf16.mxu0 %v2873_v53 }
 0x19e   : > { %1431 = vmatpush2.bf16.msra.mxu1 %v1283_v43  ;;  %v1258_v44 = vpop.permute.xlu0 %1257 }
 0x19f   : > { %1543 = vmatmul.mubr.bf16.vlgmr.msra.gmra.mxu0 %v2134_v41  ;;  %v1264_v13 = vsel %vm318_vm8, %v1258_v44, %v1260_v36 }
 0x1a0   : > { %v1256_v32 = vpop.permute.xlu1 %1255  ;;  %1432 = vmatprep.subr.bf16.mxu1 %v1264_v13  ;;  %2031 = vmatpush3.bf16.msra.mxu0 %v2873_v53  ;;  %v788_v53 = vpop.f32.mrf.mxu1 }
 0x1a1   : > { %v1263_v46 = vsel %vm318_vm8, %v1256_v32, %v1258_v44  ;;  %2032 = vmatprep.subr.bf16.mxu0 %v2880_v61  ;;  %1550 = vmatprep.mubr.bf16.mxu0 %v2137_v23 }
 0x1a2   : > { %1433 = vmatpush2.bf16.msra.mxu1 %v1263_v46  ;;  %v1252_v24 = vpop.permute.xlu0 %1251  ;;  %v792_v35 = vpop.f32.mrf.mxu1 }
 0x1a3   : > { %v1262_v47 = vsel %vm318_vm8, %v1252_v24, %v1254_v40 }
 0x1a4   : > { %v1250_v45 = vpop.permute.xlu1 %1249  ;;  %1434 = vmatprep.subr.bf16.mxu1 %v1262_v47  ;;  %2033 = vmatpush3.bf16.msra.mxu0 %v2880_v61  ;;  %v794_v54 = vpop.f32.mrf.mxu1 }
 0x1a5   : > { %v1261_v49 = vsel %vm318_vm8, %v1250_v45, %v1252_v24 }
 0x1a6   : > { %1435 = vmatpush2.bf16.msra.mxu1 %v1261_v49  ;;  %v796_v55 = vpop.f32.mrf.mxu1 }
 0x1a7   : > { %1551 = vmatmul.mubr.bf16.gmra.mxu0 %v2139_v48 }
 0x1a8   : > { %2034 = vmatprep.mubr.msk.bf16.mxu0 %vm688_vm2, %v2890_v3  ;;  %v798_v52 = vpop.f32.mrf.mxu1 }
 0x1a9   : > { %1437 = vmatmul.mubr.bf16.vlgmr.msra.gmra.mxu1 %v2134_v41 }
 0x1aa   : > { %1446 = vmatprep.mubr.bf16.mxu1 %v2137_v23  ;;  %v2946_v57 = vpop.f32.mrf.mxu1 }
 0x1ac   : > { %v2948_v59 = vpop.f32.mrf.mxu1 }
 0x1ae   : > { %v2950_v61 = vpop.f32.mrf.mxu1 }
 0x1af   : > { %2035 = vmatmul.mubr.msk.bf16.vlgmr.msra.gmra.mxu0 %vm688_vm2, %v2903_v28 }
 0x1b0   : > { %v2952_v62 = vpop.f32.mrf.mxu1 }
 0x1b1   : > { %1447 = vmatmul.mubr.bf16.gmra.mxu1 %v2139_v48 }
 0x1b2   : > { %v2954_v14 = vpop.f32.mrf.mxu1 }
 0x1b4   : > { %v2956_v3 = vpop.f32.mrf.mxu1 }
 0x1b6   : > { %v2958_v6 = vpop.f32.mrf.mxu1 }
 0x1b8   : > { %v2960_v63 = vpop.f32.mrf.mxu1 }
 0x1ba   : > { %v2962_v30 = vpop.f32.mrf.mxu1 }
 0x1bc   : > { %v2964_v19 = vpop.f32.mrf.mxu1 }
 0x1be   : > { %v2966_v37 = vpop.f32.mrf.mxu1 }
 0x1c0   : > { %v729_v56 = vpop.f32.mrf.mxu0  ;;  %v2968_v2 = vpop.f32.mrf.mxu1 }
 0x1c1   : > { %v783_v25 = vadd.f32 %v782_v50, %v729_v56 }
 0x1c2   : > { %v731_v58 = vpop.f32.mrf.mxu0 }
 0x1c3   : > { %v785_v4 = vadd.f32 %v784_v31, %v731_v58 }
 0x1c4   : > { %v733_v60 = vpop.f32.mrf.mxu0 }
 0x1c5   : > { %v787_v29 = vadd.f32 %v786_v51, %v733_v60 }
 0x1c6   : > { %v735_v7 = vpop.f32.mrf.mxu0 }
 0x1c7   : > { %v789_v33 = vadd.f32 %v788_v53, %v735_v7 }
 0x1c9   : > { %v739_v0 = vpop.f32.mrf.mxu0 }
 0x1ca   : > { %v793_v38 = vadd.f32 %v792_v35, %v739_v0 }
 0x1cb   : > { %v741_v1 = vpop.f32.mrf.mxu0 }
 0x1cc   : > { %v795_v42 = vadd.f32 %v794_v54, %v741_v1 }
 0x1cd   : > { %v743_v15 = vpop.f32.mrf.mxu0 }
 0x1ce   : > { %v797_v32 = vadd.f32 %v796_v55, %v743_v15 }
 0x1cf   : > { %v745_v17 = vpop.f32.mrf.mxu0 }
 0x1d0   : > { %v799_v48 = vadd.f32 %v798_v52, %v745_v17 }
 0x1d9   : > { %v1022_v22 = vpop.f32.mrf.mxu0 }
 0x1db   : > { %v1024_v28 = vpop.f32.mrf.mxu0 }
 0x1dd   : > { %v1026_v18 = vpop.f32.mrf.mxu0 }
 0x1df   : > { %v1028_v5 = vpop.f32.mrf.mxu0 }
 0x1e2   : > { %v1032_v21 = vpop.f32.mrf.mxu0 }
 0x1e4   : > { %v1034_v26 = vpop.f32.mrf.mxu0 }
 0x1e6   : > { %v1036_v10 = vpop.f32.mrf.mxu0 }
 0x1e8   : > { %v1038_v43 = vpop.f32.mrf.mxu0 }
 0x207   : > { %v1966_v45 = vpop.f32.mrf.mxu0 }
 0x208   : > { %v969_v9 = vpop.f32.mrf.mxu1 }
 0x209   : > { %v970_v20 = vadd.f32 %v969_v9, %v783_v25  ;;  %v1967_v35 = vpop.f32.mrf.mxu0 }
 0x20a   : > { %v971_v12 = vpop.f32.mrf.mxu1 }
 0x20b   : > { %v2970_v16 = vadd.f32 %v1022_v22, %v970_v20  ;;  %v972_v8 = vadd.f32 %v971_v12, %v785_v4  ;;  %v1969_v56 = vpop.f32.mrf.mxu0 }
 0x20c   : > { %v973_v27 = vpop.f32.mrf.mxu1 }
 0x20d   : > { %v2972_v36 = vadd.f32 %v1024_v28, %v972_v8  ;;  %v974_v11 = vadd.f32 %v973_v27, %v787_v29  ;;  %v1970_v58 = vpop.f32.mrf.mxu0  ;;  %v1936_v8 = vadd.f32 %v2948_v59, %v2946_v57  ;;  %v1942_v27 = vadd.f32 %v2956_v3, %v2954_v14 }
 0x20e   : > { %v975_v34 = vpop.f32.mrf.mxu1  ;;  %v1971_v14 = vadd.f32 %v1970_v58, %v1969_v56 }
 0x20f   : > { %v2974_v39 = vadd.f32 %v1026_v18, %v974_v11  ;;  %v976_v40 = vadd.f32 %v975_v34, %v789_v33  ;;  %v1972_v60 = vpop.f32.mrf.mxu0  ;;  %v1939_v11 = vadd.f32 %v2952_v62, %v2950_v61  ;;  %v1968_v34 = vadd.f32 %v1967_v35, %v1966_v45 }
 0x210   : > { %v979_v41 = vpop.f32.mrf.mxu1  ;;  %v893_v57 = vadd.f32 %v2962_v30, %v1942_v27  ;;  %v885_v59 = vadd.f32 %v1936_v8, %v2964_v19 }
 0x211   : > { %v2976_v23 = vadd.f32 %v1028_v5, %v976_v40  ;;  %v980_v44 = vadd.f32 %v979_v41, %v793_v38  ;;  %v1973_v55 = vpop.f32.mrf.mxu0 }
 0x212   : > { %v981_v13 = vpop.f32.mrf.mxu1  ;;  %v1974_v38 = vadd.f32 %v1973_v55, %v1972_v60 }
 0x213   : > { %v2978_v46 = vadd.f32 %v1032_v21, %v980_v44  ;;  %v982_v24 = vadd.f32 %v981_v13, %v795_v42  ;;  %v1975_v7 = vpop.f32.mrf.mxu0  ;;  %v3005_v44 = vpop.permute.xlu0 %1626 }
 0x214   : > { %v983_v47 = vpop.f32.mrf.mxu1  ;;  %v3011_v13 = vpop.permute.xlu1 %1631 }
 0x215   : > { %v2980_v49 = vadd.f32 %v1034_v26, %v982_v24  ;;  %v984_v50 = vadd.f32 %v983_v47, %v797_v32  ;;  %v1976_v0 = vpop.f32.mrf.mxu0  ;;  %v888_v32 = vadd.f32 %v1939_v11, %v2968_v2  ;;  %v1084_v24 = vadd.f32 %v1974_v38, %v893_v57 }
 0x216   : > { %v985_v31 = vpop.f32.mrf.mxu1  ;;  %v1977_v42 = vadd.f32 %v1976_v0, %v1975_v7  ;;  %v1076_v47 = vadd.f32 %v1968_v34, %v885_v59 }
 0x217   : > { %v2982_v51 = vadd.f32 %v1036_v10, %v984_v50  ;;  %v986_v53 = vadd.f32 %v985_v31, %v799_v48  ;;  %v2028_v1 = vpop.f32.mrf.mxu0  ;;  %v1945_v10 = vadd.f32 %v2960_v63, %v2958_v6 }
 0x218   : > { %v1133_v31 = vadd.f32 %v2028_v1, %v1084_v24 }
 0x219   : > { %v2984_v54 = vadd.f32 %v1038_v43, %v986_v53  ;;  %v1124_v52 = vpop.f32.mrf.mxu0  ;;  %v896_v63 = vadd.f32 %v2966_v37, %v1945_v10  ;;  %v1079_v53 = vadd.f32 %v1971_v14, %v888_v32 }
 0x21b   : > { %v2029_v15 = vpop.f32.mrf.mxu0  ;;  %v1087_v19 = vadd.f32 %v1977_v42, %v896_v63 }
 0x21d   : > { %v1127_v17 = vpop.f32.mrf.mxu0  ;;  %v1136_v2 = vadd.f32 %v2029_v15, %v1087_v19  ;;  %v1637_v15 = vpop.permute.xlu1 %1636 }
 0x21e   : > { %v1128_v0 = vadd.f32 %v1127_v17, %v1079_v53 }
 0x239   : > { %v1491_v22 = vpop.f32.mrf.mxu0 }
 0x23b   : > { %v1493_v28 = vpop.f32.mrf.mxu0 }
 0x23d   : > { %v1495_v18 = vpop.f32.mrf.mxu0 }
 0x23f   : > { %v1497_v5 = vpop.f32.mrf.mxu0 }
 0x241   : > { %v2986_v21 = vpop.f32.mrf.mxu0 }
 0x243   : > { %v2988_v25 = vpop.f32.mrf.mxu0 }
 0x245   : > { %v2990_v9 = vpop.f32.mrf.mxu0 }
 0x247   : > { %v2992_v4 = vpop.f32.mrf.mxu0 }
 0x25f   : > { %v1998_v26 = vpop.f32.mrf.mxu0 }
 0x261   : > { %v1999_v20 = vpop.f32.mrf.mxu0 }
 0x263   : > { %v2001_v12 = vpop.f32.mrf.mxu0 }
 0x265   : > { %v2002_v29 = vpop.f32.mrf.mxu0 }
 0x266   : > { %v2003_v10 = vadd.f32 %v2002_v29, %v2001_v12 }
 0x267   : > { %v2004_v33 = vpop.f32.mrf.mxu0 }
 0x269   : > { %v1438_v40 = vpop.f32.mrf.mxu1  ;;  %v2005_v41 = vpop.f32.mrf.mxu0 }
 0x26a   : > { %v1492_v43 = vadd.f32 %v1491_v22, %v1438_v40  ;;  %v2006_v35 = vadd.f32 %v2005_v41, %v2004_v33  ;;  %v2000_v22 = vadd.f32 %v1999_v20, %v1998_v26 }
 0x26b   : > { %v1440_v3 = vpop.f32.mrf.mxu1  ;;  %v2007_v6 = vpop.f32.mrf.mxu0 }
 0x26c   : > { %v1608_v61 = vadd.f32 %v1492_v43, %v2970_v16  ;;  %v1494_v62 = vadd.f32 %v1493_v28, %v1440_v3  ;;  %v1125_v16 = vadd.f32 %v1124_v52, %v1076_v47  ;;  %v1642_v3 = vpop.permute.xlu0 %1641 }
 0x26d   : > { %v1442_v30 = vpop.f32.mrf.mxu1  ;;  %v2008_v48 = vpop.f32.mrf.mxu0 }
 0x26e   : > { %v1609_v45 = vadd.f32 %v1494_v62, %v2972_v36  ;;  %v1644_v50 = vadd.f32 %v3005_v44, %v1608_v61  ;;  %v1496_v37 = vadd.f32 %v1495_v18, %v1442_v30 }
 0x26f   : > { %v1444_v56 = vpop.f32.mrf.mxu1  ;;  %v2036_v58 = vpop.f32.mrf.mxu0 }
 0x270   : > { %v1645_v60 = vadd.f32 %v3005_v44, %v1609_v45  ;;  %v1611_v55 = vadd.f32 %v1496_v37, %v2974_v39  ;;  %v1498_v7 = vadd.f32 %v1497_v5, %v1444_v56  ;;  %v1656_v28 = vmax.f32 %v1644_v50, 0.0 }
 0x271   : > { %v1602_v36 = vadd.f32 %v2036_v58, %v2006_v35  ;;  %v1448_v8 = vpop.f32.mrf.mxu1  ;;  %v1593_v27 = vpop.f32.mrf.mxu0  ;;  %v2009_v39 = vadd.f32 %v2008_v48, %v2007_v6 }
 0x272   : > { %v1657_v18 = vmax.f32 %v1645_v60, 0.0  ;;  %v1612_v1 = vadd.f32 %v1498_v7, %v2976_v23  ;;  %v1647_v52 = vadd.f32 %v3011_v13, %v1611_v55  ;;  %v1502_v33 = vadd.f32 %v2986_v21, %v1448_v8 }
 0x273   : > { %v1616_v17 = vadd.f32 %v1602_v36, %v1133_v31  ;;  %v1594_v5 = vadd.f32 %v2000_v22, %v1593_v27  ;;  %v1450_v26 = vpop.f32.mrf.mxu1  ;;  %v2037_v20 = vpop.f32.mrf.mxu0 }
 0x274   : > { %v1910_v11 = vpack.c.bf16 %v1657_v18, %v1656_v28  ;;  %v1648_v23 = vadd.f32 %v3011_v13, %v1612_v1  ;;  %v1659_v34 = vmax.f32 %v1647_v52, 0.0  ;;  %v1614_v38 = vadd.f32 %v1502_v33, %v2978_v46 }
 0x275   : > { %v1610_v21 = vadd.f32 %v1594_v5, %v1125_v16  ;;  %v1504_v12 = vadd.f32 %v2988_v25, %v1450_v26  ;;  %v1605_v29 = vadd.f32 %v2037_v20, %v2009_v39  ;;  %v1652_v40 = vadd.f32 %v1637_v15, %v1616_v17  ;;  %v1452_v41 = vpop.f32.mrf.mxu1  ;;  %v1596_v42 = vpop.f32.mrf.mxu0 }
 0x276   : > { %1708 = vst [vmem:[%s3027_s21] sm:$0xff] %v1910_v11  ;;  %v1660_v43 = vmax.f32 %v1648_v23, 0.0  ;;  %v1650_v57 = vadd.f32 %v1637_v15, %v1614_v38  ;;  %v1506_v59 = vadd.f32 %v2990_v9, %v1452_v41  ;;  %v1597_v14 = vadd.f32 %v2003_v10, %v1596_v42 }
 0x277   : > { %v1646_v6 = vadd.f32 %v3005_v44, %v1610_v21  ;;  %v1615_v63 = vadd.f32 %v1504_v12, %v2980_v49  ;;  %v1619_v46 = vadd.f32 %v1605_v29, %v1136_v2  ;;  %v1664_v61 = vmax.f32 %v1652_v40, 0.0  ;;  %v1454_v25 = vpop.f32.mrf.mxu1 }
 0x278   : > { %v1912_v62 = vpack.c.bf16 %v1660_v43, %v1659_v34  ;;  %v1617_v32 = vadd.f32 %v1506_v59, %v2982_v51  ;;  %v1613_v24 = vadd.f32 %v1597_v14, %v1128_v0  ;;  %v1508_v49 = vadd.f32 %v2992_v4, %v1454_v25 }
 0x279   : > { %v1658_v47 = vmax.f32 %v1646_v6, 0.0  ;;  %v1651_v30 = vadd.f32 %v1637_v15, %v1615_v63  ;;  %v1915_v9 = vpack.c.bf16 %v1664_v61, %v1664_v61  ;;  %v1655_v48 = vadd.f32 %v1642_v3, %v1619_v46 }
 0x27a   : > { %1711 = vst [vmem:[%s3027_s21 + $0xc] sm:$0xff] %v1912_v62  ;;  %v1649_v44 = vadd.f32 %v3011_v13, %v1613_v24  ;;  %v1662_v45 = vmax.f32 %v1650_v57, 0.0  ;;  %v1653_v31 = vadd.f32 %v1642_v3, %v1617_v32  ;;  %v1618_v16 = vadd.f32 %v1508_v49, %v2984_v54 }
 0x27b   : > { %v1911_v19 = vpack.c.bf16 %v1658_v47, %v1658_v47  ;;  %v1663_v50 = vmax.f32 %v1651_v30, 0.0  ;;  %1714 = vst.msk [vmem:[%s3027_s21 + $0x20] sm:$0xf] %vm1709_vm9, %v1915_v9  ;;  %v1667_v51 = vmax.f32 %v1655_v48, 0.0 }
 0x27c   : > { %v1661_v37 = vmax.f32 %v1649_v44, 0.0  ;;  %v1654_v56 = vadd.f32 %v1642_v3, %v1618_v16  ;;  %v1665_v4 = vmax.f32 %v1653_v31, 0.0 }
 0x27d   : > { %1710 = vst.msk [vmem:[%s3027_s21 + $0x8] sm:$0xf] %vm1709_vm9, %v1911_v19  ;;  %v1914_v53 = vpack.c.bf16 %v1663_v50, %v1662_v45  ;;  %v1917_v35 = vpack.c.bf16 %v1667_v51, %v1667_v51 }
 0x27e   : > { %v1913_v13 = vpack.c.bf16 %v1661_v37, %v1661_v37  ;;  %v1666_v58 = vmax.f32 %v1654_v56, 0.0 }
 0x27f   : > { %1713 = vst [vmem:[%s3027_s21 + $0x18] sm:$0xff] %v1914_v53  ;;  %1716 = vst.msk [vmem:[%s3027_s21 + $0x2c] sm:$0xf] %vm1709_vm9, %v1917_v35 }
 0x280   : > { %1712 = vst.msk [vmem:[%s3027_s21 + $0x14] sm:$0xf] %vm1709_vm9, %v1913_v13  ;;  %v1916_v2 = vpack.c.bf16 %v1666_v58, %v1665_v4 }
 0x282   : > { %1715 = vst [vmem:[%s3027_s21 + $0x24] sm:$0xff] %v1916_v2 }
 0x283 PF: > { %s13_s16 = sadd.s32 1, %s2178_s16   ;;  %s3070_s12 = smov %s2170_s14 }
 0x284   : > { %p10_p7 = scmp.ge.s32.totalorder %s13_s16, 18   ;;  %s3071_s13 = smov %s2174_s15 }
 0x285   : > { %s3072_s14 = smov %s3075_s17  ;;  %s3073_s15 = smov %s3079_s18 }
 0x286   :  { %12 = sbr.rel (!%p10_p7) target bundleno = 3 (0x3), region = 67 }

// kernel: basic_matcher_forward.11
= control target key start
LH: loop header
LB: loop body
LE: loop exit
PB: predicated region body
PF: predicated region fallthrough
CT: control target
= control target key end

     0   :  { %s2317_s15 = smov 0   ;;  %s2319_s16 = smov 0   ;;  %s3236_s0 = inlined_call_operand.vmem [shape: bf16[2,10,32,374], index: 0, kind: input, shape index: {}]   ;;  %s3237_s1 = inlined_call_operand.vmem [shape: bf16[3,32,288], index: 1, kind: input, shape index: {}]   ;;  %s3238_s2 = inlined_call_operand.vmem [shape: f32[32,1], index: 2, kind: input, shape index: {}]   ;;  %s3239_s3 = inlined_call_operand.vmem [shape: bf16[2,8,32,272], index: 3, kind: input, shape index: {}]   ;;  %s3240_s4 = inlined_call_operand.vmem [shape: bf16[2,8,32,272], index: 4, kind: output, shape index: {}]  }
   0x1   :  { %s2321_s17 = smov 0   ;;  %s2323_s18 = smov 0  }
   0x2   :  { %s2325_s19 = smov 0  }
   0x3 LB: > { %s23_s20 = sadd.s32 1, %s2273_s17  ;;  %s26_s21 = sadd.s32 1, %s2277_s18  ;;  %s2281_s19 = sphi %s2325_s19, %s14_s19   ;;  %s2277_s18 = sphi %s2323_s18, %s3244_s18   ;;  %s2273_s17 = sphi %s2321_s17, %s3243_s17   ;;  %s2269_s16 = sphi %s2319_s16, %s3242_s16   ;;  %s2265_s15 = sphi %s2317_s15, %s3241_s15  }
   0x4   : > { %p24_p0 = scmp.ge.s32.totalorder %s23_s20, 8  ;;  %p1917_p1 = scmp.ge.s32.totalorder %s2281_s19, 1 }
   0x5   : > { %p192_p2 = scmp.lt.s32.totalorder %s2281_s19, 17 }
   0x6   : > { %s3246_s20 = smov (%p24_p0, %s23_s20), 0  ;;  %s3248_s21 = smov (!%p24_p0, %s26_s21), %s2277_s18 }
   0x7   : > { %p193_p3 = pnand %p1917_p1, %p192_p2  ;;  %p28_p4 = scmp.ge.s32.totalorder %s3248_s21, 2 }
   0x8   : > { %p231_p5 = scmp.lt.s32.totalorder (!%p193_p3), %s2269_s16, 1  ;;  %s2012_s22 = smul.u32 (!%p193_p3), 48, %s2265_s15 }
   0x9   : > { %s3250_s21 = smov (%p28_p4, %s3248_s21), 0  ;;  %196 = sbr.rel (%p193_p3) target bundleno = 645 (0x285), region = 36 }
   0xa   : > { %s2283_s28 = smov (!%p193_p3), 58   ;;  %s2285_s29 = smov (!%p193_p3), 94  }
   0xb   : > { %s2286_s30 = smov (!%p193_p3), 59   ;;  %s2287_s5 = smov (!%p193_p3), 126  }
   0xc   : > { %s2288_s6 = smov (!%p193_p3), 60   ;;  %s2289_s7 = smov (!%p193_p3), 127  }
   0xd   : > { %s2290_s8 = smov (!%p193_p3), 92   ;;  %s2291_s11 = smov (!%p193_p3), 93  }
   0xe   : > { %s3252_s16 = smov (!%p231_p5, %s2269_s16), 1  ;;  %v2284_v5 = vmov 0   ;;  %v2438_v7 = vld [vmem:[%s3237_s1 + $0x34] ss:$12 sps:$4 sm:$0xff]   ;;  %vm471_vm0 = vcmask 474112   ;;  %vm356_vm1 = vcmask 769024  }
   0xf   : > { %s2141_s23 = smul.u32 480, %s3252_s16  ;;  %841 = vmatprep.mubr.bf16.mxu1 %v2284_v5  ;;  %2193 = vset.pattern.permute.xlu0 %v2284_v5  ;;  %v2542_v24 = vld [vmem:[%s3237_s1 + $0x38] ss:$12 sps:$4 sm:$0xff]   ;;  %vm749_vm2 = vcmask 261120   ;;  %v2563_v31 = vld [vmem:[%s3237_s1 + $0x50] ss:$12 sps:$4 sm:$0xff]  }
  0x10   : > { %2194 = vset.pattern.permute.xlu1 %v2284_v5  ;;  %788 = vmatprep.mubr.bf16.mxu0 %v2438_v7  ;;  %vm333_vm3 = vcmask 1031168   ;;  %vm310_vm4 = vcmask 1039360   ;;  %vm448_vm5 = vcmask 482304   ;;  %vm425_vm6 = vcmask 490496   ;;  %p238_p6 = scmp.lt.s32.totalorder %s2265_s15, 7  ;;  %s2143_s24 = smul.u32 96, %s3252_s16 }
  0x11   : > { %s235_s26 = scalar_lea.vmem %s3236_s0, %s2141_s23  ;;  %vm402_vm7 = vcmask 752640   ;;  %vm379_vm8 = vcmask 760832   ;;  %vm1790_vm9 = vcmask 125952  }
  0x12   : > { %s2356_s27 = scalar_lea.vmem %s235_s26, %s2012_s22  ;;  %s3254_s15 = smov (!%p238_p6, %s2265_s15), 7 }
  0x13   : > { %v2359_v0 = vld [vmem:[%s2356_s27 + $0x4c] ss:$12 sps:$4 sm:$0xff]   ;;  %v2362_v1 = vld [vmem:[%s2356_s27 + $0x48] ss:$12 sps:$4 sm:$0xff]   ;;  %v2367_v2 = vld [vmem:[%s2356_s27 + $0x50] ss:$12 sps:$4 sm:$0xff]  }
  0x14   : > { %696 = vrot.lane.b32.xlu0 %v2359_v0, %s2283_s28  ;;  %694 = vrot.lane.b32.xlu1 %v2362_v1, %s2283_s28  ;;  %v2372_v3 = vld [vmem:[%s2356_s27 + $0x34] ss:$12 sps:$4 sm:$0xff]   ;;  %v2377_v4 = vld [vmem:[%s2356_s27 + $0x38] ss:$12 sps:$4 sm:$0xff]   ;;  %s2142_s23 = smul.u32 12, %s3254_s15 }
  0x15   : > { %v2383_v6 = vld [vmem:[%s2356_s27 + $0x30] ss:$12 sps:$4 sm:$0xff]   ;;  %v2469_v9 = vld [vmem:[%s2356_s27 + $0x20] ss:$12 sps:$4 sm:$0xff]   ;;  %v2474_v10 = vld [vmem:[%s2356_s27 + $0x18] ss:$12 sps:$4 sm:$0xff]  }
  0x16   : > { %v2464_v8 = vld [vmem:[%s2356_s27 + $0x1c] ss:$12 sps:$4 sm:$0xff]   ;;  %v2483_v11 = vld [vmem:[%s2356_s27 + $0x4] ss:$12 sps:$4 sm:$0xff]   ;;  %v2493_v13 = vld [vmem:[%s2356_s27] ss:$12 sps:$4 sm:$0xff]   ;;  %s3115_s25 = sadd.s32 %s2143_s24, %s2142_s23 }
  0x17   : > { %v2488_v12 = vld [vmem:[%s2356_s27 + $0x8] ss:$12 sps:$4 sm:$0xff]   ;;  %s1919_s26 = sshll.u32 %s3115_s25, 2 }
  0x18   : > { %698 = vrot.lane.b32.xlu0 %v2367_v2, %s2283_s28  ;;  %690 = vrot.lane.b32.xlu1 %v2372_v3, %s2283_s28  ;;  %s3129_s9 = scalar_lea.vmem %s3239_s3, %s1919_s26  ;;  %s3185_s13 = scalar_lea.vmem %s3240_s4, %s1919_s26 }
  0x1c   : > { %692 = vrot.lane.b32.xlu0 %v2377_v4, %s2283_s28  ;;  %688 = vrot.lane.b32.xlu1 %v2383_v6, %s2283_s28 }
  0x20   : > { %586 = vrot.lane.b32.xlu0 %v2359_v0, %s2285_s29  ;;  %588 = vrot.lane.b32.xlu1 %v2367_v2, %s2285_s29 }
  0x24   : > { %676 = vrot.lane.b32.xlu0 %v2367_v2, %s2286_s30  ;;  %584 = vrot.lane.b32.xlu1 %v2362_v1, %s2285_s29 }
  0x28   : > { %580 = vrot.lane.b32.xlu0 %v2372_v3, %s2285_s29  ;;  %582 = vrot.lane.b32.xlu1 %v2377_v4, %s2285_s29 }
  0x2c   : > { %670 = vrot.lane.b32.xlu0 %v2377_v4, %s2286_s30  ;;  %578 = vrot.lane.b32.xlu1 %v2383_v6, %s2285_s29 }
  0x30   : > { %564 = vrot.lane.b32.xlu0 %v2359_v0, %s2287_s5  ;;  %566 = vrot.lane.b32.xlu1 %v2367_v2, %s2287_s5 }
  0x34   : > { %654 = vrot.lane.b32.xlu0 %v2367_v2, %s2288_s6  ;;  %562 = vrot.lane.b32.xlu1 %v2362_v1, %s2287_s5 }
  0x38   : > { %558 = vrot.lane.b32.xlu0 %v2372_v3, %s2287_s5  ;;  %560 = vrot.lane.b32.xlu1 %v2377_v4, %s2287_s5 }
  0x3c   : > { %648 = vrot.lane.b32.xlu0 %v2377_v4, %s2288_s6  ;;  %556 = vrot.lane.b32.xlu1 %v2383_v6, %s2287_s5 }
  0x40   : > { %542 = vrot.lane.b32.xlu0 %v2359_v0, %s2289_s7  ;;  %544 = vrot.lane.b32.xlu1 %v2367_v2, %s2289_s7 }
  0x44   : > { %632 = vrot.lane.b32.xlu0 %v2367_v2, %s2290_s8  ;;  %540 = vrot.lane.b32.xlu1 %v2362_v1, %s2289_s7 }
  0x48   : > { %536 = vrot.lane.b32.xlu0 %v2372_v3, %s2289_s7  ;;  %538 = vrot.lane.b32.xlu1 %v2377_v4, %s2289_s7 }
  0x4c   : > { %626 = vrot.lane.b32.xlu0 %v2377_v4, %s2290_s8  ;;  %534 = vrot.lane.b32.xlu1 %v2383_v6, %s2289_s7 }
  0x50   : > { %610 = vrot.lane.b32.xlu0 %v2367_v2, %s2291_s11  ;;  %604 = vrot.lane.b32.xlu1 %v2377_v4, %s2291_s11 }
  0x54   : > { %674 = vrot.lane.b32.xlu0 %v2359_v0, %s2286_s30  ;;  %672 = vrot.lane.b32.xlu1 %v2362_v1, %s2286_s30 }
  0x58   : > { %668 = vrot.lane.b32.xlu0 %v2372_v3, %s2286_s30  ;;  %666 = vrot.lane.b32.xlu1 %v2383_v6, %s2286_s30 }
  0x5c   : > { %652 = vrot.lane.b32.xlu0 %v2359_v0, %s2288_s6  ;;  %650 = vrot.lane.b32.xlu1 %v2362_v1, %s2288_s6 }
  0x60   : > { %646 = vrot.lane.b32.xlu0 %v2372_v3, %s2288_s6  ;;  %644 = vrot.lane.b32.xlu1 %v2383_v6, %s2288_s6 }
  0x64   : > { %352 = vrot.lane.b32.xlu0 %v2464_v8, %s2285_s29  ;;  %354 = vrot.lane.b32.xlu1 %v2469_v9, %s2285_s29 }
  0x68   : > { %350 = vrot.lane.b32.xlu0 %v2474_v10, %s2285_s29  ;;  %630 = vrot.lane.b32.xlu1 %v2359_v0, %s2290_s8 }
  0x6c   : > { %628 = vrot.lane.b32.xlu0 %v2362_v1, %s2290_s8  ;;  %346 = vrot.lane.b32.xlu1 %v2483_v11, %s2285_s29 }
  0x70   : > { %348 = vrot.lane.b32.xlu0 %v2488_v12, %s2285_s29  ;;  %344 = vrot.lane.b32.xlu1 %v2493_v13, %s2285_s29 }
  0x74   : > { %624 = vrot.lane.b32.xlu0 %v2372_v3, %s2290_s8  ;;  %622 = vrot.lane.b32.xlu1 %v2383_v6, %s2290_s8 }
  0x78   : > { %329 = vrot.lane.b32.xlu0 %v2464_v8, %s2287_s5  ;;  %331 = vrot.lane.b32.xlu1 %v2469_v9, %s2287_s5 }
  0x7c   : > { %327 = vrot.lane.b32.xlu0 %v2474_v10, %s2287_s5  ;;  %608 = vrot.lane.b32.xlu1 %v2359_v0, %s2291_s11 }
  0x80   : > { %606 = vrot.lane.b32.xlu0 %v2362_v1, %s2291_s11  ;;  %323 = vrot.lane.b32.xlu1 %v2483_v11, %s2287_s5 }
  0x84   : > { %325 = vrot.lane.b32.xlu0 %v2488_v12, %s2287_s5  ;;  %321 = vrot.lane.b32.xlu1 %v2493_v13, %s2287_s5 }
  0x86   : > { %v697_v14 = vpop.permute.xlu0 %696  ;;  %v695_v15 = vpop.permute.xlu1 %694 }
  0x87   : > { %v702_v19 = vsel %vm471_vm0, %v695_v15, %v697_v14 }
  0x88   : > { %602 = vrot.lane.b32.xlu0 %v2372_v3, %s2291_s11  ;;  %600 = vrot.lane.b32.xlu1 %v2383_v6, %s2291_s11 }
  0x8a   : > { %v2523_v16 = vpop.permute.xlu0 %698  ;;  %v691_v17 = vpop.permute.xlu1 %690 }
  0x8b   : > { %v703_v18 = vsel %vm471_vm0, %v697_v14, %v2523_v16 }
  0x8c   : > { %821 = vmatprep.subr.bf16.mxu1 %v703_v18  ;;  %306 = vrot.lane.b32.xlu0 %v2464_v8, %s2289_s7 }
  0x8d   : > { %308 = vrot.lane.b32.xlu1 %v2469_v9, %s2289_s7  ;;  %822 = vmatpush1.bf16.msra.mxu1 %v702_v19 }
  0x8e   : > { %v2532_v20 = vpop.permute.xlu0 %692  ;;  %v689_v21 = vpop.permute.xlu1 %688 }
  0x8f   : > { %v701_v22 = vsel %vm471_vm0, %v691_v17, %v2532_v20  ;;  %v700_v23 = vsel %vm471_vm0, %v689_v21, %v691_v17 }
  0x90   : > { %823 = vmatprep.subr.bf16.mxu1 %v701_v22  ;;  %304 = vrot.lane.b32.xlu0 %v2474_v10, %s2289_s7  ;;  %v2691_v22 = vld [vmem:[%s2356_s27 + $0x7c] ss:$12 sps:$4 sm:$0xff]  }
  0x91   : > { %300 = vrot.lane.b32.xlu1 %v2483_v11, %s2289_s7  ;;  %824 = vmatpush1.bf16.msra.mxu1 %v700_v23  ;;  %v2696_v23 = vld [vmem:[%s2356_s27 + $0x80] ss:$12 sps:$4 sm:$0xff]  }
  0x92   : > { %v587_v25 = vpop.permute.xlu0 %586  ;;  %v589_v26 = vpop.permute.xlu1 %588 }
  0x93   : > { %v593_v27 = vsel %vm356_vm1, %v587_v25, %v589_v26 }
  0x94   : > { %302 = vrot.lane.b32.xlu0 %v2488_v12, %s2289_s7  ;;  %1956 = vmatmul.mubr.msk.bf16.vlgmr.msra.gmra.mxu1 %vm749_vm2, %v2542_v24 }
  0x95   : > { %756 = vmatprep.subr.bf16.mxu0 %v593_v27  ;;  %298 = vrot.lane.b32.xlu1 %v2493_v13, %s2289_s7 }
  0x96   : > { %v2553_v28 = vpop.permute.xlu0 %676  ;;  %851 = vmatprep.mubr.bf16.mxu1 %v2284_v5  ;;  %v585_v29 = vpop.permute.xlu1 %584 }
  0x97   : > { %2021 = vmatprep.subr.bf16.mxu1 %v2553_v28  ;;  %v592_v30 = vsel %vm356_vm1, %v585_v29, %v587_v25 }
  0x98   : > { %2022 = vmatpush3.bf16.msra.mxu1 %v589_v26  ;;  %467 = vrot.lane.b32.xlu0 %v2464_v8, %s2283_s28 }
  0x99   : > { %757 = vmatpush1.bf16.msra.mxu0 %v592_v30  ;;  %469 = vrot.lane.b32.xlu1 %v2469_v9, %s2283_s28  ;;  %v2712_v30 = vld [vmem:[%s2356_s27 + $0x64] ss:$12 sps:$4 sm:$0xff]  }
  0x9a   : > { %v581_v32 = vpop.permute.xlu0 %580  ;;  %v583_v33 = vpop.permute.xlu1 %582 }
  0x9b   : > { %v591_v34 = vsel %vm356_vm1, %v581_v32, %v583_v33 }
  0x9c   : > { %465 = vrot.lane.b32.xlu0 %v2474_v10, %s2283_s28  ;;  %1957 = vmatmul.mubr.msk.bf16.gmra.mxu1 %vm749_vm2, %v2563_v31 }
  0x9d   : > { %758 = vmatprep.subr.bf16.mxu0 %v591_v34  ;;  %461 = vrot.lane.b32.xlu1 %v2483_v11, %s2283_s28 }
  0x9e   : > { %v2574_v35 = vpop.permute.xlu0 %670  ;;  %894 = vmatprep.mubr.bf16.mxu1 %v2438_v7  ;;  %v579_v36 = vpop.permute.xlu1 %578 }
  0x9f   : > { %2023 = vmatprep.subr.bf16.mxu1 %v2574_v35  ;;  %v590_v37 = vsel %vm356_vm1, %v579_v36, %v581_v32 }
  0xa0   : > { %2024 = vmatpush3.bf16.msra.mxu1 %v583_v33  ;;  %463 = vrot.lane.b32.xlu0 %v2488_v12, %s2283_s28 }
  0xa1   : > { %759 = vmatpush1.bf16.msra.mxu0 %v590_v37  ;;  %459 = vrot.lane.b32.xlu1 %v2493_v13, %s2283_s28  ;;  %v2732_v37 = vld [vmem:[%s2356_s27 + $0x60] ss:$12 sps:$4 sm:$0xff]  }
  0xa2   : > { %v565_v38 = vpop.permute.xlu0 %564  ;;  %v567_v39 = vpop.permute.xlu1 %566 }
  0xa3   : > { %v571_v40 = vsel %vm333_vm3, %v565_v38, %v567_v39 }
  0xa4   : > { %444 = vrot.lane.b32.xlu0 %v2464_v8, %s2286_s30  ;;  %760 = vmatprep.subr.bf16.mxu0 %v571_v40 }
  0xa5   : > { %446 = vrot.lane.b32.xlu1 %v2469_v9, %s2286_s30 }
  0xa6   : > { %v2588_v41 = vpop.permute.xlu0 %654  ;;  %v563_v42 = vpop.permute.xlu1 %562 }
  0xa7   : > { %2025 = vmatprep.subr.bf16.mxu1 %v2588_v41  ;;  %v570_v43 = vsel %vm333_vm3, %v563_v42, %v565_v38 }
  0xa8   : > { %2026 = vmatpush3.bf16.msra.mxu1 %v567_v39  ;;  %442 = vrot.lane.b32.xlu0 %v2474_v10, %s2286_s30 }
  0xa9   : > { %761 = vmatpush1.bf16.msra.mxu0 %v570_v43  ;;  %438 = vrot.lane.b32.xlu1 %v2483_v11, %s2286_s30 }
  0xaa   : > { %v559_v44 = vpop.permute.xlu0 %558  ;;  %v561_v45 = vpop.permute.xlu1 %560 }
  0xab   : > { %v569_v46 = vsel %vm333_vm3, %v559_v44, %v561_v45 }
  0xac   : > { %440 = vrot.lane.b32.xlu0 %v2488_v12, %s2286_s30  ;;  %762 = vmatprep.subr.bf16.mxu0 %v569_v46 }
  0xad   : > { %436 = vrot.lane.b32.xlu1 %v2493_v13, %s2286_s30 }
  0xae   : > { %v2601_v47 = vpop.permute.xlu0 %648  ;;  %v557_v48 = vpop.permute.xlu1 %556 }
  0xaf   : > { %2027 = vmatprep.subr.bf16.mxu1 %v2601_v47  ;;  %v568_v49 = vsel %vm333_vm3, %v557_v48, %v559_v44 }
  0xb0   : > { %2028 = vmatpush3.bf16.msra.mxu1 %v561_v45  ;;  %421 = vrot.lane.b32.xlu0 %v2464_v8, %s2288_s6 }
  0xb1   : > { %763 = vmatpush1.bf16.msra.mxu0 %v568_v49  ;;  %423 = vrot.lane.b32.xlu1 %v2469_v9, %s2288_s6 }
  0xb2   : > { %v543_v50 = vpop.permute.xlu0 %542  ;;  %v545_v51 = vpop.permute.xlu1 %544 }
  0xb3   : > { %v549_v52 = vsel %vm310_vm4, %v543_v50, %v545_v51 }
  0xb4   : > { %419 = vrot.lane.b32.xlu0 %v2474_v10, %s2288_s6  ;;  %764 = vmatprep.subr.bf16.mxu0 %v549_v52 }
  0xb5   : > { %415 = vrot.lane.b32.xlu1 %v2483_v11, %s2288_s6 }
  0xb6   : > { %v2614_v53 = vpop.permute.xlu0 %632  ;;  %v541_v54 = vpop.permute.xlu1 %540 }
  0xb7   : > { %2029 = vmatprep.subr.bf16.mxu1 %v2614_v53  ;;  %v548_v55 = vsel %vm310_vm4, %v541_v54, %v543_v50 }
  0xb8   : > { %2030 = vmatpush3.bf16.msra.mxu1 %v545_v51  ;;  %417 = vrot.lane.b32.xlu0 %v2488_v12, %s2288_s6 }
  0xb9   : > { %765 = vmatpush1.bf16.msra.mxu0 %v548_v55  ;;  %413 = vrot.lane.b32.xlu1 %v2493_v13, %s2288_s6 }
  0xba   : > { %v537_v56 = vpop.permute.xlu0 %536  ;;  %v539_v57 = vpop.permute.xlu1 %538 }
  0xbb   : > { %v547_v58 = vsel %vm310_vm4, %v537_v56, %v539_v57 }
  0xbc   : > { %398 = vrot.lane.b32.xlu0 %v2464_v8, %s2290_s8  ;;  %766 = vmatprep.subr.bf16.mxu0 %v547_v58 }
  0xbd   : > { %400 = vrot.lane.b32.xlu1 %v2469_v9, %s2290_s8 }
  0xbe   : > { %v2627_v59 = vpop.permute.xlu0 %626  ;;  %v535_v60 = vpop.permute.xlu1 %534 }
  0xbf   : > { %2031 = vmatprep.subr.bf16.mxu1 %v2627_v59  ;;  %v546_v61 = vsel %vm310_vm4, %v535_v60, %v537_v56 }
  0xc0   : > { %2032 = vmatpush3.bf16.msra.mxu1 %v539_v57  ;;  %396 = vrot.lane.b32.xlu0 %v2474_v10, %s2290_s8 }
  0xc1   : > { %767 = vmatpush1.bf16.msra.mxu0 %v546_v61  ;;  %392 = vrot.lane.b32.xlu1 %v2483_v11, %s2290_s8 }
  0xc2   : > { %v2635_v62 = vpop.permute.xlu0 %610  ;;  %768 = vmatprep.subr.bf16.mxu0 %v2359_v0  ;;  %v2638_v63 = vpop.permute.xlu1 %604 }
  0xc3   : > { %2033 = vmatprep.subr.bf16.mxu1 %v2635_v62 }
  0xc4   : > { %2034 = vmatpush3.bf16.msra.mxu1 %v2367_v2  ;;  %394 = vrot.lane.b32.xlu0 %v2488_v12, %s2290_s8  ;;  %v2654_v2 = vld [vmem:[%s3237_s1 + $0x30] ss:$12 sps:$4 sm:$0xff]  }
  0xc5   : > { %769 = vmatpush1.bf16.msra.mxu0 %v2362_v1  ;;  %390 = vrot.lane.b32.xlu1 %v2493_v13, %s2290_s8 }
  0xc6   : > { %2035 = vmatprep.subr.bf16.mxu1 %v2638_v63  ;;  %v675_v7 = vpop.permute.xlu0 %674  ;;  %770 = vmatprep.subr.bf16.mxu0 %v2372_v3  ;;  %v673_v0 = vpop.permute.xlu1 %672 }
  0xc7   : > { %v681_v14 = vsel %vm448_vm5, %v675_v7, %v2553_v28  ;;  %v2705_v28 = vld [vmem:[%s2356_s27 + $0x78] ss:$12 sps:$4 sm:$0xff]  }
  0xc8   : > { %2036 = vmatpush3.bf16.msra.mxu1 %v2377_v4  ;;  %375 = vrot.lane.b32.xlu0 %v2464_v8, %s2291_s11  ;;  %v2669_v4 = vld [vmem:[%s3237_s1 + $0x4c] ss:$12 sps:$4 sm:$0xff]  }
  0xc9   : > { %771 = vmatpush1.bf16.msra.mxu0 %v2383_v6  ;;  %377 = vrot.lane.b32.xlu1 %v2469_v9, %s2291_s11  ;;  %v680_v6 = vsel %vm448_vm5, %v673_v0, %v675_v7 }
  0xca   : > { %772 = vmatprep.subr.bf16.mxu0 %v681_v14  ;;  %2117 = vmatprep.subr.bf16.mxu1 %v2523_v16  ;;  %v669_v1 = vpop.permute.xlu0 %668  ;;  %v667_v3 = vpop.permute.xlu1 %666 }
  0xcb   : > { %895 = vmatmul.mubr.bf16.vlgmr.msra.gmra.mxu1 %v2654_v2  ;;  %v679_v15 = vsel %vm448_vm5, %v669_v1, %v2574_v35  ;;  %v678_v21 = vsel %vm448_vm5, %v667_v3, %v669_v1  ;;  %v2727_v35 = vld [vmem:[%s3237_s1 + $0x4] ss:$12 sps:$4 sm:$0xff]  }
  0xcc   : > { %2118 = vmatpush3.bf16.msra.mxu1 %v2523_v16  ;;  %373 = vrot.lane.b32.xlu0 %v2474_v10, %s2291_s11  ;;  %v2684_v16 = vld [vmem:[%s3237_s1 + $0x48] ss:$12 sps:$4 sm:$0xff]  }
  0xcd   : > { %773 = vmatpush2.bf16.msra.mxu0 %v680_v6  ;;  %369 = vrot.lane.b32.xlu1 %v2483_v11, %s2291_s11 }
  0xce   : > { %774 = vmatprep.subr.bf16.mxu0 %v679_v15  ;;  %2119 = vmatprep.subr.bf16.mxu1 %v2532_v20  ;;  %v653_v17 = vpop.permute.xlu0 %652  ;;  %v651_v18 = vpop.permute.xlu1 %650 }
  0xcf   : > { %v659_v19 = vsel %vm425_vm6, %v653_v17, %v2588_v41  ;;  %902 = vmatprep.mubr.bf16.mxu1 %v2669_v4  ;;  %v658_v27 = vsel %vm425_vm6, %v651_v18, %v653_v17 }
  0xd0   : > { %2120 = vmatpush3.bf16.msra.mxu1 %v2532_v20  ;;  %371 = vrot.lane.b32.xlu0 %v2488_v12, %s2291_s11 }
  0xd1   : > { %775 = vmatpush2.bf16.msra.mxu0 %v678_v21  ;;  %367 = vrot.lane.b32.xlu1 %v2493_v13, %s2291_s11 }
  0xd2   : > { %776 = vmatprep.subr.bf16.mxu0 %v659_v19  ;;  %v647_v25 = vpop.permute.xlu0 %646  ;;  %v645_v26 = vpop.permute.xlu1 %644 }
  0xd3   : > { %903 = vmatmul.mubr.bf16.gmra.mxu1 %v2684_v16  ;;  %v657_v20 = vsel %vm425_vm6, %v647_v25, %v2601_v47  ;;  %v656_v33 = vsel %vm425_vm6, %v645_v26, %v647_v25 }
  0xd4   : > { %1296 = vrot.lane.b32.xlu0 %v2691_v22, %s2285_s29  ;;  %2121 = vmatprep.mubr.msk.bf16.mxu1 %vm749_vm2, %v2542_v24  ;;  %v2722_v24 = vld [vmem:[%s2356_s27 + $0x68] ss:$12 sps:$4 sm:$0xff]  }
  0xd5   : > { %777 = vmatpush2.bf16.msra.mxu0 %v658_v27  ;;  %1298 = vrot.lane.b32.xlu1 %v2696_v23, %s2285_s29 }
  0xd6   : > { %778 = vmatprep.subr.bf16.mxu0 %v657_v20  ;;  %v353_v29 = vpop.permute.xlu0 %352  ;;  %v2714_v32 = vpop.permute.xlu1 %354 }
  0xd7   : > { %v360_v34 = vsel %vm356_vm1, %v353_v29, %v2714_v32 }
  0xd8   : > { %1294 = vrot.lane.b32.xlu0 %v2705_v28, %s2285_s29  ;;  %996 = vmatprep.subr.bf16.mxu1 %v360_v34 }
  0xd9   : > { %779 = vmatpush2.bf16.msra.mxu0 %v656_v33  ;;  %1290 = vrot.lane.b32.xlu1 %v2712_v30, %s2285_s29 }
  0xda   : > { %v351_v36 = vpop.permute.xlu0 %350  ;;  %v631_v38 = vpop.permute.xlu1 %630 }
  0xdb   : > { %v359_v39 = vsel %vm356_vm1, %v351_v36, %v353_v29  ;;  %2122 = vmatmul.mubr.msk.bf16.vlgmr.msra.gmra.mxu1 %vm749_vm2, %v2563_v31  ;;  %v637_v40 = vsel %vm402_vm7, %v631_v38, %v2614_v53 }
  0xdc   : > { %997 = vmatpush1.bf16.msra.mxu1 %v359_v39  ;;  %1292 = vrot.lane.b32.xlu0 %v2722_v24, %s2285_s29 }
  0xdd   : > { %780 = vmatprep.subr.bf16.mxu0 %v637_v40  ;;  %1028 = vmatprep.mubr.bf16.mxu1 %v2727_v35 }
  0xde   : > { %1288 = vrot.lane.b32.xlu1 %v2732_v37, %s2285_s29  ;;  %v629_v41 = vpop.permute.xlu0 %628  ;;  %v347_v42 = vpop.permute.xlu1 %346 }
  0xdf   : > { %v636_v43 = vsel %vm402_vm7, %v629_v41, %v631_v38 }
  0xe0   : > { %781 = vmatpush2.bf16.msra.mxu0 %v636_v43  ;;  %1274 = vrot.lane.b32.xlu0 %v2691_v22, %s2287_s5 }
  0xe2   : > { %1276 = vrot.lane.b32.xlu1 %v2696_v23, %s2287_s5  ;;  %v2749_v31 = vpop.permute.xlu0 %348  ;;  %v345_v44 = vpop.permute.xlu1 %344 }
  0xe3   : > { %v358_v45 = vsel %vm356_vm1, %v347_v42, %v2749_v31  ;;  %v357_v46 = vsel %vm356_vm1, %v345_v44, %v347_v42 }
  0xe4   : > { %1272 = vrot.lane.b32.xlu0 %v2705_v28, %s2287_s5  ;;  %998 = vmatprep.subr.bf16.mxu1 %v358_v45  ;;  %v2875_v45 = vld [vmem:[%s3237_s1 + $0x20] ss:$12 sps:$4 sm:$0xff]  }
  0xe5   : > { %999 = vmatpush1.bf16.msra.mxu1 %v357_v46 }
  0xe6   : > { %1268 = vrot.lane.b32.xlu1 %v2712_v30, %s2287_s5  ;;  %v625_v47 = vpop.permute.xlu0 %624  ;;  %v623_v48 = vpop.permute.xlu1 %622 }
  0xe7   : > { %v635_v49 = vsel %vm402_vm7, %v625_v47, %v2627_v59  ;;  %v634_v50 = vsel %vm402_vm7, %v623_v48, %v625_v47 }
  0xe8   : > { %1270 = vrot.lane.b32.xlu0 %v2722_v24, %s2287_s5  ;;  %782 = vmatprep.subr.bf16.mxu0 %v635_v49 }
  0xe9   : > { %783 = vmatpush2.bf16.msra.mxu0 %v634_v50 }
  0xea   : > { %1266 = vrot.lane.b32.xlu1 %v2732_v37, %s2287_s5  ;;  %v330_v51 = vpop.permute.xlu0 %329  ;;  %v2765_v52 = vpop.permute.xlu1 %331 }
  0xeb   : > { %v337_v53 = vsel %vm333_vm3, %v330_v51, %v2765_v52 }
  0xec   : > { %1252 = vrot.lane.b32.xlu0 %v2691_v22, %s2289_s7  ;;  %1000 = vmatprep.subr.bf16.mxu1 %v337_v53 }
  0xee   : > { %1254 = vrot.lane.b32.xlu1 %v2696_v23, %s2289_s7  ;;  %v328_v54 = vpop.permute.xlu0 %327  ;;  %v609_v56 = vpop.permute.xlu1 %608 }
  0xef   : > { %v336_v55 = vsel %vm333_vm3, %v328_v54, %v330_v51  ;;  %v615_v57 = vsel %vm379_vm8, %v609_v56, %v2635_v62 }
  0xf0   : > { %1406 = vrot.lane.b32.xlu0 %v2691_v22, %s2283_s28  ;;  %1001 = vmatpush1.bf16.msra.mxu1 %v336_v55 }
  0xf1   : > { %784 = vmatprep.subr.bf16.mxu0 %v615_v57 }
  0xf2   : > { %1408 = vrot.lane.b32.xlu1 %v2696_v23, %s2283_s28  ;;  %v607_v58 = vpop.permute.xlu0 %606  ;;  %v324_v59 = vpop.permute.xlu1 %323 }
  0xf3   : > { %v614_v60 = vsel %vm379_vm8, %v607_v58, %v609_v56 }
  0xf4   : > { %1250 = vrot.lane.b32.xlu0 %v2705_v28, %s2289_s7  ;;  %785 = vmatpush2.bf16.msra.mxu0 %v614_v60 }
  0xf6   : > { %1404 = vrot.lane.b32.xlu1 %v2705_v28, %s2283_s28  ;;  %v2785_v61 = vpop.permute.xlu0 %325  ;;  %v322_v7 = vpop.permute.xlu1 %321 }
  0xf7   : > { %v335_v62 = vsel %vm333_vm3, %v324_v59, %v2785_v61  ;;  %v334_v0 = vsel %vm333_vm3, %v322_v7, %v324_v59 }
  0xf8   : > { %1246 = vrot.lane.b32.xlu0 %v2712_v30, %s2289_s7  ;;  %1002 = vmatprep.subr.bf16.mxu1 %v335_v62 }
  0xf9   : > { %1003 = vmatpush1.bf16.msra.mxu1 %v334_v0 }
  0xfa   : > { %1248 = vrot.lane.b32.xlu1 %v2722_v24, %s2289_s7  ;;  %v603_v14 = vpop.permute.xlu0 %602  ;;  %v601_v1 = vpop.permute.xlu1 %600 }
  0xfb   : > { %v613_v3 = vsel %vm379_vm8, %v603_v14, %v2638_v63  ;;  %v612_v15 = vsel %vm379_vm8, %v601_v1, %v603_v14 }
  0xfc   : > { %1400 = vrot.lane.b32.xlu0 %v2712_v30, %s2283_s28  ;;  %786 = vmatprep.subr.bf16.mxu0 %v613_v3 }
  0xfd   : > { %787 = vmatpush2.bf16.msra.mxu0 %v612_v15 }
  0xfe   : > { %1402 = vrot.lane.b32.xlu1 %v2722_v24, %s2283_s28  ;;  %v307_v6 = vpop.permute.xlu0 %306 }
  0xff   : > { %v2801_v17 = vpop.permute.xlu1 %308 }
 0x100   : > { %1244 = vrot.lane.b32.xlu0 %v2732_v37, %s2289_s7  ;;  %789 = vmatmul.mubr.bf16.vlgmr.msra.gmra.mxu0 %v2654_v2  ;;  %v314_v63 = vsel %vm310_vm4, %v307_v6, %v2801_v17 }
 0x101   : > { %1004 = vmatprep.subr.bf16.mxu1 %v314_v63  ;;  %798 = vmatprep.mubr.bf16.mxu0 %v2669_v4 }
 0x102   : > { %1398 = vrot.lane.b32.xlu1 %v2732_v37, %s2283_s28  ;;  %v305_v18 = vpop.permute.xlu0 %304 }
 0x103   : > { %v313_v19 = vsel %vm310_vm4, %v305_v18, %v307_v6  ;;  %v301_v21 = vpop.permute.xlu1 %300 }
 0x104   : > { %1386 = vrot.lane.b32.xlu0 %v2696_v23, %s2286_s30  ;;  %1005 = vmatpush1.bf16.msra.mxu1 %v313_v19 }
 0x106   : > { %1380 = vrot.lane.b32.xlu1 %v2722_v24, %s2286_s30  ;;  %v2816_v2 = vpop.permute.xlu0 %302 }
 0x107   : > { %v299_v25 = vpop.permute.xlu1 %298  ;;  %v312_v4 = vsel %vm310_vm4, %v301_v21, %v2816_v2 }
 0x108   : > { %v311_v26 = vsel %vm310_vm4, %v299_v25, %v301_v21  ;;  %1384 = vrot.lane.b32.xlu0 %v2691_v22, %s2286_s30  ;;  %1006 = vmatprep.subr.bf16.mxu1 %v312_v4  ;;  %v2232_v4 = vld [vmem:[%s3237_s1 + $0x1c] ss:$12 sps:$4 sm:$0xff]  }
 0x109   : > { %1007 = vmatpush1.bf16.msra.mxu1 %v311_v26  ;;  %799 = vmatmul.mubr.bf16.gmra.mxu0 %v2684_v16 }
 0x10a   : > { %1364 = vrot.lane.b32.xlu1 %v2696_v23, %s2288_s6  ;;  %v468_v20 = vpop.permute.xlu0 %467  ;;  %1008 = vmatprep.subr.bf16.mxu1 %v2464_v8 }
 0x10b   : > { %v2827_v27 = vpop.permute.xlu1 %469  ;;  %1081 = vmatprep.mubr.bf16.mxu0 %v2284_v5 }
 0x10c   : > { %1382 = vrot.lane.b32.xlu0 %v2705_v28, %s2286_s30  ;;  %v475_v29 = vsel %vm471_vm0, %v468_v20, %v2827_v27 }
 0x10d   : > { %1061 = vmatprep.subr.bf16.mxu0 %v475_v29  ;;  %1009 = vmatpush1.bf16.msra.mxu1 %v2474_v10 }
 0x10e   : > { %1378 = vrot.lane.b32.xlu1 %v2712_v30, %s2286_s30  ;;  %v466_v16 = vpop.permute.xlu0 %465  ;;  %1010 = vmatprep.subr.bf16.mxu1 %v2483_v11 }
 0x10f   : > { %v474_v8 = vsel %vm471_vm0, %v466_v16, %v468_v20  ;;  %v462_v33 = vpop.permute.xlu1 %461  ;;  %v2234_v16 = vld [vmem:[%s3237_s1 + $0x18] ss:$12 sps:$4 sm:$0xff]  }
 0x110   : > { %1358 = vrot.lane.b32.xlu0 %v2722_v24, %s2288_s6  ;;  %1062 = vmatpush1.bf16.msra.mxu0 %v474_v8 }
 0x111   : > { %1011 = vmatpush1.bf16.msra.mxu1 %v2493_v13  ;;  %v2854_v13 = vld [vmem:[%s3237_s1 + $0x8] ss:$12 sps:$4 sm:$0xff]  }
 0x112   : > { %1376 = vrot.lane.b32.xlu1 %v2732_v37, %s2286_s30  ;;  %v2844_v34 = vpop.permute.xlu0 %463 }
 0x113   : > { %v460_v10 = vpop.permute.xlu1 %459  ;;  %v473_v36 = vsel %vm471_vm0, %v462_v33, %v2844_v34 }
 0x114   : > { %v472_v11 = vsel %vm471_vm0, %v460_v10, %v462_v33  ;;  %1362 = vrot.lane.b32.xlu0 %v2691_v22, %s2288_s6  ;;  %1063 = vmatprep.subr.bf16.mxu0 %v473_v36  ;;  %v2946_v10 = vld [vmem:[%s3237_s1 + $0x64] ss:$12 sps:$4 sm:$0xff]  }
 0x115   : > { %1064 = vmatpush1.bf16.msra.mxu0 %v472_v11  ;;  %v1681_v11 = vld [vmem:[%s3238_s2] sm:$0xff] }
 0x116   : > { %1342 = vrot.lane.b32.xlu1 %v2696_v23, %s2290_s8  ;;  %v445_v38 = vpop.permute.xlu0 %444 }
 0x117   : > { %v447_v39 = vpop.permute.xlu1 %446 }
 0x118   : > { %1360 = vrot.lane.b32.xlu0 %v2705_v28, %s2288_s6  ;;  %v452_v40 = vsel %vm448_vm5, %v445_v38, %v447_v39  ;;  %2053 = vmatprep.subr.bf16.mxu0 %v447_v39 }
 0x119   : > { %1012 = vmatprep.subr.bf16.mxu1 %v452_v40  ;;  %1966 = vmatmul.mubr.msk.bf16.vlgmr.msra.gmra.mxu0 %vm749_vm2, %v2854_v13 }
 0x11a   : > { %1356 = vrot.lane.b32.xlu1 %v2712_v30, %s2288_s6  ;;  %2054 = vmatpush3.bf16.msra.mxu0 %v2714_v32  ;;  %v443_v41 = vpop.permute.xlu0 %442 }
 0x11b   : > { %v451_v42 = vsel %vm448_vm5, %v443_v41, %v445_v38  ;;  %v439_v43 = vpop.permute.xlu1 %438  ;;  %1091 = vmatprep.mubr.bf16.mxu0 %v2284_v5 }
 0x11c   : > { %1336 = vrot.lane.b32.xlu0 %v2722_v24, %s2290_s8  ;;  %1013 = vmatpush2.bf16.msra.mxu1 %v451_v42 }
 0x11e   : > { %1354 = vrot.lane.b32.xlu1 %v2732_v37, %s2288_s6  ;;  %v441_v44 = vpop.permute.xlu0 %440 }
 0x11f   : > { %v437_v32 = vpop.permute.xlu1 %436  ;;  %2055 = vmatprep.subr.bf16.mxu0 %v441_v44  ;;  %v450_v46 = vsel %vm448_vm5, %v439_v43, %v441_v44 }
 0x120   : > { %v449_v47 = vsel %vm448_vm5, %v437_v32, %v439_v43  ;;  %1340 = vrot.lane.b32.xlu0 %v2691_v22, %s2290_s8  ;;  %1014 = vmatprep.subr.bf16.mxu1 %v450_v46 }
 0x121   : > { %2056 = vmatpush3.bf16.msra.mxu0 %v2749_v31  ;;  %1015 = vmatpush2.bf16.msra.mxu1 %v449_v47  ;;  %v1684_v47 = vld [vmem:[%s3238_s2 + $0x18] sm:$0xff] }
 0x122   : > { %1320 = vrot.lane.b32.xlu1 %v2696_v23, %s2291_s11  ;;  %v422_v48 = vpop.permute.xlu0 %421  ;;  %1967 = vmatmul.mubr.msk.bf16.gmra.mxu0 %vm749_vm2, %v2875_v45 }
 0x123   : > { %v424_v49 = vpop.permute.xlu1 %423  ;;  %1134 = vmatprep.mubr.bf16.mxu0 %v2727_v35 }
 0x124   : > { %2057 = vmatprep.subr.bf16.mxu0 %v424_v49  ;;  %1338 = vrot.lane.b32.xlu0 %v2705_v28, %s2290_s8  ;;  %v429_v50 = vsel %vm425_vm6, %v422_v48, %v424_v49 }
 0x125   : > { %1016 = vmatprep.subr.bf16.mxu1 %v429_v50  ;;  %2058 = vmatpush3.bf16.msra.mxu0 %v2765_v52 }
 0x126   : > { %1334 = vrot.lane.b32.xlu1 %v2712_v30, %s2290_s8  ;;  %v420_v31 = vpop.permute.xlu0 %419 }
 0x127   : > { %v428_v51 = vsel %vm425_vm6, %v420_v31, %v422_v48  ;;  %v416_v53 = vpop.permute.xlu1 %415 }
 0x128   : > { %1314 = vrot.lane.b32.xlu0 %v2722_v24, %s2291_s11  ;;  %1017 = vmatpush2.bf16.msra.mxu1 %v428_v51 }
 0x12a   : > { %1332 = vrot.lane.b32.xlu1 %v2732_v37, %s2290_s8  ;;  %v418_v35 = vpop.permute.xlu0 %417 }
 0x12b   : > { %v414_v54 = vpop.permute.xlu1 %413  ;;  %2059 = vmatprep.subr.bf16.mxu0 %v418_v35  ;;  %v427_v55 = vsel %vm425_vm6, %v416_v53, %v418_v35 }
 0x12c   : > { %v426_v52 = vsel %vm425_vm6, %v414_v54, %v416_v53  ;;  %1318 = vrot.lane.b32.xlu0 %v2691_v22, %s2291_s11  ;;  %1018 = vmatprep.subr.bf16.mxu1 %v427_v55 }
 0x12d   : > { %2060 = vmatpush3.bf16.msra.mxu0 %v2785_v61  ;;  %1019 = vmatpush2.bf16.msra.mxu1 %v426_v52 }
 0x12e   : > { %1316 = vrot.lane.b32.xlu1 %v2705_v28, %s2291_s11  ;;  %v399_v56 = vpop.permute.xlu0 %398 }
 0x12f   : > { %v401_v57 = vpop.permute.xlu1 %400 }
 0x130   : > { %2061 = vmatprep.subr.bf16.mxu0 %v401_v57  ;;  %1312 = vrot.lane.b32.xlu0 %v2712_v30, %s2291_s11  ;;  %v406_v58 = vsel %vm402_vm7, %v399_v56, %v401_v57 }
 0x131   : > { %1020 = vmatprep.subr.bf16.mxu1 %v406_v58  ;;  %2062 = vmatpush3.bf16.msra.mxu0 %v2801_v17 }
 0x132   : > { %1310 = vrot.lane.b32.xlu1 %v2732_v37, %s2291_s11  ;;  %v397_v59 = vpop.permute.xlu0 %396 }
 0x133   : > { %v405_v60 = vsel %vm402_vm7, %v397_v59, %v399_v56  ;;  %v393_v61 = vpop.permute.xlu1 %392 }
 0x134   : > { %1021 = vmatpush2.bf16.msra.mxu1 %v405_v60  ;;  %1687 = vperm.xlu0 %2193, %v1681_v11  }
 0x136   : > { %v395_v7 = vpop.permute.xlu0 %394 }
 0x137   : > { %v391_v62 = vpop.permute.xlu1 %390  ;;  %2063 = vmatprep.subr.bf16.mxu0 %v395_v7  ;;  %v404_v0 = vsel %vm402_vm7, %v393_v61, %v395_v7 }
 0x138   : > { %v403_v14 = vsel %vm402_vm7, %v391_v62, %v393_v61  ;;  %1022 = vmatprep.subr.bf16.mxu1 %v404_v0  ;;  %2064 = vmatpush3.bf16.msra.mxu0 %v2816_v2  ;;  %v2229_v2 = vld [vmem:[%s3237_s1] ss:$12 sps:$4 sm:$0xff]  }
 0x139   : > { %1023 = vmatpush2.bf16.msra.mxu1 %v403_v14  ;;  %1702 = vperm.xlu0 %2193, %v1684_v47  }
 0x13a   : > { %v376_v1 = vpop.permute.xlu0 %375 }
 0x13b   : > { %v378_v3 = vpop.permute.xlu1 %377 }
 0x13c   : > { %v383_v15 = vsel %vm379_vm8, %v376_v1, %v378_v3  ;;  %2065 = vmatprep.subr.bf16.mxu0 %v378_v3  ;;  %v2998_v3 = vld [vmem:[%s3237_s1 + $0x68] ss:$12 sps:$4 sm:$0xff]  }
 0x13d   : > { %1024 = vmatprep.subr.bf16.mxu1 %v383_v15  ;;  %2066 = vmatpush3.bf16.msra.mxu0 %v2469_v9 }
 0x13e   : > { %v374_v6 = vpop.permute.xlu0 %373 }
 0x13f   : > { %v382_v17 = vsel %vm379_vm8, %v374_v6, %v376_v1  ;;  %v370_v63 = vpop.permute.xlu1 %369 }
 0x140   : > { %1025 = vmatpush2.bf16.msra.mxu1 %v382_v17 }
 0x142   : > { %v372_v18 = vpop.permute.xlu0 %371 }
 0x143   : > { %v368_v19 = vpop.permute.xlu1 %367  ;;  %2067 = vmatprep.subr.bf16.mxu0 %v372_v18  ;;  %v381_v21 = vsel %vm379_vm8, %v370_v63, %v372_v18 }
 0x144   : > { %v380_v25 = vsel %vm379_vm8, %v368_v19, %v370_v63  ;;  %1026 = vmatprep.subr.bf16.mxu1 %v381_v21  ;;  %2068 = vmatpush3.bf16.msra.mxu0 %v2488_v12 }
 0x145   : > { %1027 = vmatpush2.bf16.msra.mxu1 %v380_v25  ;;  %2125 = vmatprep.subr.bf16.mxu0 %v2827_v27 }
 0x146   : > { %v1297_v9 = vpop.permute.xlu0 %1296 }
 0x147   : > { %v2928_v26 = vpop.permute.xlu1 %1298  ;;  %1135 = vmatmul.mubr.bf16.vlgmr.msra.gmra.mxu0 %v2229_v2 }
 0x148   : > { %1029 = vmatmul.mubr.bf16.vlgmr.msra.gmra.mxu1 %v2229_v2  ;;  %2126 = vmatpush3.bf16.msra.mxu0 %v2827_v27  ;;  %v1303_v20 = vsel %vm356_vm1, %v1297_v9, %v2928_v26 }
 0x149   : > { %1465 = vmatprep.subr.bf16.mxu1 %v1303_v20  ;;  %2127 = vmatprep.subr.bf16.mxu0 %v2844_v34 }
 0x14a   : > { %v1295_v12 = vpop.permute.xlu0 %1294  ;;  %1142 = vmatprep.mubr.bf16.mxu0 %v2232_v4  ;;  %1038 = vmatprep.mubr.bf16.mxu1 %v2232_v4 }
 0x14b   : > { %v1302_v29 = vsel %vm356_vm1, %v1295_v12, %v1297_v9  ;;  %v1291_v8 = vpop.permute.xlu1 %1290 }
 0x14c   : > { %2128 = vmatpush3.bf16.msra.mxu0 %v2844_v34  ;;  %1466 = vmatpush1.bf16.msra.mxu1 %v1302_v29  ;;  %v1682_v34 = vld [vmem:[%s3238_s2 + $0x8] sm:$0xff] }
 0x14d   : > { %1692 = vperm.xlu1 %2194, %v1682_v34  }
 0x14e   : > { %v2939_v27 = vpop.permute.xlu0 %1292 }
 0x14f   : > { %1143 = vmatmul.mubr.bf16.gmra.mxu0 %v2234_v16  ;;  %v1301_v33 = vsel %vm356_vm1, %v1291_v8, %v2939_v27 }
 0x150   : > { %v1289_v36 = vpop.permute.xlu1 %1288  ;;  %1039 = vmatmul.mubr.bf16.gmra.mxu1 %v2234_v16  ;;  %1467 = vmatprep.subr.bf16.mxu1 %v1301_v33 }
 0x151   : > { %v1300_v38 = vsel %vm356_vm1, %v1289_v36, %v1291_v8  ;;  %2129 = vmatprep.mubr.msk.bf16.mxu0 %vm749_vm2, %v2854_v13  ;;  %1497 = vmatprep.mubr.bf16.mxu1 %v2946_v10  ;;  %v1683_v13 = vld [vmem:[%s3238_s2 + $0x10] sm:$0xff] }
 0x152   : > { %1468 = vmatpush1.bf16.msra.mxu1 %v1300_v38  ;;  %v1275_v39 = vpop.permute.xlu0 %1274  ;;  %1697 = vperm.xlu1 %2194, %v1683_v13  }
 0x154   : > { %v2958_v40 = vpop.permute.xlu1 %1276 }
 0x155   : > { %v1281_v41 = vsel %vm333_vm3, %v1275_v39, %v2958_v40 }
 0x156   : > { %1469 = vmatprep.subr.bf16.mxu1 %v1281_v41  ;;  %v1273_v42 = vpop.permute.xlu0 %1272  ;;  %v2237_v41 = vld [vmem:[%s3237_s1 + $0x60] ss:$12 sps:$4 sm:$0xff]  }
 0x157   : > { %v1280_v43 = vsel %vm333_vm3, %v1273_v42, %v1275_v39  ;;  %2130 = vmatmul.mubr.msk.bf16.vlgmr.msra.gmra.mxu0 %vm749_vm2, %v2875_v45 }
 0x158   : > { %v1269_v44 = vpop.permute.xlu1 %1268  ;;  %1470 = vmatpush1.bf16.msra.mxu1 %v1280_v43  ;;  %1550 = vmatprep.mubr.bf16.mxu0 %v2284_v5 }
 0x15a   : > { %v2969_v32 = vpop.permute.xlu0 %1270 }
 0x15b   : > { %v1279_v46 = vsel %vm333_vm3, %v1269_v44, %v2969_v32 }
 0x15c   : > { %v1267_v48 = vpop.permute.xlu1 %1266  ;;  %1471 = vmatprep.subr.bf16.mxu1 %v1279_v46 }
 0x15d   : > { %v1278_v45 = vsel %vm333_vm3, %v1267_v48, %v1269_v44  ;;  %v2242_v48 = vld [vmem:[%s3237_s1 + $0x78] ss:$12 sps:$4 sm:$0xff]  }
 0x15e   : > { %1472 = vmatpush1.bf16.msra.mxu1 %v1278_v45  ;;  %v1253_v49 = vpop.permute.xlu0 %1252 }
 0x160   : > { %v2977_v50 = vpop.permute.xlu1 %1254 }
 0x161   : > { %v1259_v31 = vsel %vm310_vm4, %v1253_v49, %v2977_v50 }
 0x162   : > { %1473 = vmatprep.subr.bf16.mxu1 %v1259_v31  ;;  %v1407_v51 = vpop.permute.xlu0 %1406 }
 0x164   : > { %v2981_v53 = vpop.permute.xlu1 %1408 }
 0x165   : > { %v1413_v35 = vsel %vm471_vm0, %v1407_v51, %v2981_v53 }
 0x166   : > { %1530 = vmatprep.subr.bf16.mxu0 %v1413_v35  ;;  %v1251_v54 = vpop.permute.xlu0 %1250 }
 0x167   : > { %v1258_v55 = vsel %vm310_vm4, %v1251_v54, %v1253_v49 }
 0x168   : > { %v1405_v52 = vpop.permute.xlu1 %1404  ;;  %1474 = vmatpush1.bf16.msra.mxu1 %v1258_v55 }
 0x169   : > { %v1412_v56 = vsel %vm471_vm0, %v1405_v52, %v1407_v51 }
 0x16a   : > { %1531 = vmatpush1.bf16.msra.mxu0 %v1412_v56  ;;  %v1247_v57 = vpop.permute.xlu0 %1246 }
 0x16c   : > { %v1249_v58 = vpop.permute.xlu1 %1248 }
 0x16d   : > { %v1257_v59 = vsel %vm310_vm4, %v1247_v57, %v1249_v58 }
 0x16e   : > { %1475 = vmatprep.subr.bf16.mxu1 %v1257_v59  ;;  %v1401_v60 = vpop.permute.xlu0 %1400 }
 0x170   : > { %v2988_v61 = vpop.permute.xlu1 %1402 }
 0x171   : > { %v1411_v7 = vsel %vm471_vm0, %v1401_v60, %v2988_v61 }
 0x172   : > { %1532 = vmatprep.subr.bf16.mxu0 %v1411_v7  ;;  %v1245_v62 = vpop.permute.xlu0 %1244 }
 0x173   : > { %v1256_v0 = vsel %vm310_vm4, %v1245_v62, %v1247_v57 }
 0x174   : > { %v1399_v14 = vpop.permute.xlu1 %1398  ;;  %1476 = vmatpush1.bf16.msra.mxu1 %v1256_v0 }
 0x175   : > { %v1410_v1 = vsel %vm471_vm0, %v1399_v14, %v1401_v60  ;;  %1477 = vmatprep.subr.bf16.mxu1 %v2691_v22 }
 0x176   : > { %1533 = vmatpush1.bf16.msra.mxu0 %v1410_v1  ;;  %v1387_v15 = vpop.permute.xlu0 %1386 }
 0x177   : > { %2085 = vmatprep.subr.bf16.mxu0 %v1387_v15 }
 0x178   : > { %v1381_v6 = vpop.permute.xlu1 %1380  ;;  %1478 = vmatpush1.bf16.msra.mxu1 %v2705_v28  ;;  %v3011_v28 = vld [vmem:[%s3237_s1 + $0x80] ss:$12 sps:$4 sm:$0xff]  }
 0x179   : > { %1998 = vmatmul.mubr.msk.bf16.vlgmr.msra.gmra.mxu0 %vm749_vm2, %v2998_v3  ;;  %1479 = vmatprep.subr.bf16.mxu1 %v2712_v30 }
 0x17a   : > { %2086 = vmatpush3.bf16.msra.mxu0 %v2928_v26  ;;  %v1385_v17 = vpop.permute.xlu0 %1384  ;;  %1560 = vmatprep.mubr.bf16.mxu0 %v2284_v5 }
 0x17b   : > { %2087 = vmatprep.subr.bf16.mxu0 %v1381_v6  ;;  %v1391_v22 = vsel %vm448_vm5, %v1385_v17, %v1387_v15 }
 0x17c   : > { %v1365_v63 = vpop.permute.xlu1 %1364  ;;  %1480 = vmatpush1.bf16.msra.mxu1 %v2732_v37 }
 0x17d   : > { %1481 = vmatprep.subr.bf16.mxu1 %v1391_v22 }
 0x17e   : > { %2088 = vmatpush3.bf16.msra.mxu0 %v2939_v27  ;;  %v1383_v30 = vpop.permute.xlu0 %1382 }
 0x17f   : > { %2089 = vmatprep.subr.bf16.mxu0 %v1365_v63  ;;  %v1390_v18 = vsel %vm448_vm5, %v1383_v30, %v1385_v17 }
 0x180   : > { %v1379_v19 = vpop.permute.xlu1 %1378  ;;  %1482 = vmatpush2.bf16.msra.mxu1 %v1390_v18 }
 0x181   : > { %v1389_v5 = vsel %vm448_vm5, %v1379_v19, %v1381_v6  ;;  %1999 = vmatmul.mubr.msk.bf16.gmra.mxu0 %vm749_vm2, %v3011_v28 }
 0x182   : > { %2090 = vmatpush3.bf16.msra.mxu0 %v2958_v40  ;;  %1483 = vmatprep.subr.bf16.mxu1 %v1389_v5  ;;  %v1359_v37 = vpop.permute.xlu0 %1358 }
 0x183   : > { %2091 = vmatprep.subr.bf16.mxu0 %v1359_v37  ;;  %1603 = vmatprep.mubr.bf16.mxu0 %v2946_v10 }
 0x184   : > { %v1377_v21 = vpop.permute.xlu1 %1376 }
 0x185   : > { %v1388_v2 = vsel %vm448_vm5, %v1377_v21, %v1379_v19 }
 0x186   : > { %1484 = vmatpush2.bf16.msra.mxu1 %v1388_v2  ;;  %2092 = vmatpush3.bf16.msra.mxu0 %v2969_v32  ;;  %v1363_v25 = vpop.permute.xlu0 %1362 }
 0x187   : > { %v1369_v9 = vsel %vm425_vm6, %v1363_v25, %v1365_v63 }
 0x188   : > { %v1343_v4 = vpop.permute.xlu1 %1342  ;;  %1485 = vmatprep.subr.bf16.mxu1 %v1369_v9 }
 0x189   : > { %2093 = vmatprep.subr.bf16.mxu0 %v1343_v4 }
 0x18a   : > { %2094 = vmatpush3.bf16.msra.mxu0 %v2977_v50  ;;  %v1361_v26 = vpop.permute.xlu0 %1360  ;;  %v843_v50 = vpop.f32.mrf.mxu1 }
 0x18b   : > { %v1368_v20 = vsel %vm425_vm6, %v1361_v26, %v1363_v25 }
 0x18c   : > { %v1357_v12 = vpop.permute.xlu1 %1356  ;;  %1486 = vmatpush2.bf16.msra.mxu1 %v1368_v20  ;;  %v845_v31 = vpop.f32.mrf.mxu1 }
 0x18d   : > { %v1367_v29 = vsel %vm425_vm6, %v1357_v12, %v1359_v37 }
 0x18e   : > { %1487 = vmatprep.subr.bf16.mxu1 %v1367_v29  ;;  %v1337_v16 = vpop.permute.xlu0 %1336  ;;  %v847_v51 = vpop.f32.mrf.mxu1 }
 0x18f   : > { %2095 = vmatprep.subr.bf16.mxu0 %v1337_v16 }
 0x190   : > { %v1355_v8 = vpop.permute.xlu1 %1354  ;;  %2096 = vmatpush3.bf16.msra.mxu0 %v1249_v58 }
 0x191   : > { %v1366_v27 = vsel %vm425_vm6, %v1355_v8, %v1357_v12 }
 0x192   : > { %1488 = vmatpush2.bf16.msra.mxu1 %v1366_v27  ;;  %v1341_v33 = vpop.permute.xlu0 %1340 }
 0x193   : > { %v1347_v10 = vsel %vm402_vm7, %v1341_v33, %v1343_v4 }
 0x194   : > { %v1321_v36 = vpop.permute.xlu1 %1320  ;;  %1489 = vmatprep.subr.bf16.mxu1 %v1347_v10 }
 0x195   : > { %2097 = vmatprep.subr.bf16.mxu0 %v1321_v36 }
 0x196   : > { %v1339_v11 = vpop.permute.xlu0 %1338  ;;  %2098 = vmatpush3.bf16.msra.mxu0 %v2696_v23  ;;  %v2240_v23 = vld [vmem:[%s3237_s1 + $0x7c] ss:$12 sps:$4 sm:$0xff]  }
 0x197   : > { %v1346_v34 = vsel %vm402_vm7, %v1339_v11, %v1341_v33 }
 0x198   : > { %v1335_v38 = vpop.permute.xlu1 %1334  ;;  %1490 = vmatpush2.bf16.msra.mxu1 %v1346_v34 }
 0x199   : > { %v1345_v39 = vsel %vm402_vm7, %v1335_v38, %v1337_v16 }
 0x19a   : > { %1491 = vmatprep.subr.bf16.mxu1 %v1345_v39  ;;  %v1315_v40 = vpop.permute.xlu0 %1314 }
 0x19b   : > { %2099 = vmatprep.subr.bf16.mxu0 %v1315_v40 }
 0x19c   : > { %v1333_v42 = vpop.permute.xlu1 %1332  ;;  %2100 = vmatpush3.bf16.msra.mxu0 %v2722_v24 }
 0x19d   : > { %v1344_v43 = vsel %vm402_vm7, %v1333_v42, %v1335_v38  ;;  %2133 = vmatprep.subr.bf16.mxu0 %v2981_v53 }
 0x19e   : > { %1492 = vmatpush2.bf16.msra.mxu1 %v1344_v43  ;;  %v1319_v44 = vpop.permute.xlu0 %1318 }
 0x19f   : > { %1604 = vmatmul.mubr.bf16.vlgmr.msra.gmra.mxu0 %v2237_v41  ;;  %v1325_v13 = vsel %vm379_vm8, %v1319_v44, %v1321_v36 }
 0x1a0   : > { %v1317_v32 = vpop.permute.xlu1 %1316  ;;  %1493 = vmatprep.subr.bf16.mxu1 %v1325_v13  ;;  %2134 = vmatpush3.bf16.msra.mxu0 %v2981_v53  ;;  %v849_v53 = vpop.f32.mrf.mxu1 }
 0x1a1   : > { %v1324_v46 = vsel %vm379_vm8, %v1317_v32, %v1319_v44  ;;  %2135 = vmatprep.subr.bf16.mxu0 %v2988_v61  ;;  %1611 = vmatprep.mubr.bf16.mxu0 %v2240_v23 }
 0x1a2   : > { %1494 = vmatpush2.bf16.msra.mxu1 %v1324_v46  ;;  %v1313_v24 = vpop.permute.xlu0 %1312  ;;  %v853_v35 = vpop.f32.mrf.mxu1 }
 0x1a3   : > { %v1323_v47 = vsel %vm379_vm8, %v1313_v24, %v1315_v40 }
 0x1a4   : > { %v1311_v45 = vpop.permute.xlu1 %1310  ;;  %1495 = vmatprep.subr.bf16.mxu1 %v1323_v47  ;;  %2136 = vmatpush3.bf16.msra.mxu0 %v2988_v61  ;;  %v855_v54 = vpop.f32.mrf.mxu1 }
 0x1a5   : > { %v1322_v49 = vsel %vm379_vm8, %v1311_v45, %v1313_v24 }
 0x1a6   : > { %1496 = vmatpush2.bf16.msra.mxu1 %v1322_v49  ;;  %v857_v55 = vpop.f32.mrf.mxu1 }
 0x1a7   : > { %1612 = vmatmul.mubr.bf16.gmra.mxu0 %v2242_v48 }
 0x1a8   : > { %2137 = vmatprep.mubr.msk.bf16.mxu0 %vm749_vm2, %v2998_v3  ;;  %v859_v52 = vpop.f32.mrf.mxu1 }
 0x1a9   : > { %1498 = vmatmul.mubr.bf16.vlgmr.msra.gmra.mxu1 %v2237_v41 }
 0x1aa   : > { %1507 = vmatprep.mubr.bf16.mxu1 %v2240_v23  ;;  %v3054_v57 = vpop.f32.mrf.mxu1 }
 0x1ac   : > { %v3056_v59 = vpop.f32.mrf.mxu1 }
 0x1ae   : > { %v3058_v61 = vpop.f32.mrf.mxu1 }
 0x1af   : > { %2138 = vmatmul.mubr.msk.bf16.vlgmr.msra.gmra.mxu0 %vm749_vm2, %v3011_v28 }
 0x1b0   : > { %v3060_v62 = vpop.f32.mrf.mxu1 }
 0x1b1   : > { %1508 = vmatmul.mubr.bf16.gmra.mxu1 %v2242_v48 }
 0x1b2   : > { %v3062_v14 = vpop.f32.mrf.mxu1 }
 0x1b4   : > { %v3064_v3 = vpop.f32.mrf.mxu1 }
 0x1b6   : > { %v3066_v6 = vpop.f32.mrf.mxu1 }
 0x1b8   : > { %v3068_v63 = vpop.f32.mrf.mxu1 }
 0x1ba   : > { %v3070_v30 = vpop.f32.mrf.mxu1 }
 0x1bc   : > { %v3072_v19 = vpop.f32.mrf.mxu1 }
 0x1be   : > { %v3074_v37 = vpop.f32.mrf.mxu1 }
 0x1c0   : > { %v790_v56 = vpop.f32.mrf.mxu0  ;;  %v3076_v2 = vpop.f32.mrf.mxu1 }
 0x1c1   : > { %v844_v25 = vadd.f32 %v843_v50, %v790_v56 }
 0x1c2   : > { %v792_v58 = vpop.f32.mrf.mxu0 }
 0x1c3   : > { %v846_v4 = vadd.f32 %v845_v31, %v792_v58 }
 0x1c4   : > { %v794_v60 = vpop.f32.mrf.mxu0 }
 0x1c5   : > { %v848_v29 = vadd.f32 %v847_v51, %v794_v60 }
 0x1c6   : > { %v796_v7 = vpop.f32.mrf.mxu0 }
 0x1c7   : > { %v850_v33 = vadd.f32 %v849_v53, %v796_v7 }
 0x1c9   : > { %v800_v0 = vpop.f32.mrf.mxu0 }
 0x1ca   : > { %v854_v38 = vadd.f32 %v853_v35, %v800_v0 }
 0x1cb   : > { %v802_v1 = vpop.f32.mrf.mxu0 }
 0x1cc   : > { %v856_v42 = vadd.f32 %v855_v54, %v802_v1 }
 0x1cd   : > { %v804_v15 = vpop.f32.mrf.mxu0 }
 0x1ce   : > { %v858_v32 = vadd.f32 %v857_v55, %v804_v15 }
 0x1cf   : > { %v806_v17 = vpop.f32.mrf.mxu0 }
 0x1d0   : > { %v860_v48 = vadd.f32 %v859_v52, %v806_v17 }
 0x1d9   : > { %v1083_v22 = vpop.f32.mrf.mxu0 }
 0x1db   : > { %v1085_v28 = vpop.f32.mrf.mxu0 }
 0x1dd   : > { %v1087_v18 = vpop.f32.mrf.mxu0 }
 0x1df   : > { %v1089_v5 = vpop.f32.mrf.mxu0 }
 0x1e2   : > { %v1093_v21 = vpop.f32.mrf.mxu0 }
 0x1e4   : > { %v1095_v26 = vpop.f32.mrf.mxu0 }
 0x1e6   : > { %v1097_v10 = vpop.f32.mrf.mxu0 }
 0x1e8   : > { %v1099_v43 = vpop.f32.mrf.mxu0 }
 0x207   : > { %v2069_v45 = vpop.f32.mrf.mxu0 }
 0x208   : > { %v1030_v9 = vpop.f32.mrf.mxu1 }
 0x209   : > { %v1031_v20 = vadd.f32 %v1030_v9, %v844_v25  ;;  %v2070_v35 = vpop.f32.mrf.mxu0 }
 0x20a   : > { %v1032_v12 = vpop.f32.mrf.mxu1 }
 0x20b   : > { %v3078_v16 = vadd.f32 %v1083_v22, %v1031_v20  ;;  %v1033_v8 = vadd.f32 %v1032_v12, %v846_v4  ;;  %v2072_v56 = vpop.f32.mrf.mxu0 }
 0x20c   : > { %v1034_v27 = vpop.f32.mrf.mxu1 }
 0x20d   : > { %v3080_v36 = vadd.f32 %v1085_v28, %v1033_v8  ;;  %v1035_v11 = vadd.f32 %v1034_v27, %v848_v29  ;;  %v2073_v58 = vpop.f32.mrf.mxu0  ;;  %v2039_v29 = vadd.f32 %v3056_v59, %v3054_v57  ;;  %v2045_v8 = vadd.f32 %v3064_v3, %v3062_v14  ;;  %v1717_v14 = vld [vmem:[%s3129_s9] sm:$0xff] }
 0x20e   : > { %v1036_v34 = vpop.f32.mrf.mxu1  ;;  %v2042_v27 = vadd.f32 %v3060_v62, %v3058_v61  ;;  %v2071_v62 = vadd.f32 %v2070_v35, %v2069_v45 }
 0x20f   : > { %v3082_v39 = vadd.f32 %v1087_v18, %v1035_v11  ;;  %v1037_v40 = vadd.f32 %v1036_v34, %v850_v33  ;;  %v2075_v55 = vpop.f32.mrf.mxu0  ;;  %v2048_v33 = vadd.f32 %v3068_v63, %v3066_v6  ;;  %v954_v3 = vadd.f32 %v3070_v30, %v2045_v8  ;;  %v3141_v11 = vld [vmem:[%s3129_s9 + $0xc] sm:$0xff]  ;;  %v3144_v34 = vld [vmem:[%s3129_s9 + $0x8] ss:$24 sps:$4 sm:$0xff]  }
 0x210   : > { %v1040_v41 = vpop.f32.mrf.mxu1  ;;  %v949_v61 = vadd.f32 %v2042_v27, %v3076_v2  ;;  %v1725_v30 = vunpack.c.l.bf16 %v1717_v14  ;;  %v1729_v2 = vunpack.c.h.bf16 %v3141_v11 }
 0x211   : > { %v3084_v23 = vadd.f32 %v1089_v5, %v1037_v40  ;;  %v1041_v44 = vadd.f32 %v1040_v41, %v854_v38  ;;  %v2076_v60 = vpop.f32.mrf.mxu0  ;;  %v957_v38 = vadd.f32 %v3074_v37, %v2048_v33  ;;  %v3149_v41 = vld [vmem:[%s3129_s9 + $0x18] sm:$0xff]  ;;  %v1728_v37 = vunpack.c.l.bf16 %v3141_v11 }
 0x212   : > { %v1042_v13 = vpop.f32.mrf.mxu1  ;;  %v2077_v40 = vadd.f32 %v2076_v60, %v2075_v55  ;;  %v1731_v35 = vunpack.c.l.bf16 %v3149_v41 }
 0x213   : > { %v3086_v46 = vadd.f32 %v1093_v21, %v1041_v44  ;;  %v1043_v24 = vadd.f32 %v1042_v13, %v856_v42  ;;  %v2078_v7 = vpop.f32.mrf.mxu0  ;;  %v1726_v44 = vunpack.c.h.bf16 %v1717_v14  ;;  %v3151_v13 = vpop.permute.xlu0 %1687 }
 0x214   : > { %v1044_v47 = vpop.f32.mrf.mxu1  ;;  %v1145_v55 = vadd.f32 %v2077_v40, %v954_v3 }
 0x215   : > { %v3088_v49 = vadd.f32 %v1095_v26, %v1043_v24  ;;  %v1045_v50 = vadd.f32 %v1044_v47, %v858_v32  ;;  %v2079_v52 = vpop.f32.mrf.mxu0  ;;  %v2074_v32 = vadd.f32 %v2073_v58, %v2072_v56 }
 0x216   : > { %v1046_v31 = vpop.f32.mrf.mxu1  ;;  %v2080_v42 = vadd.f32 %v2079_v52, %v2078_v7  ;;  %v1732_v7 = vunpack.c.h.bf16 %v3149_v41 }
 0x217   : > { %v3090_v51 = vadd.f32 %v1097_v10, %v1045_v50  ;;  %v1047_v53 = vadd.f32 %v1046_v31, %v860_v48  ;;  %v3094_v0 = vpop.f32.mrf.mxu0  ;;  %v946_v10 = vadd.f32 %v2039_v29, %v3072_v19  ;;  %v3154_v19 = vld [vmem:[%s3129_s9 + $0x14] ss:$24 sps:$4 sm:$0xff]   ;;  %v1733_v48 = vunpack.c.h.bf16 %v3144_v34  ;;  %v3160_v31 = vpop.permute.xlu1 %1692 }
 0x218   : > { %v1736_v52 = vunpack.c.h.bf16 %v3154_v19  ;;  %v1194_v8 = vadd.f32 %v3094_v0, %v1145_v55  ;;  %v1140_v33 = vadd.f32 %v2074_v32, %v949_v61 }
 0x219   : > { %v3092_v54 = vadd.f32 %v1099_v43, %v1047_v53  ;;  %v3096_v1 = vpop.f32.mrf.mxu0  ;;  %v1727_v53 = vunpack.c.l.bf16 %v3144_v34  ;;  %v1137_v60 = vadd.f32 %v2071_v62, %v946_v10 }
 0x21b   : > { %v3098_v15 = vpop.f32.mrf.mxu0  ;;  %v1186_v27 = vadd.f32 %v3096_v1, %v1137_v60 }
 0x21d   : > { %v3100_v17 = vpop.f32.mrf.mxu0 }
 0x239   : > { %v1552_v22 = vpop.f32.mrf.mxu0 }
 0x23b   : > { %v1554_v28 = vpop.f32.mrf.mxu0 }
 0x23d   : > { %v1556_v18 = vpop.f32.mrf.mxu0 }
 0x23f   : > { %v3102_v5 = vpop.f32.mrf.mxu0 }
 0x241   : > { %v3104_v21 = vpop.f32.mrf.mxu0 }
 0x243   : > { %v3107_v25 = vpop.f32.mrf.mxu0 }
 0x245   : > { %v3110_v9 = vpop.f32.mrf.mxu0 }
 0x247   : > { %v3113_v4 = vpop.f32.mrf.mxu0 }
 0x25f   : > { %v2101_v26 = vpop.f32.mrf.mxu0 }
 0x261   : > { %v2102_v20 = vpop.f32.mrf.mxu0 }
 0x262   : > { %v2103_v40 = vadd.f32 %v2102_v20, %v2101_v26 }
 0x263   : > { %v3118_v12 = vpop.f32.mrf.mxu0 }
 0x265   : > { %v3135_v57 = vpop.f32.mrf.mxu0 }
 0x267   : > { %v2107_v59 = vpop.f32.mrf.mxu0 }
 0x269   : > { %v1499_v6 = vpop.f32.mrf.mxu1  ;;  %v2108_v63 = vpop.f32.mrf.mxu0 }
 0x26a   : > { %v1553_v43 = vadd.f32 %v1552_v22, %v1499_v6  ;;  %v1148_v22 = vadd.f32 %v2080_v42, %v957_v38  ;;  %v2109_v14 = vadd.f32 %v2108_v63, %v2107_v59 }
 0x26b   : > { %v1501_v24 = vpop.f32.mrf.mxu1  ;;  %v2110_v47 = vpop.f32.mrf.mxu0 }
 0x26c   : > { %v1669_v45 = vadd.f32 %v1553_v43, %v3078_v16  ;;  %v1555_v50 = vadd.f32 %v1554_v28, %v1501_v24  ;;  %v1197_v11 = vadd.f32 %v3098_v15, %v1148_v22  ;;  %v1698_v43 = vpop.permute.xlu1 %1697  ;;  %v1703_v22 = vpop.permute.xlu0 %1702 }
 0x26d   : > { %v1503_v56 = vpop.f32.mrf.mxu1  ;;  %v2111_v58 = vpop.f32.mrf.mxu0 }
 0x26e   : > { %v1670_v29 = vadd.f32 %v1555_v50, %v3080_v36  ;;  %v1705_v16 = vadd.f32 %v3151_v13, %v1669_v45  ;;  %v1557_v28 = vadd.f32 %v1556_v18, %v1503_v56  ;;  %v1189_v18 = vadd.f32 %v3100_v17, %v1140_v33 }
 0x26f   : > { %v1505_v3 = vpop.f32.mrf.mxu1  ;;  %v2139_v10 = vpop.f32.mrf.mxu0  ;;  %v2112_v17 = vadd.f32 %v2111_v58, %v2110_v47 }
 0x270   : > { %v1706_v62 = vadd.f32 %v3151_v13, %v1670_v29  ;;  %v1672_v38 = vadd.f32 %v1557_v28, %v3082_v39  ;;  %v1559_v36 = vadd.f32 %v3102_v5, %v1505_v3  ;;  %v1737_v0 = vadd.f32 %v1725_v30, %v1705_v16  ;;  %v1723_v16 = vld [vmem:[%s3129_s9 + $0x24] sm:$0xff] }
 0x271   : > { %v1663_v6 = vadd.f32 %v2139_v10, %v2109_v14  ;;  %v1509_v1 = vpop.f32.mrf.mxu1  ;;  %v1654_v61 = vpop.f32.mrf.mxu0  ;;  %v2106_v39 = vadd.f32 %v3135_v57, %v3118_v12 }
 0x272   : > { %v1738_v59 = vadd.f32 %v1726_v44, %v1706_v62  ;;  %v1673_v63 = vadd.f32 %v1559_v36, %v3084_v23  ;;  %v1708_v15 = vadd.f32 %v3160_v31, %v1672_v38  ;;  %v1563_v42 = vadd.f32 %v3104_v21, %v1509_v1 }
 0x273   : > { %v1677_v5 = vadd.f32 %v1663_v6, %v1194_v8  ;;  %v1655_v26 = vadd.f32 %v2103_v40, %v1654_v61  ;;  %v1511_v20 = vpop.f32.mrf.mxu1  ;;  %v2140_v23 = vpop.f32.mrf.mxu0  ;;  %v1735_v62 = vunpack.c.h.bf16 %v1723_v16 }
 0x274   : > { %v2013_v30 = vpack.c.bf16 %v1738_v59, %v1737_v0  ;;  %v1709_v44 = vadd.f32 %v3160_v31, %v1673_v63  ;;  %v1740_v21 = vadd.f32 %v1728_v37, %v1708_v15  ;;  %v1675_v32 = vadd.f32 %v1563_v42, %v3086_v46 }
 0x275   : > { %v1671_v24 = vadd.f32 %v1655_v26, %v1186_v27  ;;  %v1565_v12 = vadd.f32 %v3107_v25, %v1511_v20  ;;  %v1666_v57 = vadd.f32 %v2140_v23, %v2112_v17  ;;  %v1713_v45 = vadd.f32 %v1698_v43, %v1677_v5  ;;  %v1513_v50 = vpop.f32.mrf.mxu1  ;;  %v1657_v55 = vpop.f32.mrf.mxu0 }
 0x276   : > { %1789 = vst [vmem:[%s3185_s13] sm:$0xff] %v2013_v30  ;;  %v1741_v47 = vadd.f32 %v1729_v2, %v1709_v44  ;;  %v1711_v60 = vadd.f32 %v1698_v43, %v1675_v32  ;;  %v1567_v56 = vadd.f32 %v3110_v9, %v1513_v50  ;;  %v1658_v58 = vadd.f32 %v2106_v39, %v1657_v55 }
 0x277   : > { %v1707_v37 = vadd.f32 %v3151_v13, %v1671_v24  ;;  %v1676_v46 = vadd.f32 %v1565_v12, %v3088_v49  ;;  %v1680_v29 = vadd.f32 %v1666_v57, %v1197_v11  ;;  %v1745_v25 = vadd.f32 %v1733_v48, %v1713_v45  ;;  %v1515_v28 = vpop.f32.mrf.mxu1 }
 0x278   : > { %v2015_v8 = vpack.c.bf16 %v1741_v47, %v1740_v21  ;;  %v1678_v2 = vadd.f32 %v1567_v56, %v3090_v51  ;;  %v1674_v27 = vadd.f32 %v1658_v58, %v1189_v18  ;;  %v1730_v9 = vunpack.c.l.bf16 %v3154_v19 }
 0x279   : > { %v1739_v33 = vadd.f32 %v1727_v53, %v1707_v37  ;;  %v1712_v14 = vadd.f32 %v1698_v43, %v1676_v46  ;;  %v2018_v13 = vpack.c.bf16 %v1745_v25, %v1745_v25  ;;  %v1716_v49 = vadd.f32 %v1703_v22, %v1680_v29 }
 0x27a   : > { %1792 = vst [vmem:[%s3185_s13 + $0xc] sm:$0xff] %v2015_v8  ;;  %v1710_v3 = vadd.f32 %v3160_v31, %v1674_v27  ;;  %v1734_v48 = vunpack.c.l.bf16 %v1723_v16  ;;  %v1569_v10 = vadd.f32 %v3113_v4, %v1515_v28  ;;  %v1743_v51 = vadd.f32 %v1731_v35, %v1711_v60 }
 0x27b   : > { %v2014_v11 = vpack.c.bf16 %v1739_v33, %v1739_v33  ;;  %v1744_v34 = vadd.f32 %v1732_v7, %v1712_v14  ;;  %1795 = vst.msk [vmem:[%s3185_s13 + $0x20] sm:$0xf] %vm1790_vm9, %v2018_v13  ;;  %v1748_v53 = vadd.f32 %v1736_v52, %v1716_v49  ;;  %v1714_v38 = vadd.f32 %v1703_v22, %v1678_v2 }
 0x27c   : > { %v1742_v31 = vadd.f32 %v1730_v9, %v1710_v3  ;;  %v1679_v4 = vadd.f32 %v1569_v10, %v3092_v54 }
 0x27d   : > { %1791 = vst.msk [vmem:[%s3185_s13 + $0x8] sm:$0xf] %vm1790_vm9, %v2014_v11  ;;  %v2017_v36 = vpack.c.bf16 %v1744_v34, %v1743_v51  ;;  %v2020_v18 = vpack.c.bf16 %v1748_v53, %v1748_v53  ;;  %v1746_v41 = vadd.f32 %v1734_v48, %v1714_v38 }
 0x27e   : > { %v2016_v40 = vpack.c.bf16 %v1742_v31, %v1742_v31  ;;  %v1715_v35 = vadd.f32 %v1703_v22, %v1679_v4 }
 0x27f   : > { %1794 = vst [vmem:[%s3185_s13 + $0x18] sm:$0xff] %v2017_v36  ;;  %1797 = vst.msk [vmem:[%s3185_s13 + $0x2c] sm:$0xf] %vm1790_vm9, %v2020_v18 }
 0x280   : > { %1793 = vst.msk [vmem:[%s3185_s13 + $0x14] sm:$0xf] %vm1790_vm9, %v2016_v40  ;;  %v1747_v19 = vadd.f32 %v1735_v62, %v1715_v35 }
 0x282   : > { %v2019_v7 = vpack.c.bf16 %v1747_v19, %v1746_v41 }
 0x284   : > { %1796 = vst [vmem:[%s3185_s13 + $0x24] sm:$0xff] %v2019_v7 }
 0x285 PF: > { %s14_s19 = sadd.s32 1, %s2281_s19   ;;  %s3241_s15 = smov %s2273_s17 }
 0x286   : > { %p11_p7 = scmp.ge.s32.totalorder %s14_s19, 18   ;;  %s3242_s16 = smov %s2277_s18 }
 0x287   : > { %s3243_s17 = smov %s3246_s20  ;;  %s3244_s18 = smov %s3250_s21 }
 0x288   :  { %13 = sbr.rel (!%p11_p7) target bundleno = 3 (0x3), region = 74 }

// kernel: basic_matcher_forward.15
= control target key start
LH: loop header
LB: loop body
LE: loop exit
PB: predicated region body
PF: predicated region fallthrough
CT: control target
= control target key end

     0   :  { %s1898_s14 = smov 0   ;;  %s1900_s15 = smov 0   ;;  %s2623_s0 = inlined_call_operand.vmem [shape: bf16[2,10,32,374], index: 0, kind: input, shape index: {}]   ;;  %s2624_s1 = inlined_call_operand.vmem [shape: bf16[3,1,288], index: 1, kind: input, shape index: {}]   ;;  %s2625_s2 = inlined_call_operand.<no memory space> [shape: f32[1,1], index: 2, kind: input, shape index: {}]   ;;  %s2626_s3 = inlined_call_operand.vmem [shape: bf16[2,8,1,272], index: 3, kind: output, shape index: {}]  }
   0x1   :  { %v8_v0 = vstv %s2625_s2  ;;  %s1902_s16 = smov 0   ;;  %s1904_s17 = smov 0  }
   0x2   :  { %9 = vst [vmem:[#allocation2] sm:$0x1] %v8_v0  ;;  %s1906_s18 = smov 0  }
   0x3 LB: > { %s24_s2 = sadd.s32 1, %s1853_s16  ;;  %s27_s19 = sadd.s32 1, %s1857_s17  ;;  %s1861_s18 = sphi %s1906_s18, %s15_s18   ;;  %s1857_s17 = sphi %s1904_s17, %s2632_s17   ;;  %s1853_s16 = sphi %s1902_s16, %s2631_s16   ;;  %s1849_s15 = sphi %s1900_s15, %s2630_s15   ;;  %s1845_s14 = sphi %s1898_s14, %s2629_s14  }
   0x4   : > { %p25_p0 = scmp.ge.s32.totalorder %s24_s2, 8  ;;  %p1592_p1 = scmp.ge.s32.totalorder %s1861_s18, 1 }
   0x5   : > { %p153_p2 = scmp.lt.s32.totalorder %s1861_s18, 17 }
   0x6   : > { %s2634_s2 = smov (%p25_p0, %s24_s2), 0  ;;  %s2636_s19 = smov (!%p25_p0, %s27_s19), %s1857_s17 }
   0x7   : > { %p154_p3 = pnand %p1592_p1, %p153_p2  ;;  %p29_p4 = scmp.ge.s32.totalorder %s2636_s19, 2 }
   0x8   : > { %p180_p5 = scmp.lt.s32.totalorder (!%p154_p3), %s1849_s15, 1  ;;  %s1643_s20 = smul.u32 (!%p154_p3), 48, %s1845_s14 }
   0x9   : > { %s2638_s19 = smov (%p29_p4, %s2636_s19), 0  ;;  %157 = sbr.rel (%p154_p3) target bundleno = 636 (0x27c), region = 32 }
   0xa   : > { %s1863_s26 = smov (!%p154_p3), 94   ;;  %s1864_s27 = smov (!%p154_p3), 58  }
   0xb   : > { %s1866_s28 = smov (!%p154_p3), 126   ;;  %s1867_s29 = smov (!%p154_p3), 59  }
   0xc   : > { %s1868_s30 = smov (!%p154_p3), 127   ;;  %s1869_s4 = smov (!%p154_p3), 60  }
   0xd   : > { %s1871_s5 = smov (!%p154_p3), 92   ;;  %s1872_s8 = smov (!%p154_p3), 93  }
   0xe   : > { %s2640_s15 = smov (!%p180_p5, %s1849_s15), 1  ;;  %v1865_v7 = vmov 0   ;;  %v1870_v8 = vmov 1966171168   ;;  %v656_v10 = vlaneseq  ;;  %vm295_vm0 = vcmask 769024   ;;  %p187_p6 = scmp.lt.s32.totalorder %s1845_s14, 7 }
   0xf   : > { %s1743_s21 = smul.u32 480, %s2640_s15  ;;  %747 = vmatprep.mubr.bf16.mxu1 %v1865_v7  ;;  %1798 = vset.pattern.permute.xlu0 %v1865_v7  ;;  %v654_v9 = vunpack.c.l.s4 %v1870_v8  ;;  %v2022_v13 = vld.sshfl [vmem:[%s2624_s1 + $0x3] sm:$0x13 pattern:$0x75316420]  ;;  %vm410_vm1 = vcmask 474112  }
  0x10   : > { %v2015_v12 = vshrl.u32 %v656_v10, 7  ;;  %v652_v15 = vcombine.high %v2022_v13, %v2022_v13  ;;  %vm272_vm2 = vcmask 1031168   ;;  %vm670_vm3 = vcmask 261120   ;;  %s2642_s14 = smov (!%p187_p6, %s1845_s14), 7  ;;  %s1745_s13 = smul.u32 24, %s2640_s15 }
  0x11   : > { %s184_s24 = scalar_lea.vmem %s2623_s0, %s1743_s21  ;;  %v655_v11 = vunpack.c.0.s8 %v654_v9  ;;  %vm249_vm4 = vcmask 1039360   ;;  %vm387_vm5 = vcmask 482304   ;;  %vm364_vm6 = vcmask 490496  }
  0x12   : > { %s1937_s25 = scalar_lea.vmem %s184_s24, %s1643_s20  ;;  %vm1874_vm7 = vmmov 0   ;;  %vm341_vm8 = vcmask 752640   ;;  %vm318_vm9 = vcmask 760832   ;;  %vm1486_vm10 = vcmask 1040384   ;;  %s1744_s20 = smul.u32 3, %s2642_s14 }
  0x13   : > { %v1940_v1 = vld [vmem:[%s1937_s25 + $0x4c] ss:$12 sps:$4 sm:$0xff]   ;;  %v1943_v2 = vld [vmem:[%s1937_s25 + $0x48] ss:$12 sps:$4 sm:$0xff]   ;;  %v1948_v3 = vld [vmem:[%s1937_s25 + $0x50] ss:$12 sps:$4 sm:$0xff]   ;;  %v2027_v14 = vsub.s32 %v655_v11, %v2015_v12 }
  0x14   : > { %518 = vrot.lane.b32.xlu0 %v1940_v1, %s1863_s26  ;;  %516 = vrot.lane.b32.xlu1 %v1943_v2, %s1863_s26  ;;  %v1957_v4 = vld [vmem:[%s1937_s25 + $0x38] ss:$12 sps:$4 sm:$0xff]   ;;  %v1960_v5 = vld [vmem:[%s1937_s25 + $0x34] ss:$12 sps:$4 sm:$0xff]   ;;  %vm1487_vm11 = vsmask.f32 256  ;;  %s191_s15 = sadd.s32 %s1745_s13, %s1744_s20 }
  0x15   : > { %v1969_v6 = vld [vmem:[%s1937_s25 + $0x30] ss:$12 sps:$4 sm:$0xff]   ;;  %v2032_v16 = vrot.slane %v652_v15, %v2027_v14  ;;  %v2063_v18 = vld [vmem:[%s1937_s25 + $0x20] ss:$12 sps:$4 sm:$0xff]   ;;  %v2068_v19 = vld [vmem:[%s1937_s25 + $0x18] ss:$12 sps:$4 sm:$0xff]   ;;  %v2138_v39 = vrot.slane %v2022_v13, %v2027_v14  ;;  %s192_s22 = scalar_lea.vmem %s2626_s3, %s191_s15 }
  0x16   : > { %v2058_v17 = vld [vmem:[%s1937_s25 + $0x1c] ss:$12 sps:$4 sm:$0xff]   ;;  %v2077_v20 = vld [vmem:[%s1937_s25 + $0x4] ss:$12 sps:$4 sm:$0xff]   ;;  %v2087_v22 = vld [vmem:[%s1937_s25] ss:$12 sps:$4 sm:$0xff]  }
  0x17   : > { %706 = vmatprep.mubr.bf16.mxu0 %v2032_v16  ;;  %v2082_v21 = vld [vmem:[%s1937_s25 + $0x8] ss:$12 sps:$4 sm:$0xff]   ;;  %v2151_v44 = vcombine.high %v2138_v39, %v2138_v39  ;;  %vm1489_vm12 = vcmask 1041409   ;;  %vm1490_vm13 = vsmask.f32 1280  ;;  %vm2596_vm14 = vmand %vm1486_vm10, %vm1487_vm11 }
  0x18   : > { %520 = vrot.lane.b32.xlu0 %v1948_v3, %s1863_s26  ;;  %628 = vrot.lane.b32.xlu1 %v1940_v1, %s1864_s27  ;;  %vm1491_vm15 = vmand %vm1489_vm12, %vm1490_vm13 }
  0x1c   : > { %630 = vrot.lane.b32.xlu0 %v1948_v3, %s1864_s27  ;;  %626 = vrot.lane.b32.xlu1 %v1943_v2, %s1864_s27 }
  0x20   : > { %512 = vrot.lane.b32.xlu0 %v1960_v5, %s1863_s26  ;;  %514 = vrot.lane.b32.xlu1 %v1957_v4, %s1863_s26 }
  0x24   : > { %510 = vrot.lane.b32.xlu0 %v1969_v6, %s1863_s26  ;;  %622 = vrot.lane.b32.xlu1 %v1960_v5, %s1864_s27 }
  0x28   : > { %624 = vrot.lane.b32.xlu0 %v1957_v4, %s1864_s27  ;;  %620 = vrot.lane.b32.xlu1 %v1969_v6, %s1864_s27 }
  0x2c   : > { %496 = vrot.lane.b32.xlu0 %v1940_v1, %s1866_s28  ;;  %498 = vrot.lane.b32.xlu1 %v1948_v3, %s1866_s28 }
  0x30   : > { %494 = vrot.lane.b32.xlu0 %v1943_v2, %s1866_s28  ;;  %608 = vrot.lane.b32.xlu1 %v1948_v3, %s1867_s29 }
  0x34   : > { %490 = vrot.lane.b32.xlu0 %v1960_v5, %s1866_s28  ;;  %492 = vrot.lane.b32.xlu1 %v1957_v4, %s1866_s28 }
  0x38   : > { %488 = vrot.lane.b32.xlu0 %v1969_v6, %s1866_s28  ;;  %602 = vrot.lane.b32.xlu1 %v1957_v4, %s1867_s29 }
  0x3c   : > { %474 = vrot.lane.b32.xlu0 %v1940_v1, %s1868_s30  ;;  %476 = vrot.lane.b32.xlu1 %v1948_v3, %s1868_s30 }
  0x40   : > { %472 = vrot.lane.b32.xlu0 %v1943_v2, %s1868_s30  ;;  %586 = vrot.lane.b32.xlu1 %v1948_v3, %s1869_s4 }
  0x44   : > { %468 = vrot.lane.b32.xlu0 %v1960_v5, %s1868_s30  ;;  %470 = vrot.lane.b32.xlu1 %v1957_v4, %s1868_s30 }
  0x48   : > { %466 = vrot.lane.b32.xlu0 %v1969_v6, %s1868_s30  ;;  %580 = vrot.lane.b32.xlu1 %v1957_v4, %s1869_s4 }
  0x4c   : > { %564 = vrot.lane.b32.xlu0 %v1948_v3, %s1871_s5  ;;  %558 = vrot.lane.b32.xlu1 %v1957_v4, %s1871_s5 }
  0x50   : > { %606 = vrot.lane.b32.xlu0 %v1940_v1, %s1867_s29  ;;  %604 = vrot.lane.b32.xlu1 %v1943_v2, %s1867_s29 }
  0x54   : > { %542 = vrot.lane.b32.xlu0 %v1948_v3, %s1872_s8  ;;  %600 = vrot.lane.b32.xlu1 %v1960_v5, %s1867_s29 }
  0x58   : > { %598 = vrot.lane.b32.xlu0 %v1969_v6, %s1867_s29  ;;  %536 = vrot.lane.b32.xlu1 %v1957_v4, %s1872_s8 }
  0x5c   : > { %584 = vrot.lane.b32.xlu0 %v1940_v1, %s1869_s4  ;;  %582 = vrot.lane.b32.xlu1 %v1943_v2, %s1869_s4 }
  0x60   : > { %578 = vrot.lane.b32.xlu0 %v1960_v5, %s1869_s4  ;;  %576 = vrot.lane.b32.xlu1 %v1969_v6, %s1869_s4 }
  0x64   : > { %562 = vrot.lane.b32.xlu0 %v1940_v1, %s1871_s5  ;;  %560 = vrot.lane.b32.xlu1 %v1943_v2, %s1871_s5 }
  0x68   : > { %291 = vrot.lane.b32.xlu0 %v2058_v17, %s1863_s26  ;;  %293 = vrot.lane.b32.xlu1 %v2063_v18, %s1863_s26 }
  0x6c   : > { %289 = vrot.lane.b32.xlu0 %v2068_v19, %s1863_s26  ;;  %556 = vrot.lane.b32.xlu1 %v1960_v5, %s1871_s5 }
  0x70   : > { %554 = vrot.lane.b32.xlu0 %v1969_v6, %s1871_s5  ;;  %285 = vrot.lane.b32.xlu1 %v2077_v20, %s1863_s26 }
  0x74   : > { %287 = vrot.lane.b32.xlu0 %v2082_v21, %s1863_s26  ;;  %283 = vrot.lane.b32.xlu1 %v2087_v22, %s1863_s26 }
  0x78   : > { %540 = vrot.lane.b32.xlu0 %v1940_v1, %s1872_s8  ;;  %538 = vrot.lane.b32.xlu1 %v1943_v2, %s1872_s8 }
  0x7c   : > { %268 = vrot.lane.b32.xlu0 %v2058_v17, %s1866_s28  ;;  %270 = vrot.lane.b32.xlu1 %v2063_v18, %s1866_s28 }
  0x80   : > { %266 = vrot.lane.b32.xlu0 %v2068_v19, %s1866_s28  ;;  %534 = vrot.lane.b32.xlu1 %v1960_v5, %s1872_s8 }
  0x84   : > { %532 = vrot.lane.b32.xlu0 %v1969_v6, %s1872_s8  ;;  %262 = vrot.lane.b32.xlu1 %v2077_v20, %s1866_s28 }
  0x86   : > { %v519_v23 = vpop.permute.xlu0 %518  ;;  %v517_v24 = vpop.permute.xlu1 %516 }
  0x87   : > { %v524_v28 = vsel %vm295_vm0, %v517_v24, %v519_v23 }
  0x88   : > { %264 = vrot.lane.b32.xlu0 %v2082_v21, %s1866_s28  ;;  %260 = vrot.lane.b32.xlu1 %v2087_v22, %s1866_s28 }
  0x8a   : > { %v521_v25 = vpop.permute.xlu0 %520  ;;  %v629_v26 = vpop.permute.xlu1 %628 }
  0x8b   : > { %v525_v27 = vsel %vm295_vm0, %v519_v23, %v521_v25  ;;  %v2226_v23 = vld [vmem:[%s1937_s25 + $0x80] ss:$12 sps:$4 sm:$0xff]  }
  0x8c   : > { %674 = vmatprep.subr.bf16.mxu0 %v525_v27  ;;  %385 = vrot.lane.b32.xlu0 %v2063_v18, %s1867_s29 }
  0x8d   : > { %245 = vrot.lane.b32.xlu1 %v2058_v17, %s1868_s30  ;;  %675 = vmatpush1.bf16.msra.mxu0 %v524_v28 }
  0x8e   : > { %v2119_v29 = vpop.permute.xlu0 %630  ;;  %v627_v30 = vpop.permute.xlu1 %626 }
  0x8f   : > { %v635_v31 = vsel %vm410_vm1, %v629_v26, %v2119_v29  ;;  %v634_v32 = vsel %vm410_vm1, %v627_v30, %v629_v26  ;;  %v2251_v30 = vld [vmem:[%s1937_s25 + $0x64] ss:$12 sps:$4 sm:$0xff]  }
  0x90   : > { %727 = vmatprep.subr.bf16.mxu1 %v635_v31  ;;  %247 = vrot.lane.b32.xlu0 %v2063_v18, %s1868_s30 }
  0x91   : > { %243 = vrot.lane.b32.xlu1 %v2068_v19, %s1868_s30  ;;  %728 = vmatpush1.bf16.msra.mxu1 %v634_v32 }
  0x92   : > { %v513_v33 = vpop.permute.xlu0 %512  ;;  %v515_v34 = vpop.permute.xlu1 %514 }
  0x93   : > { %v523_v35 = vsel %vm295_vm0, %v513_v33, %v515_v34 }
  0x94   : > { %379 = vrot.lane.b32.xlu0 %v2082_v21, %s1867_s29  ;;  %676 = vmatprep.subr.bf16.mxu0 %v523_v35  ;;  %v2267_v35 = vld [vmem:[%s1937_s25 + $0x60] ss:$12 sps:$4 sm:$0xff]  }
  0x95   : > { %239 = vrot.lane.b32.xlu1 %v2077_v20, %s1868_s30 }
  0x96   : > { %v511_v36 = vpop.permute.xlu0 %510  ;;  %v623_v37 = vpop.permute.xlu1 %622 }
  0x97   : > { %v522_v38 = vsel %vm295_vm0, %v511_v36, %v513_v33 }
  0x98   : > { %677 = vmatpush1.bf16.msra.mxu0 %v522_v38  ;;  %241 = vrot.lane.b32.xlu0 %v2082_v21, %s1868_s30  ;;  %v2276_v38 = vld.sshfl [vmem:[%s2624_s1] sm:$0x13 pattern:$0x75316420] }
  0x99   : > { %237 = vrot.lane.b32.xlu1 %v2087_v22, %s1868_s30 }
  0x9a   : > { %v2142_v40 = vpop.permute.xlu0 %624  ;;  %v621_v41 = vpop.permute.xlu1 %620 }
  0x9b   : > { %v633_v42 = vsel %vm410_vm1, %v623_v37, %v2142_v40  ;;  %v632_v43 = vsel %vm410_vm1, %v621_v41, %v623_v37 }
  0x9c   : > { %729 = vmatprep.subr.bf16.mxu1 %v633_v42  ;;  %362 = vrot.lane.b32.xlu0 %v2063_v18, %s1869_s4 }
  0x9d   : > { %356 = vrot.lane.b32.xlu1 %v2082_v21, %s1869_s4  ;;  %730 = vmatpush1.bf16.msra.mxu1 %v632_v43 }
  0x9e   : > { %v497_v45 = vpop.permute.xlu0 %496  ;;  %v499_v46 = vpop.permute.xlu1 %498 }
  0x9f   : > { %v503_v47 = vsel %vm272_vm2, %v497_v45, %v499_v46 }
  0xa0   : > { %339 = vrot.lane.b32.xlu0 %v2063_v18, %s1871_s5  ;;  %1617 = vmatmul.mubr.msk.bf16.vlgmr.msra.gmra.mxu1 %vm670_vm3, %v2151_v44 }
  0xa1   : > { %678 = vmatprep.subr.bf16.mxu0 %v503_v47  ;;  %383 = vrot.lane.b32.xlu1 %v2058_v17, %s1867_s29 }
  0xa2   : > { %v495_v48 = vpop.permute.xlu0 %494  ;;  %788 = vmatprep.mubr.bf16.mxu1 %v2032_v16  ;;  %v2163_v49 = vpop.permute.xlu1 %608  ;;  %v2220_v16 = vld [vmem:[%s1937_s25 + $0x7c] ss:$12 sps:$4 sm:$0xff]  }
  0xa3   : > { %v502_v50 = vsel %vm272_vm2, %v495_v48, %v497_v45  ;;  %1644 = vmatprep.subr.bf16.mxu1 %v2163_v49 }
  0xa4   : > { %679 = vmatpush1.bf16.msra.mxu0 %v502_v50  ;;  %1645 = vmatpush3.bf16.msra.mxu1 %v521_v25  ;;  %v2235_v25 = vld [vmem:[%s1937_s25 + $0x78] ss:$12 sps:$4 sm:$0xff]  }
  0xa5   : > { %381 = vrot.lane.b32.xlu0 %v2068_v19, %s1867_s29  ;;  %333 = vrot.lane.b32.xlu1 %v2082_v21, %s1871_s5 }
  0xa6   : > { %v491_v51 = vpop.permute.xlu0 %490  ;;  %v493_v52 = vpop.permute.xlu1 %492 }
  0xa7   : > { %v501_v53 = vsel %vm272_vm2, %v491_v51, %v493_v52 }
  0xa8   : > { %680 = vmatprep.subr.bf16.mxu0 %v501_v53 }
  0xa9   : > { %377 = vrot.lane.b32.xlu0 %v2077_v20, %s1867_s29  ;;  %375 = vrot.lane.b32.xlu1 %v2087_v22, %s1867_s29 }
  0xaa   : > { %v489_v54 = vpop.permute.xlu0 %488  ;;  %v2176_v55 = vpop.permute.xlu1 %602 }
  0xab   : > { %v500_v56 = vsel %vm272_vm2, %v489_v54, %v491_v51  ;;  %1646 = vmatprep.subr.bf16.mxu1 %v2176_v55 }
  0xac   : > { %681 = vmatpush1.bf16.msra.mxu0 %v500_v56  ;;  %1647 = vmatpush3.bf16.msra.mxu1 %v515_v34  ;;  %v1873_v34 = vmov 0.0  }
  0xad   : > { %316 = vrot.lane.b32.xlu0 %v2063_v18, %s1872_s8  ;;  %360 = vrot.lane.b32.xlu1 %v2058_v17, %s1869_s4 }
  0xae   : > { %v475_v57 = vpop.permute.xlu0 %474  ;;  %v477_v58 = vpop.permute.xlu1 %476 }
  0xaf   : > { %v481_v59 = vsel %vm249_vm4, %v475_v57, %v477_v58 }
  0xb0   : > { %682 = vmatprep.subr.bf16.mxu0 %v481_v59 }
  0xb1   : > { %358 = vrot.lane.b32.xlu0 %v2068_v19, %s1869_s4  ;;  %310 = vrot.lane.b32.xlu1 %v2082_v21, %s1872_s8 }
  0xb2   : > { %v473_v60 = vpop.permute.xlu0 %472  ;;  %v2189_v61 = vpop.permute.xlu1 %586 }
  0xb3   : > { %v480_v62 = vsel %vm249_vm4, %v473_v60, %v475_v57  ;;  %1648 = vmatprep.subr.bf16.mxu1 %v2189_v61 }
  0xb4   : > { %683 = vmatpush1.bf16.msra.mxu0 %v480_v62  ;;  %1649 = vmatpush3.bf16.msra.mxu1 %v499_v46 }
  0xb5   : > { %354 = vrot.lane.b32.xlu0 %v2077_v20, %s1869_s4  ;;  %352 = vrot.lane.b32.xlu1 %v2087_v22, %s1869_s4 }
  0xb6   : > { %v469_v63 = vpop.permute.xlu0 %468  ;;  %v471_v0 = vpop.permute.xlu1 %470 }
  0xb7   : > { %v479_v8 = vsel %vm249_vm4, %v469_v63, %v471_v0 }
  0xb8   : > { %684 = vmatprep.subr.bf16.mxu0 %v479_v8 }
  0xb9   : > { %337 = vrot.lane.b32.xlu0 %v2058_v17, %s1871_s5  ;;  %408 = vrot.lane.b32.xlu1 %v2063_v18, %s1864_s27 }
  0xba   : > { %v467_v9 = vpop.permute.xlu0 %466  ;;  %v2202_v10 = vpop.permute.xlu1 %580 }
  0xbb   : > { %v478_v11 = vsel %vm249_vm4, %v467_v9, %v469_v63  ;;  %1650 = vmatprep.subr.bf16.mxu1 %v2202_v10 }
  0xbc   : > { %685 = vmatpush1.bf16.msra.mxu0 %v478_v11  ;;  %1651 = vmatpush3.bf16.msra.mxu1 %v493_v52 }
  0xbd   : > { %335 = vrot.lane.b32.xlu0 %v2068_v19, %s1871_s5  ;;  %331 = vrot.lane.b32.xlu1 %v2077_v20, %s1871_s5 }
  0xbe   : > { %v2210_v13 = vpop.permute.xlu0 %564  ;;  %686 = vmatprep.subr.bf16.mxu0 %v1940_v1  ;;  %v2213_v15 = vpop.permute.xlu1 %558 }
  0xbf   : > { %1652 = vmatprep.subr.bf16.mxu1 %v2210_v13 }
  0xc0   : > { %687 = vmatpush1.bf16.msra.mxu0 %v1943_v2  ;;  %1653 = vmatpush3.bf16.msra.mxu1 %v477_v58 }
  0xc1   : > { %402 = vrot.lane.b32.xlu0 %v2082_v21, %s1864_s27  ;;  %329 = vrot.lane.b32.xlu1 %v2087_v22, %s1871_s5 }
  0xc2   : > { %1654 = vmatprep.subr.bf16.mxu1 %v2213_v15  ;;  %v607_v1 = vpop.permute.xlu0 %606  ;;  %v605_v24 = vpop.permute.xlu1 %604  ;;  %688 = vmatprep.subr.bf16.mxu0 %v1960_v5 }
  0xc3   : > { %v613_v2 = vsel %vm387_vm5, %v607_v1, %v2163_v49  ;;  %v612_v5 = vsel %vm387_vm5, %v605_v24, %v607_v1 }
  0xc4   : > { %689 = vmatpush1.bf16.msra.mxu0 %v1969_v6  ;;  %1655 = vmatpush3.bf16.msra.mxu1 %v471_v0 }
  0xc5   : > { %1123 = vrot.lane.b32.xlu0 %v2220_v16, %s1863_s26  ;;  %1125 = vrot.lane.b32.xlu1 %v2226_v23, %s1863_s26 }
  0xc6   : > { %690 = vmatprep.subr.bf16.mxu0 %v613_v2  ;;  %v2239_v26 = vpop.permute.xlu0 %542  ;;  %v601_v27 = vpop.permute.xlu1 %600 }
  0xc7   : > { %1656 = vmatprep.subr.bf16.mxu1 %v2239_v26  ;;  %v611_v6 = vsel %vm387_vm5, %v601_v27, %v2176_v55 }
  0xc8   : > { %691 = vmatpush2.bf16.msra.mxu0 %v612_v5  ;;  %1657 = vmatpush3.bf16.msra.mxu1 %v1948_v3  ;;  %v2261_v3 = vld [vmem:[%s1937_s25 + $0x68] ss:$12 sps:$4 sm:$0xff]  }
  0xc9   : > { %1121 = vrot.lane.b32.xlu0 %v2235_v25, %s1863_s26  ;;  %314 = vrot.lane.b32.xlu1 %v2058_v17, %s1872_s8 }
  0xca   : > { %692 = vmatprep.subr.bf16.mxu0 %v611_v6  ;;  %v599_v28 = vpop.permute.xlu0 %598  ;;  %v2253_v31 = vpop.permute.xlu1 %536 }
  0xcb   : > { %v610_v32 = vsel %vm387_vm5, %v599_v28, %v601_v27  ;;  %1658 = vmatprep.subr.bf16.mxu1 %v2253_v31 }
  0xcc   : > { %693 = vmatpush2.bf16.msra.mxu0 %v610_v32  ;;  %1659 = vmatpush3.bf16.msra.mxu1 %v1957_v4 }
  0xcd   : > { %312 = vrot.lane.b32.xlu0 %v2068_v19, %s1872_s8  ;;  %1117 = vrot.lane.b32.xlu1 %v2251_v30, %s1863_s26 }
  0xce   : > { %v585_v33 = vpop.permute.xlu0 %584  ;;  %1719 = vmatprep.subr.bf16.mxu1 %v1873_v34  ;;  %v583_v36 = vpop.permute.xlu1 %582 }
  0xcf   : > { %v591_v37 = vsel %vm364_vm6, %v585_v33, %v2189_v61  ;;  %789 = vmatmul.mubr.bf16.vlgmr.msra.gmra.mxu1 %v2138_v39  ;;  %v590_v4 = vsel %vm364_vm6, %v583_v36, %v585_v33 }
  0xd0   : > { %694 = vmatprep.subr.bf16.mxu0 %v591_v37  ;;  %1720 = vmatpush3.bf16.msra.mxu1 %v2119_v29  ;;  %v844_v29 = vcombine.high %v2276_v38, %v2276_v38 }
  0xd1   : > { %1119 = vrot.lane.b32.xlu0 %v2261_v3, %s1863_s26  ;;  %1115 = vrot.lane.b32.xlu1 %v2267_v35, %s1863_s26 }
  0xd2   : > { %695 = vmatpush2.bf16.msra.mxu0 %v590_v4  ;;  %v579_v41 = vpop.permute.xlu0 %578  ;;  %v577_v42 = vpop.permute.xlu1 %576  ;;  %1721 = vmatprep.subr.bf16.mxu1 %v1873_v34  ;;  %v2299_v49 = vrot.slane %v844_v29, %v2027_v14 }
  0xd3   : > { %v589_v43 = vsel %vm364_vm6, %v579_v41, %v2202_v10  ;;  %1723 = vmatprep.mubr.msk.bf16.mxu1 %vm1874_vm7, %v1873_v34  ;;  %v588_v45 = vsel %vm364_vm6, %v577_v42, %v579_v41 }
  0xd4   : > { %696 = vmatprep.subr.bf16.mxu0 %v589_v43  ;;  %1722 = vmatpush3.bf16.msra.mxu1 %v2142_v40 }
  0xd5   : > { %308 = vrot.lane.b32.xlu0 %v2077_v20, %s1872_s8  ;;  %306 = vrot.lane.b32.xlu1 %v2087_v22, %s1872_s8 }
  0xd6   : > { %697 = vmatpush2.bf16.msra.mxu0 %v588_v45  ;;  %v563_v46 = vpop.permute.xlu0 %562  ;;  %v561_v47 = vpop.permute.xlu1 %560 }
  0xd7   : > { %v569_v48 = vsel %vm341_vm8, %v563_v46, %v2210_v13  ;;  %v568_v50 = vsel %vm341_vm8, %v561_v47, %v563_v46  ;;  %1724 = vmatmul.mubr.msk.bf16.vlgmr.msra.gmra.mxu1 %vm670_vm3, %v2151_v44 }
  0xd8   : > { %698 = vmatprep.subr.bf16.mxu0 %v569_v48  ;;  %897 = vmatprep.mubr.bf16.mxu1 %v2299_v49 }
  0xd9   : > { %1101 = vrot.lane.b32.xlu0 %v2220_v16, %s1866_s28  ;;  %1103 = vrot.lane.b32.xlu1 %v2226_v23, %s1866_s28 }
  0xda   : > { %699 = vmatpush2.bf16.msra.mxu0 %v568_v50  ;;  %v292_v40 = vpop.permute.xlu0 %291  ;;  %v2309_v51 = vpop.permute.xlu1 %293 }
  0xdb   : > { %v299_v52 = vsel %vm295_vm0, %v292_v40, %v2309_v51 }
  0xdc   : > { %865 = vmatprep.subr.bf16.mxu1 %v299_v52 }
  0xdd   : > { %1099 = vrot.lane.b32.xlu0 %v2235_v25, %s1866_s28  ;;  %406 = vrot.lane.b32.xlu1 %v2058_v17, %s1864_s27 }
  0xde   : > { %v290_v44 = vpop.permute.xlu0 %289  ;;  %v557_v53 = vpop.permute.xlu1 %556 }
  0xdf   : > { %v298_v54 = vsel %vm295_vm0, %v290_v44, %v292_v40  ;;  %v567_v55 = vsel %vm341_vm8, %v557_v53, %v2213_v15 }
  0xe0   : > { %866 = vmatpush1.bf16.msra.mxu1 %v298_v54  ;;  %700 = vmatprep.subr.bf16.mxu0 %v567_v55 }
  0xe1   : > { %404 = vrot.lane.b32.xlu0 %v2068_v19, %s1864_s27  ;;  %1095 = vrot.lane.b32.xlu1 %v2251_v30, %s1866_s28 }
  0xe2   : > { %v555_v56 = vpop.permute.xlu0 %554  ;;  %v286_v57 = vpop.permute.xlu1 %285 }
  0xe3   : > { %v566_v58 = vsel %vm341_vm8, %v555_v56, %v557_v53 }
  0xe4   : > { %701 = vmatpush2.bf16.msra.mxu0 %v566_v58 }
  0xe5   : > { %1097 = vrot.lane.b32.xlu0 %v2261_v3, %s1866_s28  ;;  %1093 = vrot.lane.b32.xlu1 %v2267_v35, %s1866_s28 }
  0xe6   : > { %v2329_v59 = vpop.permute.xlu0 %287  ;;  %v284_v60 = vpop.permute.xlu1 %283 }
  0xe7   : > { %v297_v61 = vsel %vm295_vm0, %v286_v57, %v2329_v59  ;;  %v296_v62 = vsel %vm295_vm0, %v284_v60, %v286_v57 }
  0xe8   : > { %867 = vmatprep.subr.bf16.mxu1 %v297_v61 }
  0xe9   : > { %400 = vrot.lane.b32.xlu0 %v2077_v20, %s1864_s27  ;;  %868 = vmatpush1.bf16.msra.mxu1 %v296_v62 }
  0xea   : > { %398 = vrot.lane.b32.xlu1 %v2087_v22, %s1864_s27  ;;  %v541_v63 = vpop.permute.xlu0 %540  ;;  %v539_v0 = vpop.permute.xlu1 %538 }
  0xeb   : > { %v547_v8 = vsel %vm318_vm9, %v541_v63, %v2239_v26  ;;  %v546_v9 = vsel %vm318_vm9, %v539_v0, %v541_v63 }
  0xec   : > { %702 = vmatprep.subr.bf16.mxu0 %v547_v8 }
  0xed   : > { %1079 = vrot.lane.b32.xlu0 %v2220_v16, %s1868_s30  ;;  %703 = vmatpush2.bf16.msra.mxu0 %v546_v9 }
  0xee   : > { %1081 = vrot.lane.b32.xlu1 %v2226_v23, %s1868_s30  ;;  %v269_v10 = vpop.permute.xlu0 %268  ;;  %v271_v11 = vpop.permute.xlu1 %270 }
  0xef   : > { %v276_v13 = vsel %vm272_vm2, %v269_v10, %v271_v11 }
  0xf0   : > { %869 = vmatprep.subr.bf16.mxu1 %v276_v13  ;;  %v2464_v13 = vld.sshfl [vmem:[%s2624_s1 + $0x6] sm:$0x13 pattern:$0x75316420] }
  0xf1   : > { %1077 = vrot.lane.b32.xlu0 %v2235_v25, %s1868_s30 }
  0xf2   : > { %1233 = vrot.lane.b32.xlu1 %v2220_v16, %s1864_s27  ;;  %v267_v15 = vpop.permute.xlu0 %266  ;;  %v535_v24 = vpop.permute.xlu1 %534 }
  0xf3   : > { %v275_v1 = vsel %vm272_vm2, %v267_v15, %v269_v10  ;;  %v545_v2 = vsel %vm318_vm9, %v535_v24, %v2253_v31  ;;  %v1257_v15 = vcombine.high %v2464_v13, %v2464_v13 }
  0xf4   : > { %870 = vmatpush1.bf16.msra.mxu1 %v275_v1  ;;  %704 = vmatprep.subr.bf16.mxu0 %v545_v2 }
  0xf5   : > { %1235 = vrot.lane.b32.xlu0 %v2226_v23, %s1864_s27 }
  0xf6   : > { %1231 = vrot.lane.b32.xlu1 %v2235_v25, %s1864_s27  ;;  %v533_v26 = vpop.permute.xlu0 %532  ;;  %v263_v27 = vpop.permute.xlu1 %262 }
  0xf7   : > { %v544_v5 = vsel %vm318_vm9, %v533_v26, %v535_v24 }
  0xf8   : > { %705 = vmatpush2.bf16.msra.mxu0 %v544_v5 }
  0xf9   : > { %1073 = vrot.lane.b32.xlu0 %v2251_v30, %s1868_s30 }
  0xfa   : > { %1075 = vrot.lane.b32.xlu1 %v2261_v3, %s1868_s30  ;;  %v265_v6 = vpop.permute.xlu0 %264  ;;  %v261_v28 = vpop.permute.xlu1 %260 }
  0xfb   : > { %v274_v31 = vsel %vm272_vm2, %v263_v27, %v265_v6  ;;  %707 = vmatmul.mubr.bf16.vlgmr.msra.gmra.mxu0 %v2138_v39  ;;  %v273_v32 = vsel %vm272_vm2, %v261_v28, %v263_v27  ;;  %v2476_v27 = vrot.slane %v1257_v15, %v2027_v14 }
  0xfc   : > { %871 = vmatprep.subr.bf16.mxu1 %v274_v31  ;;  %979 = vmatprep.mubr.bf16.mxu0 %v2299_v49 }
  0xfd   : > { %1071 = vrot.lane.b32.xlu0 %v2267_v35, %s1868_s30  ;;  %872 = vmatpush1.bf16.msra.mxu1 %v273_v32 }
  0xfe   : > { %1227 = vrot.lane.b32.xlu1 %v2251_v30, %s1864_s27  ;;  %v386_v33 = vpop.permute.xlu0 %385 }
  0xff   : > { %v246_v36 = vpop.permute.xlu1 %245  ;;  %1669 = vmatprep.subr.bf16.mxu0 %v386_v33 }
 0x100   : > { %1670 = vmatpush3.bf16.msra.mxu0 %v2309_v51 }
 0x101   : > { %1229 = vrot.lane.b32.xlu0 %v2261_v3, %s1864_s27 }
 0x102   : > { %1225 = vrot.lane.b32.xlu1 %v2267_v35, %s1864_s27  ;;  %v248_v39 = vpop.permute.xlu0 %247 }
 0x103   : > { %v244_v37 = vpop.permute.xlu1 %243  ;;  %v253_v4 = vsel %vm249_vm4, %v246_v36, %v248_v39 }
 0x104   : > { %v252_v41 = vsel %vm249_vm4, %v244_v37, %v246_v36  ;;  %873 = vmatprep.subr.bf16.mxu1 %v253_v4 }
 0x105   : > { %1213 = vrot.lane.b32.xlu0 %v2226_v23, %s1867_s29  ;;  %874 = vmatpush1.bf16.msra.mxu1 %v252_v41 }
 0x106   : > { %1207 = vrot.lane.b32.xlu1 %v2261_v3, %s1867_s29  ;;  %v380_v42 = vpop.permute.xlu0 %379 }
 0x107   : > { %v240_v43 = vpop.permute.xlu1 %239  ;;  %1671 = vmatprep.subr.bf16.mxu0 %v380_v42 }
 0x108   : > { %1672 = vmatpush3.bf16.msra.mxu0 %v2329_v59 }
 0x109   : > { %1211 = vrot.lane.b32.xlu0 %v2220_v16, %s1867_s29 }
 0x10a   : > { %1209 = vrot.lane.b32.xlu1 %v2235_v25, %s1867_s29  ;;  %v242_v29 = vpop.permute.xlu0 %241 }
 0x10b   : > { %v238_v45 = vpop.permute.xlu1 %237  ;;  %v251_v46 = vsel %vm249_vm4, %v240_v43, %v242_v29 }
 0x10c   : > { %v250_v47 = vsel %vm249_vm4, %v238_v45, %v240_v43  ;;  %875 = vmatprep.subr.bf16.mxu1 %v251_v46 }
 0x10d   : > { %1191 = vrot.lane.b32.xlu0 %v2226_v23, %s1869_s4  ;;  %876 = vmatpush1.bf16.msra.mxu1 %v250_v47 }
 0x10e   : > { %1205 = vrot.lane.b32.xlu1 %v2251_v30, %s1867_s29  ;;  %v363_v48 = vpop.permute.xlu0 %362  ;;  %877 = vmatprep.subr.bf16.mxu1 %v2058_v17 }
 0x10f   : > { %v357_v49 = vpop.permute.xlu1 %356  ;;  %1673 = vmatprep.subr.bf16.mxu0 %v363_v48 }
 0x110   : > { %1674 = vmatpush3.bf16.msra.mxu0 %v271_v11 }
 0x111   : > { %1203 = vrot.lane.b32.xlu0 %v2267_v35, %s1867_s29  ;;  %878 = vmatpush1.bf16.msra.mxu1 %v2068_v19 }
 0x112   : > { %1185 = vrot.lane.b32.xlu1 %v2261_v3, %s1869_s4  ;;  %1675 = vmatprep.subr.bf16.mxu0 %v357_v49  ;;  %v340_v50 = vpop.permute.xlu0 %339 }
 0x113   : > { %v384_v40 = vpop.permute.xlu1 %383  ;;  %879 = vmatprep.subr.bf16.mxu1 %v2077_v20 }
 0x114   : > { %1676 = vmatpush3.bf16.msra.mxu0 %v265_v6  ;;  %v391_v17 = vsel %vm387_vm5, %v384_v40, %v386_v33 }
 0x115   : > { %1189 = vrot.lane.b32.xlu0 %v2220_v16, %s1869_s4  ;;  %880 = vmatpush1.bf16.msra.mxu1 %v2087_v22 }
 0x116   : > { %1187 = vrot.lane.b32.xlu1 %v2235_v25, %s1869_s4  ;;  %1677 = vmatprep.subr.bf16.mxu0 %v340_v50 }
 0x117   : > { %v382_v19 = vpop.permute.xlu0 %381  ;;  %881 = vmatprep.subr.bf16.mxu1 %v391_v17  ;;  %v334_v52 = vpop.permute.xlu1 %333 }
 0x118   : > { %v390_v51 = vsel %vm387_vm5, %v382_v19, %v384_v40  ;;  %1678 = vmatpush3.bf16.msra.mxu0 %v248_v39 }
 0x119   : > { %1169 = vrot.lane.b32.xlu0 %v2226_v23, %s1871_s5  ;;  %882 = vmatpush2.bf16.msra.mxu1 %v390_v51 }
 0x11a   : > { %1183 = vrot.lane.b32.xlu1 %v2251_v30, %s1869_s4  ;;  %1679 = vmatprep.subr.bf16.mxu0 %v334_v52 }
 0x11b   : > { %v378_v20 = vpop.permute.xlu0 %377  ;;  %v376_v22 = vpop.permute.xlu1 %375 }
 0x11c   : > { %v389_v44 = vsel %vm387_vm5, %v378_v20, %v380_v42  ;;  %1680 = vmatpush3.bf16.msra.mxu0 %v242_v29  ;;  %v388_v53 = vsel %vm387_vm5, %v376_v22, %v378_v20 }
 0x11d   : > { %1181 = vrot.lane.b32.xlu0 %v2267_v35, %s1869_s4  ;;  %883 = vmatprep.subr.bf16.mxu1 %v389_v44 }
 0x11e   : > { %1163 = vrot.lane.b32.xlu1 %v2261_v3, %s1871_s5  ;;  %884 = vmatpush2.bf16.msra.mxu1 %v388_v53 }
 0x11f   : > { %v2416_v54 = vpop.permute.xlu0 %316  ;;  %v361_v55 = vpop.permute.xlu1 %360 }
 0x120   : > { %1681 = vmatprep.subr.bf16.mxu0 %v2416_v54  ;;  %v368_v56 = vsel %vm364_vm6, %v361_v55, %v363_v48 }
 0x121   : > { %1167 = vrot.lane.b32.xlu0 %v2220_v16, %s1871_s5  ;;  %1682 = vmatpush3.bf16.msra.mxu0 %v2063_v18  ;;  %v2436_v18 = vrot.slane %v2276_v38, %v2027_v14 }
 0x122   : > { %1165 = vrot.lane.b32.xlu1 %v2235_v25, %s1871_s5  ;;  %885 = vmatprep.subr.bf16.mxu1 %v368_v56 }
 0x123   : > { %v359_v57 = vpop.permute.xlu0 %358  ;;  %v2426_v59 = vpop.permute.xlu1 %310  ;;  %v2472_v24 = vcombine.high %v2436_v18, %v2436_v18 }
 0x124   : > { %v367_v58 = vsel %vm364_vm6, %v359_v57, %v361_v55  ;;  %1683 = vmatprep.subr.bf16.mxu0 %v2426_v59 }
 0x125   : > { %1147 = vrot.lane.b32.xlu0 %v2226_v23, %s1872_s8  ;;  %886 = vmatpush2.bf16.msra.mxu1 %v367_v58 }
 0x126   : > { %1161 = vrot.lane.b32.xlu1 %v2251_v30, %s1871_s5  ;;  %1684 = vmatpush3.bf16.msra.mxu0 %v2082_v21 }
 0x127   : > { %v355_v60 = vpop.permute.xlu0 %354  ;;  %v353_v61 = vpop.permute.xlu1 %352  ;;  %1727 = vmatprep.subr.bf16.mxu0 %v1873_v34 }
 0x128   : > { %v366_v62 = vsel %vm364_vm6, %v355_v60, %v357_v49  ;;  %v365_v63 = vsel %vm364_vm6, %v353_v61, %v355_v60 }
 0x129   : > { %1159 = vrot.lane.b32.xlu0 %v2267_v35, %s1871_s5  ;;  %887 = vmatprep.subr.bf16.mxu1 %v366_v62 }
 0x12a   : > { %1141 = vrot.lane.b32.xlu1 %v2261_v3, %s1872_s8  ;;  %888 = vmatpush2.bf16.msra.mxu1 %v365_v63 }
 0x12b   : > { %v338_v21 = vpop.permute.xlu0 %337  ;;  %980 = vmatmul.mubr.bf16.vlgmr.msra.gmra.mxu0 %v2436_v18  ;;  %v2446_v38 = vpop.permute.xlu1 %408 }
 0x12c   : > { %v345_v0 = vsel %vm341_vm8, %v338_v21, %v340_v50  ;;  %1731 = vmatprep.mubr.msk.bf16.mxu0 %vm1874_vm7, %v1873_v34  ;;  %1728 = vmatpush3.bf16.msra.mxu0 %v2446_v38 }
 0x12d   : > { %1145 = vrot.lane.b32.xlu0 %v2220_v16, %s1872_s8  ;;  %889 = vmatprep.subr.bf16.mxu1 %v345_v0 }
 0x12e   : > { %1143 = vrot.lane.b32.xlu1 %v2235_v25, %s1872_s8  ;;  %1729 = vmatprep.subr.bf16.mxu0 %v1873_v34 }
 0x12f   : > { %v336_v8 = vpop.permute.xlu0 %335  ;;  %v332_v10 = vpop.permute.xlu1 %331 }
 0x130   : > { %v344_v9 = vsel %vm341_vm8, %v336_v8, %v338_v21  ;;  %v343_v11 = vsel %vm341_vm8, %v332_v10, %v334_v52 }
 0x131   : > { %1139 = vrot.lane.b32.xlu0 %v2251_v30, %s1872_s8  ;;  %890 = vmatpush2.bf16.msra.mxu1 %v344_v9 }
 0x132   : > { %1137 = vrot.lane.b32.xlu1 %v2267_v35, %s1872_s8  ;;  %891 = vmatprep.subr.bf16.mxu1 %v343_v11 }
 0x133   : > { %v403_v1 = vpop.permute.xlu0 %402  ;;  %v330_v2 = vpop.permute.xlu1 %329 }
 0x134   : > { %1730 = vmatpush3.bf16.msra.mxu0 %v403_v1  ;;  %v342_v26 = vsel %vm341_vm8, %v330_v2, %v332_v10 }
 0x135   : > { %892 = vmatpush2.bf16.msra.mxu1 %v342_v26 }
 0x137   : > { %v1124_v5 = vpop.permute.xlu0 %1123  ;;  %1732 = vmatmul.mubr.msk.bf16.vlgmr.msra.gmra.mxu0 %vm670_vm3, %v2472_v24  ;;  %v2480_v6 = vpop.permute.xlu1 %1125 }
 0x138   : > { %1310 = vmatprep.mubr.bf16.mxu0 %v2476_v27  ;;  %v1130_v28 = vsel %vm295_vm0, %v1124_v5, %v2480_v6 }
 0x139   : > { %1278 = vmatprep.subr.bf16.mxu0 %v1130_v28 }
 0x13b   : > { %v1122_v31 = vpop.permute.xlu0 %1121  ;;  %v315_v33 = vpop.permute.xlu1 %314 }
 0x13c   : > { %v1129_v32 = vsel %vm295_vm0, %v1122_v31, %v1124_v5  ;;  %v322_v36 = vsel %vm318_vm9, %v315_v33, %v2416_v54  ;;  %v1443_v5 = vld [vmem:[#allocation2] sm:$0x1] }
 0x13d   : > { %1279 = vmatpush1.bf16.msra.mxu0 %v1129_v32  ;;  %893 = vmatprep.subr.bf16.mxu1 %v322_v36 }
 0x13e   : > { %1446 = vperm.xlu0 %1798, %v1443_v5  }
 0x13f   : > { %v313_v39 = vpop.permute.xlu0 %312  ;;  %v1118_v4 = vpop.permute.xlu1 %1117 }
 0x140   : > { %v321_v37 = vsel %vm318_vm9, %v313_v39, %v315_v33  ;;  %v2538_v33 = vrot.slane %v2464_v13, %v2027_v14 }
 0x141   : > { %894 = vmatpush2.bf16.msra.mxu1 %v321_v37 }
 0x143   : > { %v2489_v41 = vpop.permute.xlu0 %1119  ;;  %v1116_v42 = vpop.permute.xlu1 %1115 }
 0x144   : > { %v1128_v43 = vsel %vm295_vm0, %v1118_v4, %v2489_v41  ;;  %v1127_v29 = vsel %vm295_vm0, %v1116_v42, %v1118_v4  ;;  %v2549_v42 = vcombine.high %v2538_v33, %v2538_v33  ;;  %vm1493_vm0 = vcmask 124930  }
 0x145   : > { %1280 = vmatprep.subr.bf16.mxu0 %v1128_v43 }
 0x146   : > { %1281 = vmatpush1.bf16.msra.mxu0 %v1127_v29 }
 0x147   : > { %v309_v45 = vpop.permute.xlu0 %308  ;;  %v307_v46 = vpop.permute.xlu1 %306 }
 0x148   : > { %v320_v47 = vsel %vm318_vm9, %v309_v45, %v2426_v59  ;;  %v319_v48 = vsel %vm318_vm9, %v307_v46, %v309_v45 }
 0x149   : > { %895 = vmatprep.subr.bf16.mxu1 %v320_v47 }
 0x14a   : > { %896 = vmatpush2.bf16.msra.mxu1 %v319_v48 }
 0x14b   : > { %v1102_v49 = vpop.permute.xlu0 %1101  ;;  %v2497_v50 = vpop.permute.xlu1 %1103 }
 0x14c   : > { %v1108_v40 = vsel %vm272_vm2, %v1102_v49, %v2497_v50 }
 0x14d   : > { %898 = vmatmul.mubr.bf16.vlgmr.msra.gmra.mxu1 %v2436_v18  ;;  %1282 = vmatprep.subr.bf16.mxu0 %v1108_v40 }
 0x14e   : > { %938 = vmatprep.mubr.bf16.mxu1 %v1865_v7 }
 0x14f   : > { %v1100_v17 = vpop.permute.xlu0 %1099  ;;  %v407_v51 = vpop.permute.xlu1 %406 }
 0x150   : > { %v1107_v19 = vsel %vm272_vm2, %v1100_v17, %v1102_v49  ;;  %v414_v52 = vsel %vm410_vm1, %v407_v51, %v2446_v38 }
 0x151   : > { %1283 = vmatpush1.bf16.msra.mxu0 %v1107_v19  ;;  %918 = vmatprep.subr.bf16.mxu1 %v414_v52 }
 0x153   : > { %v405_v20 = vpop.permute.xlu0 %404  ;;  %v1096_v44 = vpop.permute.xlu1 %1095 }
 0x154   : > { %v413_v22 = vsel %vm410_vm1, %v405_v20, %v407_v51 }
 0x155   : > { %919 = vmatpush1.bf16.msra.mxu1 %v413_v22 }
 0x157   : > { %v2507_v53 = vpop.permute.xlu0 %1097  ;;  %v1094_v54 = vpop.permute.xlu1 %1093 }
 0x158   : > { %v1106_v55 = vsel %vm272_vm2, %v1096_v44, %v2507_v53  ;;  %v1105_v56 = vsel %vm272_vm2, %v1094_v54, %v1096_v44  ;;  %vm1492_vm2 = vmor %vm1491_vm15, %vm2596_vm14 }
 0x159   : > { %1284 = vmatprep.subr.bf16.mxu0 %v1106_v55 }
 0x15a   : > { %1285 = vmatpush1.bf16.msra.mxu0 %v1105_v56 }
 0x15b   : > { %v401_v57 = vpop.permute.xlu0 %400 }
 0x15c   : > { %v399_v58 = vpop.permute.xlu1 %398  ;;  %v412_v59 = vsel %vm410_vm1, %v401_v57, %v403_v1 }
 0x15d   : > { %v411_v60 = vsel %vm410_vm1, %v399_v58, %v401_v57  ;;  %920 = vmatprep.subr.bf16.mxu1 %v412_v59 }
 0x15e   : > { %921 = vmatpush1.bf16.msra.mxu1 %v411_v60 }
 0x15f   : > { %v1080_v18 = vpop.permute.xlu0 %1079 }
 0x160   : > { %v2514_v61 = vpop.permute.xlu1 %1081  ;;  %v2516_v62 = vpop.f32.mrf.mxu1 }
 0x161   : > { %1620 = vmatmul.mubr.msk.bf16.vlgmr.msra.gmra.mxu1 %vm670_vm3, %v2472_v24  ;;  %v1086_v63 = vsel %vm249_vm4, %v1080_v18, %v2514_v61 }
 0x162   : > { %1286 = vmatprep.subr.bf16.mxu0 %v1086_v63  ;;  %1351 = vmatprep.mubr.bf16.mxu1 %v1865_v7  ;;  %v2523_v21 = vpop.f32.mrf.mxu1 }
 0x163   : > { %v1078_v38 = vpop.permute.xlu0 %1077 }
 0x164   : > { %v1085_v0 = vsel %vm249_vm4, %v1078_v38, %v1080_v18  ;;  %v1234_v8 = vpop.permute.xlu1 %1233  ;;  %v753_v9 = vpop.f32.mrf.mxu1 }
 0x165   : > { %1287 = vmatpush1.bf16.msra.mxu0 %v1085_v0 }
 0x166   : > { %v754_v10 = vpop.f32.mrf.mxu1 }
 0x167   : > { %v2526_v11 = vpop.permute.xlu0 %1235 }
 0x168   : > { %v1232_v15 = vpop.permute.xlu1 %1231  ;;  %v1240_v1 = vsel %vm410_vm1, %v1234_v8, %v2526_v11 }
 0x169   : > { %v1239_v24 = vsel %vm410_vm1, %v1232_v15, %v1234_v8  ;;  %1331 = vmatprep.subr.bf16.mxu1 %v1240_v1 }
 0x16a   : > { %1332 = vmatpush1.bf16.msra.mxu1 %v1239_v24 }
 0x16b   : > { %v1074_v7 = vpop.permute.xlu0 %1073 }
 0x16c   : > { %v2531_v2 = vpop.permute.xlu1 %1075 }
 0x16d   : > { %v1084_v26 = vsel %vm249_vm4, %v1074_v7, %v2531_v2 }
 0x16e   : > { %1288 = vmatprep.subr.bf16.mxu0 %v1084_v26 }
 0x16f   : > { %v1072_v28 = vpop.permute.xlu0 %1071 }
 0x170   : > { %v1083_v31 = vsel %vm249_vm4, %v1072_v28, %v1074_v7  ;;  %v1228_v32 = vpop.permute.xlu1 %1227 }
 0x171   : > { %1289 = vmatpush1.bf16.msra.mxu0 %v1083_v31 }
 0x172   : > { %1290 = vmatprep.subr.bf16.mxu0 %v2220_v16 }
 0x173   : > { %v2541_v36 = vpop.permute.xlu0 %1229 }
 0x174   : > { %v1226_v39 = vpop.permute.xlu1 %1225  ;;  %v1238_v37 = vsel %vm410_vm1, %v1228_v32, %v2541_v36 }
 0x175   : > { %v1237_v4 = vsel %vm410_vm1, %v1226_v39, %v1228_v32  ;;  %1333 = vmatprep.subr.bf16.mxu1 %v1238_v37  ;;  %1291 = vmatpush1.bf16.msra.mxu0 %v2235_v25  ;;  %vm1494_vm1 = vsmask.f32 2304 }
 0x176   : > { %1334 = vmatpush1.bf16.msra.mxu1 %v1237_v4  ;;  %1292 = vmatprep.subr.bf16.mxu0 %v2251_v30 }
 0x177   : > { %v1214_v13 = vpop.permute.xlu0 %1213 }
 0x178   : > { %v1208_v16 = vpop.permute.xlu1 %1207  ;;  %1694 = vmatprep.subr.bf16.mxu1 %v1214_v13 }
 0x179   : > { %1293 = vmatpush1.bf16.msra.mxu0 %v2267_v35  ;;  %1638 = vmatmul.mubr.msk.bf16.vlgmr.msra.gmra.mxu1 %vm670_vm3, %v2549_v42 }
 0x17a   : > { %1695 = vmatpush3.bf16.msra.mxu1 %v2480_v6  ;;  %1392 = vmatprep.mubr.bf16.mxu1 %v2476_v27 }
 0x17b   : > { %v1212_v25 = vpop.permute.xlu0 %1211  ;;  %1696 = vmatprep.subr.bf16.mxu1 %v1208_v16 }
 0x17c   : > { %v1210_v43 = vpop.permute.xlu1 %1209  ;;  %v1218_v29 = vsel %vm387_vm5, %v1212_v25, %v1214_v13 }
 0x17d   : > { %v1217_v45 = vsel %vm387_vm5, %v1210_v43, %v1212_v25  ;;  %1294 = vmatprep.subr.bf16.mxu0 %v1218_v29 }
 0x17e   : > { %1295 = vmatpush2.bf16.msra.mxu0 %v1217_v45  ;;  %1697 = vmatpush3.bf16.msra.mxu1 %v2489_v41 }
 0x17f   : > { %v1192_v30 = vpop.permute.xlu0 %1191 }
 0x180   : > { %v1206_v35 = vpop.permute.xlu1 %1205  ;;  %1698 = vmatprep.subr.bf16.mxu1 %v1192_v30 }
 0x181   : > { %v1216_v46 = vsel %vm387_vm5, %v1206_v35, %v1208_v16 }
 0x182   : > { %1296 = vmatprep.subr.bf16.mxu0 %v1216_v46  ;;  %1699 = vmatpush3.bf16.msra.mxu1 %v2497_v50 }
 0x183   : > { %v1204_v27 = vpop.permute.xlu0 %1203 }
 0x184   : > { %v1215_v6 = vsel %vm387_vm5, %v1204_v27, %v1206_v35  ;;  %v1186_v47 = vpop.permute.xlu1 %1185 }
 0x185   : > { %1297 = vmatpush2.bf16.msra.mxu0 %v1215_v6  ;;  %1700 = vmatprep.subr.bf16.mxu1 %v1186_v47 }
 0x186   : > { %1701 = vmatpush3.bf16.msra.mxu1 %v2507_v53 }
 0x187   : > { %v1190_v48 = vpop.permute.xlu0 %1189 }
 0x188   : > { %v1188_v49 = vpop.permute.xlu1 %1187  ;;  %v1196_v41 = vsel %vm364_vm6, %v1190_v48, %v1192_v30 }
 0x189   : > { %v1195_v40 = vsel %vm364_vm6, %v1188_v49, %v1190_v48  ;;  %1298 = vmatprep.subr.bf16.mxu0 %v1196_v41 }
 0x18a   : > { %1299 = vmatpush2.bf16.msra.mxu0 %v1195_v40 }
 0x18b   : > { %v1170_v17 = vpop.permute.xlu0 %1169 }
 0x18c   : > { %v1184_v19 = vpop.permute.xlu1 %1183  ;;  %1702 = vmatprep.subr.bf16.mxu1 %v1170_v17 }
 0x18d   : > { %v1194_v50 = vsel %vm364_vm6, %v1184_v19, %v1186_v47  ;;  %1703 = vmatpush3.bf16.msra.mxu1 %v2514_v61 }
 0x18e   : > { %1300 = vmatprep.subr.bf16.mxu0 %v1194_v50 }
 0x18f   : > { %v1182_v51 = vpop.permute.xlu0 %1181  ;;  %v1660_v22 = vpop.f32.mrf.mxu1 }
 0x190   : > { %v1193_v52 = vsel %vm364_vm6, %v1182_v51, %v1184_v19  ;;  %v1164_v20 = vpop.permute.xlu1 %1163 }
 0x191   : > { %1704 = vmatprep.subr.bf16.mxu1 %v1164_v20  ;;  %1301 = vmatpush2.bf16.msra.mxu0 %v1193_v52  ;;  %v1661_v44 = vpop.f32.mrf.mxu1 }
 0x192   : > { %1705 = vmatpush3.bf16.msra.mxu1 %v2531_v2  ;;  %v1662_v54 = vadd.f32 %v1661_v44, %v1660_v22 }
 0x193   : > { %v1168_v53 = vpop.permute.xlu0 %1167  ;;  %v1663_v57 = vpop.f32.mrf.mxu1 }
 0x194   : > { %v1166_v55 = vpop.permute.xlu1 %1165  ;;  %v1174_v56 = vsel %vm341_vm8, %v1168_v53, %v1170_v17 }
 0x195   : > { %v1173_v58 = vsel %vm341_vm8, %v1166_v55, %v1168_v53  ;;  %1302 = vmatprep.subr.bf16.mxu0 %v1174_v56  ;;  %v1664_v59 = vpop.f32.mrf.mxu1  ;;  %v1451_v53 = vsub.s32 0, %v2015_v12 }
 0x196   : > { %1303 = vmatpush2.bf16.msra.mxu0 %v1173_v58 }
 0x197   : > { %v1148_v60 = vpop.permute.xlu0 %1147  ;;  %v830_v61 = vpop.f32.mrf.mxu1 }
 0x198   : > { %v1162_v18 = vpop.permute.xlu1 %1161  ;;  %1706 = vmatprep.subr.bf16.mxu1 %v1148_v60  ;;  %v831_v38 = vadd.f32 %v1662_v54, %v830_v61 }
 0x199   : > { %v1172_v63 = vsel %vm341_vm8, %v1162_v18, %v1164_v20  ;;  %1707 = vmatpush3.bf16.msra.mxu1 %v2226_v23  ;;  %v1725_v0 = vpop.f32.mrf.mxu1 }
 0x19a   : > { %1304 = vmatprep.subr.bf16.mxu0 %v1172_v63 }
 0x19b   : > { %v1160_v8 = vpop.permute.xlu0 %1159  ;;  %v833_v15 = vpop.f32.mrf.mxu1 }
 0x19c   : > { %v1171_v9 = vsel %vm341_vm8, %v1160_v8, %v1162_v18  ;;  %v1142_v10 = vpop.permute.xlu1 %1141 }
 0x19d   : > { %1708 = vmatprep.subr.bf16.mxu1 %v1142_v10  ;;  %1305 = vmatpush2.bf16.msra.mxu0 %v1171_v9  ;;  %v1726_v1 = vpop.f32.mrf.mxu1 }
 0x19e   : > { %1709 = vmatpush3.bf16.msra.mxu1 %v2261_v3 }
 0x19f   : > { %v1146_v24 = vpop.permute.xlu0 %1145  ;;  %1735 = vmatprep.subr.bf16.mxu1 %v1873_v34 }
 0x1a0   : > { %v1144_v7 = vpop.permute.xlu1 %1143  ;;  %v1152_v2 = vsel %vm318_vm9, %v1146_v24, %v1148_v60 }
 0x1a1   : > { %v1151_v23 = vsel %vm318_vm9, %v1144_v7, %v1146_v24  ;;  %1393 = vmatmul.mubr.bf16.vlgmr.msra.gmra.mxu1 %v2538_v33  ;;  %1306 = vmatprep.subr.bf16.mxu0 %v1152_v2 }
 0x1a2   : > { %1736 = vmatpush3.bf16.msra.mxu1 %v2526_v11  ;;  %1307 = vmatpush2.bf16.msra.mxu0 %v1151_v23 }
 0x1a3   : > { %v1140_v26 = vpop.permute.xlu0 %1139  ;;  %1737 = vmatprep.subr.bf16.mxu1 %v1873_v34  ;;  %1739 = vmatprep.mubr.msk.bf16.mxu1 %vm1874_vm7, %v1873_v34 }
 0x1a4   : > { %v1138_v3 = vpop.permute.xlu1 %1137  ;;  %v1150_v5 = vsel %vm318_vm9, %v1140_v26, %v1142_v10 }
 0x1a5   : > { %v1149_v28 = vsel %vm318_vm9, %v1138_v3, %v1140_v26  ;;  %1308 = vmatprep.subr.bf16.mxu0 %v1150_v5 }
 0x1a6   : > { %1738 = vmatpush3.bf16.msra.mxu1 %v2541_v36  ;;  %1309 = vmatpush2.bf16.msra.mxu0 %v1149_v28 }
 0x1a9   : > { %1740 = vmatmul.mubr.msk.bf16.vlgmr.msra.gmra.mxu1 %vm670_vm3, %v2549_v42  ;;  %1311 = vmatmul.mubr.bf16.vlgmr.msra.gmra.mxu0 %v2538_v33  ;;  %vm1495_vm3 = vmand %vm1493_vm0, %vm1494_vm1 }
 0x1aa   : > { %vm1496_vm4 = vmor %vm1495_vm3, %vm1492_vm2 }
 0x1b9   : > { %v1447_v55 = vpop.permute.xlu0 %1446 }
 0x1ba   : > { %v1452_v18 = vrot.slane %v1447_v55, %v1451_v53 }
 0x1bb   : > { %v708_v11 = vpop.f32.mrf.mxu0 }
 0x1bc   : > { %v750_v35 = vadd.f32 %v2516_v62, %v708_v11 }
 0x1bd   : > { %v710_v31 = vpop.f32.mrf.mxu0 }
 0x1be   : > { %v752_v33 = vadd.f32 %v2523_v21, %v710_v31  ;;  %v1497_v31 = vld [vmem:[%s192_s22] sm:$0x7] }
 0x1bf   : > { %v712_v32 = vpop.f32.mrf.mxu0 }
 0x1c1   : > { %v713_v39 = vpop.f32.mrf.mxu0 }
 0x1eb   : > { %v1685_v37 = vpop.f32.mrf.mxu0 }
 0x1ed   : > { %v1686_v34 = vpop.f32.mrf.mxu0 }
 0x1ee   : > { %v1687_v4 = vadd.f32 %v1686_v34, %v1685_v37 }
 0x1ef   : > { %v1688_v13 = vpop.f32.mrf.mxu0 }
 0x1f0   : > { %v982_v16 = vadd.f32 %v1687_v4, %v831_v38 }
 0x1f1   : > { %v1689_v25 = vpop.f32.mrf.mxu0 }
 0x1f7   : > { %v1021_v43 = vpop.f32.mrf.mxu0 }
 0x1f8   : > { %v1022_v29 = vadd.f32 %v1021_v43, %v982_v16 }
 0x1f9   : > { %v1733_v45 = vpop.f32.mrf.mxu0 }
 0x1fb   : > { %v1024_v36 = vpop.f32.mrf.mxu0 }
 0x1fd   : > { %v1734_v30 = vpop.f32.mrf.mxu0 }
 0x20d   : > { %v899_v42 = vpop.f32.mrf.mxu1 }
 0x20e   : > { %v900_v46 = vadd.f32 %v899_v42, %v750_v35 }
 0x20f   : > { %v901_v27 = vpop.f32.mrf.mxu1 }
 0x210   : > { %v902_v6 = vadd.f32 %v901_v27, %v752_v33 }
 0x211   : > { %v903_v47 = vpop.f32.mrf.mxu1 }
 0x213   : > { %v904_v48 = vpop.f32.mrf.mxu1 }
 0x221   : > { %v940_v49 = vpop.f32.mrf.mxu1 }
 0x222   : > { %v941_v41 = vadd.f32 %v940_v49, %v900_v46 }
 0x223   : > { %v942_v40 = vpop.f32.mrf.mxu1 }
 0x224   : > { %v943_v17 = vadd.f32 %v942_v40, %v902_v6 }
 0x225   : > { %v944_v19 = vpop.f32.mrf.mxu1 }
 0x227   : > { %v945_v50 = vpop.f32.mrf.mxu1 }
 0x239   : > { %v1353_v51 = vpop.f32.mrf.mxu1 }
 0x23b   : > { %v1355_v52 = vpop.f32.mrf.mxu1 }
 0x23d   : > { %v1357_v20 = vpop.f32.mrf.mxu1 }
 0x23f   : > { %v1358_v62 = vpop.f32.mrf.mxu1 }
 0x261   : > { %v1710_v22 = vpop.f32.mrf.mxu1 }
 0x263   : > { %v1711_v44 = vpop.f32.mrf.mxu1 }
 0x264   : > { %v1712_v56 = vadd.f32 %v1711_v44, %v1710_v22 }
 0x265   : > { %v1713_v21 = vpop.f32.mrf.mxu1 }
 0x267   : > { %v1714_v54 = vpop.f32.mrf.mxu1 }
 0x269   : > { %v1434_v57 = vpop.f32.mrf.mxu1  ;;  %v1312_v58 = vpop.f32.mrf.mxu0 }
 0x26a   : > { %v1435_v59 = vadd.f32 %v1712_v56, %v1434_v57  ;;  %v1354_v60 = vadd.f32 %v1353_v51, %v1312_v58 }
 0x26b   : > { %v1741_v61 = vpop.f32.mrf.mxu1  ;;  %v1314_v63 = vpop.f32.mrf.mxu0 }
 0x26c   : > { %v1442_v38 = vadd.f32 %v1435_v59, %v1022_v29  ;;  %v1440_v0 = vadd.f32 %v1354_v60, %v941_v41  ;;  %v1356_v8 = vadd.f32 %v1355_v52, %v1314_v63 }
 0x26d   : > { %v1437_v12 = vpop.f32.mrf.mxu1  ;;  %v1316_v9 = vpop.f32.mrf.mxu0 }
 0x26e   : > { %v1455_v10 = vadd.f32 %v1452_v18, %v1442_v38  ;;  %v1441_v15 = vadd.f32 %v1356_v8, %v943_v17  ;;  %v1453_v2 = vadd.f32 %v1452_v18, %v1440_v0 }
 0x26f   : > { %v1742_v24 = vpop.f32.mrf.mxu1  ;;  %v1317_v7 = vpop.f32.mrf.mxu0 }
 0x270   : > { %v1458_v23 = vpack.c.bf16 %v1455_v10, %v1455_v10  ;;  %v1454_v26 = vadd.f32 %v1452_v18, %v1441_v15 }
 0x272   : > { %v1640_v3 = vpack.c.bf16 %v1454_v26, %v1453_v2  ;;  %v1476_v5 = vrot.slane %v1458_v23, %v2027_v14 }
 0x274   : > { %v1469_v28 = vrot.slane %v1640_v3, %v2027_v14 }
 0x276   : > { %v1477_v11 = vcombine.low %v1469_v28, %v1476_v5 }
 0x278   : > { %v1484_v32 = vrot.slane %v1477_v11, %v2027_v14 }
 0x27a   : > { %v1498_v39 = vsel %vm1496_vm4, %v1484_v32, %v1497_v31 }
 0x27b   : > { %1499 = vst [vmem:[%s192_s22] sm:$0x7] %v1498_v39 }
 0x27c PF: > { %s15_s18 = sadd.s32 1, %s1861_s18   ;;  %s2629_s14 = smov %s1853_s16 }
 0x27d   : > { %p12_p7 = scmp.ge.s32.totalorder %s15_s18, 18   ;;  %s2630_s15 = smov %s1857_s17 }
 0x27e   : > { %s2631_s16 = smov %s2634_s2  ;;  %s2632_s17 = smov %s2638_s19 }
 0x27f   :  { %14 = sbr.rel (!%p12_p7) target bundleno = 3 (0x3), region = 67 }

</bundles_post_ra>
